<compile_context>
chip_gen: v7x
topology: tpu7x:2x2x1
jax: 0.10.0
libtpu: 0.0.40
codegen_flags: <defaults>
</compile_context>

<pallas_src>
import math

import jax
import jax.numpy as jnp
from jax.experimental import pallas as pl
from jax.experimental.pallas import tpu as pltpu

_MASK_VAL = -1e30   # finite "minus infinity" for the causal mask (robust softmax)
_LN_EPS = 1e-5
_F32 = jnp.float32


# ----------------------------- in-kernel math helpers -----------------------------

def _linear(x, w, b=None, activation=None):
    y = jnp.dot(x, w, preferred_element_type=_F32)
    if b is not None:
        y = y + b
    if activation == "relu":
        y = jnp.maximum(y, 0.0)
    elif activation == "gelu":
        y = jax.nn.gelu(y)          # not exercised with activation='relu'
    return y


def _layernorm(x, g, b):
    mu = jnp.mean(x, axis=-1, keepdims=True)
    xc = x - mu
    var = jnp.mean(xc * xc, axis=-1, keepdims=True)
    return xc * jax.lax.rsqrt(var + _LN_EPS) * g + b


def _softmax(s):
    m = jnp.max(s, axis=-1, keepdims=True)
    e = jnp.exp(s - m)
    return e * pl.reciprocal(jnp.sum(e, axis=-1, keepdims=True), approx=True)


def _roll_rows(x, shift):
    """jnp.roll(x, shift, axis=0) with a static shift (XLU sublane rotate)."""
    L = x.shape[0]
    s = shift % L
    if s == 0:
        return x
    return pltpu.roll(x, shift=s, axis=0)


def _embed(ep, x_ref, mark_ref, pe, ksize, Bt):
    """TokenEmbedding (circular conv1d via im2col, no bias) + TimeFeatureEmbedding
    (no bias) + fixed sin/cos positional embedding.  Dropout == identity (eval)."""
    pad = ksize // 2
    L = x_ref.shape[1]
    cols_list = []
    for b in range(Bt):                       # circular roll must stay within each sequence
        xb = x_ref[b]                         # (L, C_in)
        taps = [_roll_rows(xb, pad - j) for j in range(ksize)]
        cols_list.append(jnp.concatenate(taps, axis=-1))        # (L, k*C_in)
    cols = cols_list[0] if Bt == 1 else jnp.concatenate(cols_list, axis=0)
    # TODO(synk): when porting real PyTorch Conv1d weights (out,in,k) reorder to
    #             [tap-major, channel-minor] rows to match this im2col layout.
    val = jnp.dot(cols, ep["token_w"], preferred_element_type=_F32)

    if Bt == 1:
        marks = mark_ref[0]
    else:
        marks = mark_ref[...].reshape(Bt * L, mark_ref.shape[2])
    tmp = jnp.dot(marks, ep["temporal_w"], preferred_element_type=_F32)

    pe_full = pe if Bt == 1 else jnp.concatenate([pe] * Bt, axis=0)
    return val + tmp + pe_full


def _mha(pa, x_q, x_kv, n_heads, Bt, causal, is_self):
    """Multi-head full attention on batch-flattened activations.

    * QKV projection uses one fused (D, 3D) weight on the whole (Bt*L, D) slab.
    * Per batch element, the 4 head score tiles are stacked into one (H*L, S)
      array -> ONE softmax (one exp / one row-sum / one reciprocal).
    * Head outputs are merged by accumulating (P@V_h) @ W_o[h*E:(h+1)*E, :]
      instead of a cross-lane concat + single W_o matmul.
    """
    Lq = x_q.shape[0] // Bt
    Lk = x_kv.shape[0] // Bt
    D = x_q.shape[1]
    E = D // n_heads
    scale = 1.0 / math.sqrt(E)

    wqkv, bqkv = pa["wqkv"], pa["bqkv"]
    if is_self:
        qkv = jnp.dot(x_q, wqkv, preferred_element_type=_F32) + bqkv
        q, k, v = qkv[:, :D], qkv[:, D:2 * D], qkv[:, 2 * D:]
    else:
        q = jnp.dot(x_q, wqkv[:, :D], preferred_element_type=_F32) + bqkv[:, :D]
        kv = jnp.dot(x_kv, wqkv[:, D:], preferred_element_type=_F32) + bqkv[:, D:]
        k, v = kv[:, :D], kv[:, D:]

    if causal:
        rows = jax.lax.broadcasted_iota(jnp.int32, (n_heads * Lq, Lk), 0)
        cols = jax.lax.broadcasted_iota(jnp.int32, (n_heads * Lq, Lk), 1)
        mask = cols > (rows % Lq)             # same (Lq, Lk) causal mask for every head

    wo, bo = pa["wo"], pa["bo"]
    outs = []
    for b in range(Bt):
        rq = slice(b * Lq, (b + 1) * Lq)
        rk = slice(b * Lk, (b + 1) * Lk)
        qb, kb, vb = q[rq], k[rk], v[rk]

        s_heads = []
        for h in range(n_heads):
            hs = slice(h * E, (h + 1) * E)
            s_heads.append(jax.lax.dot_general(
                qb[:, hs], kb[:, hs], (((1,), (1,)), ((), ())),
                preferred_element_type=_F32))
        s = jnp.concatenate(s_heads, axis=0) * scale              # (H*Lq, Lk)
        if causal:
            s = jnp.where(mask, _MASK_VAL, s)
        p = _softmax(s)                                           # one softmax for all heads

        ob = jnp.zeros((Lq, D), _F32)
        for h in range(n_heads):
            hs = slice(h * E, (h + 1) * E)
            pv = jnp.dot(p[h * Lq:(h + 1) * Lq, :], vb[:, hs],
                         preferred_element_type=_F32)             # (Lq, E)
            ob = ob + jnp.dot(pv, wo[h * E:(h + 1) * E, :],
                              preferred_element_type=_F32)        # accumulate = concat
        outs.append(ob + bo)
    return outs[0] if Bt == 1 else jnp.concatenate(outs, axis=0)


def _encoder_layer(lp, x, n_heads, Bt, activation):
    x = _layernorm(x + _mha(lp["attn"], x, x, n_heads, Bt, causal=False, is_self=True),
                   lp["norm1_g"], lp["norm1_b"])
    y = _linear(x, lp["conv1_w"], lp["conv1_b"], activation=activation)
    y = _linear(y, lp["conv2_w"], lp["conv2_b"])
    return _layernorm(x + y, lp["norm2_g"], lp["norm2_b"])


def _decoder_layer(lp, x, cross, n_heads, Bt, activation):
    x = _layernorm(x + _mha(lp["self_attn"], x, x, n_heads, Bt, causal=True, is_self=True),
                   lp["norm1_g"], lp["norm1_b"])
    x = _layernorm(x + _mha(lp["cross_attn"], x, cross, n_heads, Bt, causal=False,
                            is_self=False),
                   lp["norm2_g"], lp["norm2_b"])
    y = _linear(x, lp["conv1_w"], lp["conv1_b"], activation=activation)
    y = _linear(y, lp["conv2_w"], lp["conv2_b"])
    return _layernorm(x + y, lp["norm3_g"], lp["norm3_b"])


# ----------------------------- host-side constants & packing -----------------------------

def positional_embedding(L, d_model):
    position = jnp.arange(L, dtype=_F32)[:, None]
    div_term = jnp.exp(jnp.arange(0, d_model, 2, dtype=_F32)
                       * -(math.log(10000.0) / d_model))
    pe = jnp.zeros((L, d_model), _F32)
    pe = pe.at[:, 0::2].set(jnp.sin(position * div_term))
    pe = pe.at[:, 1::2].set(jnp.cos(position * div_term))
    return pe


def _pack_params(params):
    """Pack every parameter into ONE (rows, 128) f32 slab (8-row aligned blocks)."""
    flat, treedef = jax.tree_util.tree_flatten(params)
    layout, blocks, rows = [], [], 0
    for a in flat:
        a = jnp.asarray(a, _F32)
        if a.ndim == 1:
            a = a[None, :]
        r, c = a.shape
        assert c <= 128, "parameter wider than one lane tile"
        rp = ((r + 7) // 8) * 8
        blk = jnp.zeros((rp, 128), _F32).at[:r, :c].set(a)
        layout.append((rows, r, c))
        blocks.append(blk)
        rows += rp
    return jnp.concatenate(blocks, axis=0), layout, treedef


def _unpack_params(slab_ref, layout, treedef):
    vals = [slab_ref[off:off + r, :c] for (off, r, c) in layout]
    return jax.tree_util.tree_unflatten(treedef, vals)


# ----------------------------- fused forward -----------------------------

def make_transformer_forward(params, cfg):
    slab, layout, treedef = _pack_params(params)
    n_heads = cfg["n_heads"]
    activation = cfg["activation"]
    ksize = cfg["kernel_size"]
    pred_len = cfg["pred_len"]
    c_out = cfg["c_out"]
    D = cfg["d_model"]
    dff = cfg["d_ff"]

    def forward(x_enc, x_mark_enc, x_dec, x_mark_dec):
        B, Lenc, Cin = x_enc.shape
        Ldec = x_dec.shape[1]
        Cm = x_mark_enc.shape[-1]

        # Batch folding: fold batch into each grid step but keep >= 2 parallel
        # steps (when possible) so v7x's two TensorCores both get work.
        if B >= 2 and B % 2 == 0:
            grid_steps = 2
        else:
            grid_steps = B
        Bt = B // grid_steps

        pe_enc = positional_embedding(Lenc, D)
        pe_dec = positional_embedding(Ldec, D)

        def kernel(enc_x_ref, enc_mark_ref, pe_enc_ref,
                   dec_x_ref, dec_mark_ref, pe_dec_ref, slab_ref, out_ref):
            p = _unpack_params(slab_ref, layout, treedef)

            # ----- encoder -----
            enc = _embed(p["enc_emb"], enc_x_ref, enc_mark_ref, pe_enc_ref[...], ksize, Bt)
            for lp in p["enc_layers"]:
                enc = _encoder_layer(lp, enc, n_heads, Bt, activation)
            enc = _layernorm(enc, p["enc_norm_g"], p["enc_norm_b"])

            # ----- decoder -----
            dec = _embed(p["dec_emb"], dec_x_ref, dec_mark_ref, pe_dec_ref[...], ksize, Bt)
            for lp in p["dec_layers"]:
                dec = _decoder_layer(lp, dec, enc, n_heads, Bt, activation)

            # Take the last pred_len rows of every batch element BEFORE the final
            # LayerNorm + projection (both per-row -> identical result, less work).
            tails = [dec[b * Ldec + Ldec - pred_len:(b + 1) * Ldec, :] for b in range(Bt)]
            tail = tails[0] if Bt == 1 else jnp.concatenate(tails, axis=0)
            tail = _layernorm(tail, p["dec_norm_g"], p["dec_norm_b"])
            pred = _linear(tail, p["proj_w"], p["proj_b"])        # (Bt*pred_len, c_out)

            if Bt == 1:
                out_ref[0] = pred
            else:
                out_ref[...] = pred.reshape(Bt, pred_len, c_out)

        def batched_spec(arr):
            tail_shape = tuple(arr.shape[1:])
            return pl.BlockSpec((Bt,) + tail_shape, lambda g: (g, 0, 0))

        def shared_spec(arr):
            nd = arr.ndim
            return pl.BlockSpec(tuple(arr.shape), lambda g, _nd=nd: (0,) * _nd)

        in_specs = [batched_spec(x_enc), batched_spec(x_mark_enc), shared_spec(pe_enc),
                    batched_spec(x_dec), batched_spec(x_mark_dec), shared_spec(pe_dec),
                    shared_spec(slab)]

        # Advisory cost estimate for the XLA scheduler around the custom call.
        def mm(m, k, n):
            return 2 * m * k * n

        def att(lq, lk):
            e = D // n_heads
            return mm(lq, D, 3 * D) + n_heads * (mm(lq, e, lk) + mm(lq, lk, e) + mm(lq, e, D))

        per_b = (mm(Lenc, ksize * Cin, D) + mm(Lenc, Cm, D)
                 + cfg["e_layers"] * (att(Lenc, Lenc) + mm(Lenc, D, dff) + mm(Lenc, dff, D))
                 + mm(Ldec, ksize * Cin, D) + mm(Ldec, Cm, D)
                 + cfg["d_layers"] * (att(Ldec, Ldec) + att(Ldec, Lenc)
                                      + mm(Ldec, D, dff) + mm(Ldec, dff, D))
                 + mm(pred_len, D, c_out))
        trans = B * (cfg["e_layers"] * n_heads * Lenc * Lenc
                     + cfg["d_layers"] * n_heads * (Ldec * Ldec + Ldec * Lenc))
        bytes_accessed = int((x_enc.size + x_mark_enc.size + x_dec.size + x_mark_dec.size
                              + pe_enc.size + pe_dec.size + slab.size
                              + B * pred_len * c_out) * 4)
        cost = pl.CostEstimate(flops=int(B * per_b), transcendentals=int(trans),
                               bytes_accessed=bytes_accessed)

        return pl.pallas_call(
            kernel,
            out_shape=jax.ShapeDtypeStruct((B, pred_len, c_out), _F32),
            grid=(grid_steps,),
            in_specs=in_specs,
            out_specs=pl.BlockSpec((Bt, pred_len, c_out), lambda g: (g, 0, 0)),
            compiler_params=pltpu.CompilerParams(dimension_semantics=("parallel",)),
            cost_estimate=cost,
        )(x_enc, x_mark_enc, pe_enc, x_dec, x_mark_dec, pe_dec, slab)

    return jax.jit(forward)


# ----------------------------- deterministic parameter init -----------------------------

def init_params(key, cfg):
    keys = iter(jax.random.split(key, 64))
    d, dff = cfg["d_model"], cfg["d_ff"]

    def w(shape, scale=0.02):
        return jax.random.normal(next(keys), shape, _F32) * scale

    def ones_row():
        return jnp.ones((1, d), _F32)

    def zeros_row():
        return jnp.zeros((1, d), _F32)

    def attn():
        # wq | wk | wv concatenated along the output dim -> single (D, 3D) projection
        return {"wqkv": w((d, 3 * d)), "bqkv": w((1, 3 * d)),
                "wo": w((d, d)), "bo": w((1, d))}

    def emb(c_in):
        return {"token_w": w((cfg["kernel_size"] * c_in, d)),   # circular conv1d, no bias
                "temporal_w": w((cfg["mark_dim"], d))}          # TimeFeatureEmbedding, no bias

    def ffn():
        return {"conv1_w": w((d, dff)), "conv1_b": w((1, dff)),
                "conv2_w": w((dff, d)), "conv2_b": w((1, d))}

    def enc_layer():
        lp = {"attn": attn(),
              "norm1_g": ones_row(), "norm1_b": zeros_row(),
              "norm2_g": ones_row(), "norm2_b": zeros_row()}
        lp.update(ffn())
        return lp

    def dec_layer():
        lp = {"self_attn": attn(), "cross_attn": attn(),
              "norm1_g": ones_row(), "norm1_b": zeros_row(),
              "norm2_g": ones_row(), "norm2_b": zeros_row(),
              "norm3_g": ones_row(), "norm3_b": zeros_row()}
        lp.update(ffn())
        return lp

    return {"enc_emb": emb(cfg["enc_in"]),
            "dec_emb": emb(cfg["dec_in"]),
            "enc_layers": [enc_layer() for _ in range(cfg["e_layers"])],
            "dec_layers": [dec_layer() for _ in range(cfg["d_layers"])],
            "enc_norm_g": ones_row(), "enc_norm_b": zeros_row(),
            "dec_norm_g": ones_row(), "dec_norm_b": zeros_row(),
            "proj_w": w((d, cfg["c_out"])), "proj_b": w((1, cfg["c_out"]))}


# ----------------------------- driver -----------------------------

if __name__ == "__main__":
    cfg = dict(enc_in=4, dec_in=4, c_out=4, d_model=32, n_heads=4, d_ff=64,
               e_layers=2, d_layers=1, seq_len=16, label_len=8, pred_len=8,
               kernel_size=3, mark_dim=4, activation="relu")

    key = jax.random.PRNGKey(0)
    kp, k1, k2, k3, k4 = jax.random.split(key, 5)
    params = init_params(kp, cfg)
    forward = make_transformer_forward(params, cfg)

    B = 2
    dec_len = cfg["label_len"] + cfg["pred_len"]
    x_enc = jax.random.normal(k1, (B, cfg["seq_len"], cfg["enc_in"]), _F32)
    x_mark_enc = jax.random.normal(k2, (B, cfg["seq_len"], cfg["mark_dim"]), _F32)
    x_dec = jax.random.normal(k3, (B, dec_len, cfg["dec_in"]), _F32)
    x_mark_dec = jax.random.normal(k4, (B, dec_len, cfg["mark_dim"]), _F32)

    out = forward(x_enc, x_mark_enc, x_dec, x_mark_dec)
    out = jax.block_until_ready(out)
    assert out.shape == (B, cfg["pred_len"], cfg["c_out"]), out.shape
    assert bool(jnp.all(jnp.isfinite(out)))
    print("KERNEL_OK")
</pallas_src>

<mosaic_0001>
module attributes {stable_mosaic.version = 11 : i64} {
  func.func @kernel(%arg0: i32, %arg1: memref<1x16x4xf32, #tpu.memory_space<vmem>>, %arg2: memref<1x16x4xf32, #tpu.memory_space<vmem>>, %arg3: memref<16x32xf32, #tpu.memory_space<vmem>>, %arg4: memref<1x16x4xf32, #tpu.memory_space<vmem>>, %arg5: memref<1x16x4xf32, #tpu.memory_space<vmem>>, %arg6: memref<16x32xf32, #tpu.memory_space<vmem>>, %arg7: memref<888x128xf32, #tpu.memory_space<vmem>>, %arg8: memref<1x8x4xf32, #tpu.memory_space<vmem>>) attributes {dimension_semantics = [#tpu.dimension_semantics<parallel>], iteration_bounds = array<i64: 2>, scalar_prefetch = 0 : i64, scratch_operands = 0 : i64, tpu.core_type = #tpu.core_type<tc>, window_params = [{transform_indices = @transform_0, window_bounds = array<i64: 1, 16, 4>}, {transform_indices = @transform_1, window_bounds = array<i64: 1, 16, 4>}, {pipeline_mode = #tpu.pipeline_mode<synchronous>, transform_indices = @transform_2, window_bounds = array<i64: 16, 32>}, {transform_indices = @transform_3, window_bounds = array<i64: 1, 16, 4>}, {transform_indices = @transform_4, window_bounds = array<i64: 1, 16, 4>}, {pipeline_mode = #tpu.pipeline_mode<synchronous>, transform_indices = @transform_5, window_bounds = array<i64: 16, 32>}, {pipeline_mode = #tpu.pipeline_mode<synchronous>, transform_indices = @transform_6, window_bounds = array<i64: 888, 128>}, {transform_indices = @transform_7, window_bounds = array<i64: 1, 8, 4>}]} {
    %c0 = arith.constant 0 : index
    %c0_0 = arith.constant 0 : index
    %0 = vector.load %arg7[%c0, %c0_0] : memref<888x128xf32, #tpu.memory_space<vmem>>, vector<4x32xf32>
    %c8 = arith.constant 8 : index
    %c0_1 = arith.constant 0 : index
    %1 = vector.load %arg7[%c8, %c0_1] : memref<888x128xf32, #tpu.memory_space<vmem>>, vector<12x32xf32>
    %c24 = arith.constant 24 : index
    %c0_2 = arith.constant 0 : index
    %2 = vector.load %arg7[%c24, %c0_2] : memref<888x128xf32, #tpu.memory_space<vmem>>, vector<1x64xf32>
    %c32 = arith.constant 32 : index
    %c0_3 = arith.constant 0 : index
    %3 = vector.load %arg7[%c32, %c0_3] : memref<888x128xf32, #tpu.memory_space<vmem>>, vector<32x64xf32>
    %c64 = arith.constant 64 : index
    %c0_4 = arith.constant 0 : index
    %4 = vector.load %arg7[%c64, %c0_4] : memref<888x128xf32, #tpu.memory_space<vmem>>, vector<1x32xf32>
    %c72 = arith.constant 72 : index
    %c0_5 = arith.constant 0 : index
    %5 = vector.load %arg7[%c72, %c0_5] : memref<888x128xf32, #tpu.memory_space<vmem>>, vector<64x32xf32>
    %c136 = arith.constant 136 : index
    %c0_6 = arith.constant 0 : index
    %6 = vector.load %arg7[%c136, %c0_6] : memref<888x128xf32, #tpu.memory_space<vmem>>, vector<1x32xf32>
    %c144 = arith.constant 144 : index
    %c0_7 = arith.constant 0 : index
    %7 = vector.load %arg7[%c144, %c0_7] : memref<888x128xf32, #tpu.memory_space<vmem>>, vector<1x96xf32>
    %c152 = arith.constant 152 : index
    %c0_8 = arith.constant 0 : index
    %8 = vector.load %arg7[%c152, %c0_8] : memref<888x128xf32, #tpu.memory_space<vmem>>, vector<32x32xf32>
    %c184 = arith.constant 184 : index
    %c0_9 = arith.constant 0 : index
    %9 = vector.load %arg7[%c184, %c0_9] : memref<888x128xf32, #tpu.memory_space<vmem>>, vector<32x96xf32>
    %c216 = arith.constant 216 : index
    %c0_10 = arith.constant 0 : index
    %10 = vector.load %arg7[%c216, %c0_10] : memref<888x128xf32, #tpu.memory_space<vmem>>, vector<1x32xf32>
    %c224 = arith.constant 224 : index
    %c0_11 = arith.constant 0 : index
    %11 = vector.load %arg7[%c224, %c0_11] : memref<888x128xf32, #tpu.memory_space<vmem>>, vector<1x32xf32>
    %c232 = arith.constant 232 : index
    %c0_12 = arith.constant 0 : index
    %12 = vector.load %arg7[%c232, %c0_12] : memref<888x128xf32, #tpu.memory_space<vmem>>, vector<1x32xf32>
    %c240 = arith.constant 240 : index
    %c0_13 = arith.constant 0 : index
    %13 = vector.load %arg7[%c240, %c0_13] : memref<888x128xf32, #tpu.memory_space<vmem>>, vector<1x32xf32>
    %c248 = arith.constant 248 : index
    %c0_14 = arith.constant 0 : index
    %14 = vector.load %arg7[%c248, %c0_14] : memref<888x128xf32, #tpu.memory_space<vmem>>, vector<1x32xf32>
    %c256 = arith.constant 256 : index
    %c0_15 = arith.constant 0 : index
    %15 = vector.load %arg7[%c256, %c0_15] : memref<888x128xf32, #tpu.memory_space<vmem>>, vector<1x32xf32>
    %c264 = arith.constant 264 : index
    %c0_16 = arith.constant 0 : index
    %16 = vector.load %arg7[%c264, %c0_16] : memref<888x128xf32, #tpu.memory_space<vmem>>, vector<1x32xf32>
    %c272 = arith.constant 272 : index
    %c0_17 = arith.constant 0 : index
    %17 = vector.load %arg7[%c272, %c0_17] : memref<888x128xf32, #tpu.memory_space<vmem>>, vector<1x96xf32>
    %c280 = arith.constant 280 : index
    %c0_18 = arith.constant 0 : index
    %18 = vector.load %arg7[%c280, %c0_18] : memref<888x128xf32, #tpu.memory_space<vmem>>, vector<32x32xf32>
    %c312 = arith.constant 312 : index
    %c0_19 = arith.constant 0 : index
    %19 = vector.load %arg7[%c312, %c0_19] : memref<888x128xf32, #tpu.memory_space<vmem>>, vector<32x96xf32>
    %c344 = arith.constant 344 : index
    %c0_20 = arith.constant 0 : index
    %20 = vector.load %arg7[%c344, %c0_20] : memref<888x128xf32, #tpu.memory_space<vmem>>, vector<1x32xf32>
    %c352 = arith.constant 352 : index
    %c0_21 = arith.constant 0 : index
    %21 = vector.load %arg7[%c352, %c0_21] : memref<888x128xf32, #tpu.memory_space<vmem>>, vector<1x32xf32>
    %c360 = arith.constant 360 : index
    %c0_22 = arith.constant 0 : index
    %22 = vector.load %arg7[%c360, %c0_22] : memref<888x128xf32, #tpu.memory_space<vmem>>, vector<4x32xf32>
    %c368 = arith.constant 368 : index
    %c0_23 = arith.constant 0 : index
    %23 = vector.load %arg7[%c368, %c0_23] : memref<888x128xf32, #tpu.memory_space<vmem>>, vector<12x32xf32>
    %c384 = arith.constant 384 : index
    %c0_24 = arith.constant 0 : index
    %24 = vector.load %arg7[%c384, %c0_24] : memref<888x128xf32, #tpu.memory_space<vmem>>, vector<1x32xf32>
    %c392 = arith.constant 392 : index
    %c0_25 = arith.constant 0 : index
    %25 = vector.load %arg7[%c392, %c0_25] : memref<888x128xf32, #tpu.memory_space<vmem>>, vector<1x96xf32>
    %c400 = arith.constant 400 : index
    %c0_26 = arith.constant 0 : index
    %26 = vector.load %arg7[%c400, %c0_26] : memref<888x128xf32, #tpu.memory_space<vmem>>, vector<32x32xf32>
    %c432 = arith.constant 432 : index
    %c0_27 = arith.constant 0 : index
    %27 = vector.load %arg7[%c432, %c0_27] : memref<888x128xf32, #tpu.memory_space<vmem>>, vector<32x96xf32>
    %c464 = arith.constant 464 : index
    %c0_28 = arith.constant 0 : index
    %28 = vector.load %arg7[%c464, %c0_28] : memref<888x128xf32, #tpu.memory_space<vmem>>, vector<1x64xf32>
    %c472 = arith.constant 472 : index
    %c0_29 = arith.constant 0 : index
    %29 = vector.load %arg7[%c472, %c0_29] : memref<888x128xf32, #tpu.memory_space<vmem>>, vector<32x64xf32>
    %c504 = arith.constant 504 : index
    %c0_30 = arith.constant 0 : index
    %30 = vector.load %arg7[%c504, %c0_30] : memref<888x128xf32, #tpu.memory_space<vmem>>, vector<1x32xf32>
    %c512 = arith.constant 512 : index
    %c0_31 = arith.constant 0 : index
    %31 = vector.load %arg7[%c512, %c0_31] : memref<888x128xf32, #tpu.memory_space<vmem>>, vector<64x32xf32>
    %c576 = arith.constant 576 : index
    %c0_32 = arith.constant 0 : index
    %32 = vector.load %arg7[%c576, %c0_32] : memref<888x128xf32, #tpu.memory_space<vmem>>, vector<1x32xf32>
    %c584 = arith.constant 584 : index
    %c0_33 = arith.constant 0 : index
    %33 = vector.load %arg7[%c584, %c0_33] : memref<888x128xf32, #tpu.memory_space<vmem>>, vector<1x32xf32>
    %c592 = arith.constant 592 : index
    %c0_34 = arith.constant 0 : index
    %34 = vector.load %arg7[%c592, %c0_34] : memref<888x128xf32, #tpu.memory_space<vmem>>, vector<1x32xf32>
    %c600 = arith.constant 600 : index
    %c0_35 = arith.constant 0 : index
    %35 = vector.load %arg7[%c600, %c0_35] : memref<888x128xf32, #tpu.memory_space<vmem>>, vector<1x32xf32>
    %c608 = arith.constant 608 : index
    %c0_36 = arith.constant 0 : index
    %36 = vector.load %arg7[%c608, %c0_36] : memref<888x128xf32, #tpu.memory_space<vmem>>, vector<1x32xf32>
    %c616 = arith.constant 616 : index
    %c0_37 = arith.constant 0 : index
    %37 = vector.load %arg7[%c616, %c0_37] : memref<888x128xf32, #tpu.memory_space<vmem>>, vector<1x96xf32>
    %c624 = arith.constant 624 : index
    %c0_38 = arith.constant 0 : index
    %38 = vector.load %arg7[%c624, %c0_38] : memref<888x128xf32, #tpu.memory_space<vmem>>, vector<32x32xf32>
    %c656 = arith.constant 656 : index
    %c0_39 = arith.constant 0 : index
    %39 = vector.load %arg7[%c656, %c0_39] : memref<888x128xf32, #tpu.memory_space<vmem>>, vector<32x96xf32>
    %c688 = arith.constant 688 : index
    %c0_40 = arith.constant 0 : index
    %40 = vector.load %arg7[%c688, %c0_40] : memref<888x128xf32, #tpu.memory_space<vmem>>, vector<1x64xf32>
    %c696 = arith.constant 696 : index
    %c0_41 = arith.constant 0 : index
    %41 = vector.load %arg7[%c696, %c0_41] : memref<888x128xf32, #tpu.memory_space<vmem>>, vector<32x64xf32>
    %c728 = arith.constant 728 : index
    %c0_42 = arith.constant 0 : index
    %42 = vector.load %arg7[%c728, %c0_42] : memref<888x128xf32, #tpu.memory_space<vmem>>, vector<1x32xf32>
    %c736 = arith.constant 736 : index
    %c0_43 = arith.constant 0 : index
    %43 = vector.load %arg7[%c736, %c0_43] : memref<888x128xf32, #tpu.memory_space<vmem>>, vector<64x32xf32>
    %c800 = arith.constant 800 : index
    %c0_44 = arith.constant 0 : index
    %44 = vector.load %arg7[%c800, %c0_44] : memref<888x128xf32, #tpu.memory_space<vmem>>, vector<1x32xf32>
    %c808 = arith.constant 808 : index
    %c0_45 = arith.constant 0 : index
    %45 = vector.load %arg7[%c808, %c0_45] : memref<888x128xf32, #tpu.memory_space<vmem>>, vector<1x32xf32>
    %c816 = arith.constant 816 : index
    %c0_46 = arith.constant 0 : index
    %46 = vector.load %arg7[%c816, %c0_46] : memref<888x128xf32, #tpu.memory_space<vmem>>, vector<1x32xf32>
    %c824 = arith.constant 824 : index
    %c0_47 = arith.constant 0 : index
    %47 = vector.load %arg7[%c824, %c0_47] : memref<888x128xf32, #tpu.memory_space<vmem>>, vector<1x32xf32>
    %c832 = arith.constant 832 : index
    %c0_48 = arith.constant 0 : index
    %48 = vector.load %arg7[%c832, %c0_48] : memref<888x128xf32, #tpu.memory_space<vmem>>, vector<1x32xf32>
    %c840 = arith.constant 840 : index
    %c0_49 = arith.constant 0 : index
    %49 = vector.load %arg7[%c840, %c0_49] : memref<888x128xf32, #tpu.memory_space<vmem>>, vector<1x32xf32>
    %c848 = arith.constant 848 : index
    %c0_50 = arith.constant 0 : index
    %50 = vector.load %arg7[%c848, %c0_50] : memref<888x128xf32, #tpu.memory_space<vmem>>, vector<1x4xf32>
    %c856 = arith.constant 856 : index
    %c0_51 = arith.constant 0 : index
    %51 = vector.load %arg7[%c856, %c0_51] : memref<888x128xf32, #tpu.memory_space<vmem>>, vector<32x4xf32>
    %c0_52 = arith.constant 0 : index
    %c0_53 = arith.constant 0 : index
    %52 = vector.load %arg3[%c0_52, %c0_53] : memref<16x32xf32, #tpu.memory_space<vmem>>, vector<16x32xf32>
    %c0_54 = arith.constant 0 : index
    %c0_55 = arith.constant 0 : index
    %c0_56 = arith.constant 0 : index
    %53 = vector.load %arg1[%c0_54, %c0_55, %c0_56] : memref<1x16x4xf32, #tpu.memory_space<vmem>>, vector<1x16x4xf32>
    %54 = vector.shape_cast %53 : vector<1x16x4xf32> to vector<16x4xf32>
    %c1_i32 = arith.constant 1 : i32
    %55 = tpu.dynamic_rotate %54 by %c1_i32 dim 0 : vector<16x4xf32>, i32 -> vector<16x4xf32>
    %c15_i32 = arith.constant 15 : i32
    %56 = tpu.dynamic_rotate %54 by %c15_i32 dim 0 : vector<16x4xf32>, i32 -> vector<16x4xf32>
    %57 = tpu.concatenate %55, %54, %56 in 1 : vector<16x4xf32>, vector<16x4xf32>, vector<16x4xf32> -> vector<16x12xf32>
    %cst = arith.constant dense<0.000000e+00> : vector<16x32xf32>
    %58 = tpu.matmul %57, %23, %cst {dimension_numbers = #tpu.dot_dimension_numbers<[1], [0], [0], [1], [0, 0, 1, 1], [], []>} : vector<16x12xf32>, vector<12x32xf32>, vector<16x32xf32> -> vector<16x32xf32>
    %c0_57 = arith.constant 0 : index
    %c0_58 = arith.constant 0 : index
    %c0_59 = arith.constant 0 : index
    %59 = vector.load %arg2[%c0_57, %c0_58, %c0_59] : memref<1x16x4xf32, #tpu.memory_space<vmem>>, vector<1x16x4xf32>
    %60 = vector.shape_cast %59 : vector<1x16x4xf32> to vector<16x4xf32>
    %cst_60 = arith.constant dense<0.000000e+00> : vector<16x32xf32>
    %61 = tpu.matmul %60, %22, %cst_60 {dimension_numbers = #tpu.dot_dimension_numbers<[1], [0], [0], [1], [0, 0, 1, 1], [], []>} : vector<16x4xf32>, vector<4x32xf32>, vector<16x32xf32> -> vector<16x32xf32>
    %62 = arith.addf %58, %61 : vector<16x32xf32>
    %63 = arith.addf %62, %52 : vector<16x32xf32>
    %cst_61 = arith.constant dense<0.000000e+00> : vector<16x96xf32>
    %64 = tpu.matmul %63, %27, %cst_61 {dimension_numbers = #tpu.dot_dimension_numbers<[1], [0], [0], [1], [0, 0, 1, 1], [], []>} : vector<16x32xf32>, vector<32x96xf32>, vector<16x96xf32> -> vector<16x96xf32>
    %65 = vector.broadcast %25 : vector<1x96xf32> to vector<16x96xf32>
    %66 = arith.addf %64, %65 : vector<16x96xf32>
    %67 = vector.extract_strided_slice %66 {offsets = [0, 0], sizes = [16, 32], strides = [1, 1]} : vector<16x96xf32> to vector<16x32xf32>
    %68 = vector.extract_strided_slice %66 {offsets = [0, 32], sizes = [16, 32], strides = [1, 1]} : vector<16x96xf32> to vector<16x32xf32>
    %69 = vector.extract_strided_slice %66 {offsets = [0, 64], sizes = [16, 32], strides = [1, 1]} : vector<16x96xf32> to vector<16x32xf32>
    %70 = vector.extract_strided_slice %67 {offsets = [0, 0], sizes = [16, 8], strides = [1, 1]} : vector<16x32xf32> to vector<16x8xf32>
    %71 = vector.extract_strided_slice %68 {offsets = [0, 0], sizes = [16, 8], strides = [1, 1]} : vector<16x32xf32> to vector<16x8xf32>
    %cst_62 = arith.constant dense<0.000000e+00> : vector<16x16xf32>
    %72 = tpu.matmul %70, %71, %cst_62 {dimension_numbers = #tpu.dot_dimension_numbers<[1], [1], [0], [0], [0, 0, 1, 0], [], []>} : vector<16x8xf32>, vector<16x8xf32>, vector<16x16xf32> -> vector<16x16xf32>
    %73 = vector.extract_strided_slice %67 {offsets = [0, 8], sizes = [16, 8], strides = [1, 1]} : vector<16x32xf32> to vector<16x8xf32>
    %74 = vector.extract_strided_slice %68 {offsets = [0, 8], sizes = [16, 8], strides = [1, 1]} : vector<16x32xf32> to vector<16x8xf32>
    %cst_63 = arith.constant dense<0.000000e+00> : vector<16x16xf32>
    %75 = tpu.matmul %73, %74, %cst_63 {dimension_numbers = #tpu.dot_dimension_numbers<[1], [1], [0], [0], [0, 0, 1, 0], [], []>} : vector<16x8xf32>, vector<16x8xf32>, vector<16x16xf32> -> vector<16x16xf32>
    %76 = vector.extract_strided_slice %67 {offsets = [0, 16], sizes = [16, 8], strides = [1, 1]} : vector<16x32xf32> to vector<16x8xf32>
    %77 = vector.extract_strided_slice %68 {offsets = [0, 16], sizes = [16, 8], strides = [1, 1]} : vector<16x32xf32> to vector<16x8xf32>
    %cst_64 = arith.constant dense<0.000000e+00> : vector<16x16xf32>
    %78 = tpu.matmul %76, %77, %cst_64 {dimension_numbers = #tpu.dot_dimension_numbers<[1], [1], [0], [0], [0, 0, 1, 0], [], []>} : vector<16x8xf32>, vector<16x8xf32>, vector<16x16xf32> -> vector<16x16xf32>
    %79 = vector.extract_strided_slice %67 {offsets = [0, 24], sizes = [16, 8], strides = [1, 1]} : vector<16x32xf32> to vector<16x8xf32>
    %80 = vector.extract_strided_slice %68 {offsets = [0, 24], sizes = [16, 8], strides = [1, 1]} : vector<16x32xf32> to vector<16x8xf32>
    %cst_65 = arith.constant dense<0.000000e+00> : vector<16x16xf32>
    %81 = tpu.matmul %79, %80, %cst_65 {dimension_numbers = #tpu.dot_dimension_numbers<[1], [1], [0], [0], [0, 0, 1, 0], [], []>} : vector<16x8xf32>, vector<16x8xf32>, vector<16x16xf32> -> vector<16x16xf32>
    %82 = tpu.concatenate %72, %75, %78, %81 in 0 : vector<16x16xf32>, vector<16x16xf32>, vector<16x16xf32>, vector<16x16xf32> -> vector<64x16xf32>
    %cst_66 = arith.constant 0.353553385 : f32
    %83 = vector.broadcast %cst_66 : f32 to vector<64x16xf32>
    %84 = arith.mulf %82, %83 : vector<64x16xf32>
    %cst_67 = arith.constant dense<0xFF800000> : vector<64xf32>
    %85 = vector.multi_reduction <maximumf>, %84, %cst_67 [1] : vector<64x16xf32> to vector<64xf32>
    %86 = vector.shape_cast %85 : vector<64xf32> to vector<64x1xf32>
    %87 = vector.broadcast %86 : vector<64x1xf32> to vector<64x16xf32>
    %88 = arith.subf %84, %87 : vector<64x16xf32>
    %89 = math.exp %88 : vector<64x16xf32>
    %cst_68 = arith.constant dense<0.000000e+00> : vector<64xf32>
    %90 = vector.multi_reduction <add>, %89, %cst_68 [1] : vector<64x16xf32> to vector<64xf32>
    %91 = vector.shape_cast %90 : vector<64xf32> to vector<64x1xf32>
    %92 = tpu.reciprocal %91 {approx = true} : vector<64x1xf32> -> vector<64x1xf32>
    %93 = vector.broadcast %92 : vector<64x1xf32> to vector<64x16xf32>
    %94 = arith.mulf %89, %93 : vector<64x16xf32>
    %cst_69 = arith.constant 0.000000e+00 : f32
    %95 = vector.broadcast %cst_69 : f32 to vector<16x32xf32>
    %96 = vector.extract_strided_slice %94 {offsets = [0, 0], sizes = [16, 16], strides = [1, 1]} : vector<64x16xf32> to vector<16x16xf32>
    %97 = vector.extract_strided_slice %69 {offsets = [0, 0], sizes = [16, 8], strides = [1, 1]} : vector<16x32xf32> to vector<16x8xf32>
    %cst_70 = arith.constant dense<0.000000e+00> : vector<16x8xf32>
    %98 = tpu.matmul %96, %97, %cst_70 {dimension_numbers = #tpu.dot_dimension_numbers<[1], [0], [0], [1], [0, 0, 1, 1], [], []>} : vector<16x16xf32>, vector<16x8xf32>, vector<16x8xf32> -> vector<16x8xf32>
    %99 = vector.extract_strided_slice %26 {offsets = [0, 0], sizes = [8, 32], strides = [1, 1]} : vector<32x32xf32> to vector<8x32xf32>
    %cst_71 = arith.constant dense<0.000000e+00> : vector<16x32xf32>
    %100 = tpu.matmul %98, %99, %cst_71 {dimension_numbers = #tpu.dot_dimension_numbers<[1], [0], [0], [1], [0, 0, 1, 1], [], []>} : vector<16x8xf32>, vector<8x32xf32>, vector<16x32xf32> -> vector<16x32xf32>
    %101 = arith.addf %95, %100 : vector<16x32xf32>
    %102 = vector.extract_strided_slice %94 {offsets = [16, 0], sizes = [16, 16], strides = [1, 1]} : vector<64x16xf32> to vector<16x16xf32>
    %103 = vector.extract_strided_slice %69 {offsets = [0, 8], sizes = [16, 8], strides = [1, 1]} : vector<16x32xf32> to vector<16x8xf32>
    %cst_72 = arith.constant dense<0.000000e+00> : vector<16x8xf32>
    %104 = tpu.matmul %102, %103, %cst_72 {dimension_numbers = #tpu.dot_dimension_numbers<[1], [0], [0], [1], [0, 0, 1, 1], [], []>} : vector<16x16xf32>, vector<16x8xf32>, vector<16x8xf32> -> vector<16x8xf32>
    %105 = vector.extract_strided_slice %26 {offsets = [8, 0], sizes = [8, 32], strides = [1, 1]} : vector<32x32xf32> to vector<8x32xf32>
    %cst_73 = arith.constant dense<0.000000e+00> : vector<16x32xf32>
    %106 = tpu.matmul %104, %105, %cst_73 {dimension_numbers = #tpu.dot_dimension_numbers<[1], [0], [0], [1], [0, 0, 1, 1], [], []>} : vector<16x8xf32>, vector<8x32xf32>, vector<16x32xf32> -> vector<16x32xf32>
    %107 = arith.addf %101, %106 : vector<16x32xf32>
    %108 = vector.extract_strided_slice %94 {offsets = [32, 0], sizes = [16, 16], strides = [1, 1]} : vector<64x16xf32> to vector<16x16xf32>
    %109 = vector.extract_strided_slice %69 {offsets = [0, 16], sizes = [16, 8], strides = [1, 1]} : vector<16x32xf32> to vector<16x8xf32>
    %cst_74 = arith.constant dense<0.000000e+00> : vector<16x8xf32>
    %110 = tpu.matmul %108, %109, %cst_74 {dimension_numbers = #tpu.dot_dimension_numbers<[1], [0], [0], [1], [0, 0, 1, 1], [], []>} : vector<16x16xf32>, vector<16x8xf32>, vector<16x8xf32> -> vector<16x8xf32>
    %111 = vector.extract_strided_slice %26 {offsets = [16, 0], sizes = [8, 32], strides = [1, 1]} : vector<32x32xf32> to vector<8x32xf32>
    %cst_75 = arith.constant dense<0.000000e+00> : vector<16x32xf32>
    %112 = tpu.matmul %110, %111, %cst_75 {dimension_numbers = #tpu.dot_dimension_numbers<[1], [0], [0], [1], [0, 0, 1, 1], [], []>} : vector<16x8xf32>, vector<8x32xf32>, vector<16x32xf32> -> vector<16x32xf32>
    %113 = arith.addf %107, %112 : vector<16x32xf32>
    %114 = vector.extract_strided_slice %94 {offsets = [48, 0], sizes = [16, 16], strides = [1, 1]} : vector<64x16xf32> to vector<16x16xf32>
    %115 = vector.extract_strided_slice %69 {offsets = [0, 24], sizes = [16, 8], strides = [1, 1]} : vector<16x32xf32> to vector<16x8xf32>
    %cst_76 = arith.constant dense<0.000000e+00> : vector<16x8xf32>
    %116 = tpu.matmul %114, %115, %cst_76 {dimension_numbers = #tpu.dot_dimension_numbers<[1], [0], [0], [1], [0, 0, 1, 1], [], []>} : vector<16x16xf32>, vector<16x8xf32>, vector<16x8xf32> -> vector<16x8xf32>
    %117 = vector.extract_strided_slice %26 {offsets = [24, 0], sizes = [8, 32], strides = [1, 1]} : vector<32x32xf32> to vector<8x32xf32>
    %cst_77 = arith.constant dense<0.000000e+00> : vector<16x32xf32>
    %118 = tpu.matmul %116, %117, %cst_77 {dimension_numbers = #tpu.dot_dimension_numbers<[1], [0], [0], [1], [0, 0, 1, 1], [], []>} : vector<16x8xf32>, vector<8x32xf32>, vector<16x32xf32> -> vector<16x32xf32>
    %119 = arith.addf %113, %118 : vector<16x32xf32>
    %120 = vector.broadcast %24 : vector<1x32xf32> to vector<16x32xf32>
    %121 = arith.addf %119, %120 : vector<16x32xf32>
    %122 = arith.addf %63, %121 : vector<16x32xf32>
    %cst_78 = arith.constant dense<0.000000e+00> : vector<16xf32>
    %123 = vector.multi_reduction <add>, %122, %cst_78 [1] : vector<16x32xf32> to vector<16xf32>
    %124 = vector.shape_cast %123 : vector<16xf32> to vector<16x1xf32>
    %cst_79 = arith.constant 3.200000e+01 : f32
    %125 = vector.broadcast %cst_79 : f32 to vector<16x1xf32>
    %126 = arith.divf %124, %125 : vector<16x1xf32>
    %127 = vector.broadcast %126 : vector<16x1xf32> to vector<16x32xf32>
    %128 = arith.subf %122, %127 : vector<16x32xf32>
    %129 = arith.mulf %128, %128 : vector<16x32xf32>
    %cst_80 = arith.constant dense<0.000000e+00> : vector<16xf32>
    %130 = vector.multi_reduction <add>, %129, %cst_80 [1] : vector<16x32xf32> to vector<16xf32>
    %131 = vector.shape_cast %130 : vector<16xf32> to vector<16x1xf32>
    %cst_81 = arith.constant 3.200000e+01 : f32
    %132 = vector.broadcast %cst_81 : f32 to vector<16x1xf32>
    %133 = arith.divf %131, %132 : vector<16x1xf32>
    %cst_82 = arith.constant 9.99999974E-6 : f32
    %134 = vector.broadcast %cst_82 : f32 to vector<16x1xf32>
    %135 = arith.addf %133, %134 : vector<16x1xf32>
    %136 = math.rsqrt %135 : vector<16x1xf32>
    %137 = vector.broadcast %136 : vector<16x1xf32> to vector<16x32xf32>
    %138 = arith.mulf %128, %137 : vector<16x32xf32>
    %139 = vector.broadcast %33 : vector<1x32xf32> to vector<16x32xf32>
    %140 = arith.mulf %138, %139 : vector<16x32xf32>
    %141 = vector.broadcast %32 : vector<1x32xf32> to vector<16x32xf32>
    %142 = arith.addf %140, %141 : vector<16x32xf32>
    %cst_83 = arith.constant dense<0.000000e+00> : vector<16x64xf32>
    %143 = tpu.matmul %142, %29, %cst_83 {dimension_numbers = #tpu.dot_dimension_numbers<[1], [0], [0], [1], [0, 0, 1, 1], [], []>} : vector<16x32xf32>, vector<32x64xf32>, vector<16x64xf32> -> vector<16x64xf32>
    %144 = vector.broadcast %28 : vector<1x64xf32> to vector<16x64xf32>
    %145 = arith.addf %143, %144 : vector<16x64xf32>
    %cst_84 = arith.constant 0.000000e+00 : f32
    %146 = vector.broadcast %cst_84 : f32 to vector<16x64xf32>
    %147 = arith.maximumf %145, %146 : vector<16x64xf32>
    %cst_85 = arith.constant dense<0.000000e+00> : vector<16x32xf32>
    %148 = tpu.matmul %147, %31, %cst_85 {dimension_numbers = #tpu.dot_dimension_numbers<[1], [0], [0], [1], [0, 0, 1, 1], [], []>} : vector<16x64xf32>, vector<64x32xf32>, vector<16x32xf32> -> vector<16x32xf32>
    %149 = vector.broadcast %30 : vector<1x32xf32> to vector<16x32xf32>
    %150 = arith.addf %148, %149 : vector<16x32xf32>
    %151 = arith.addf %142, %150 : vector<16x32xf32>
    %cst_86 = arith.constant dense<0.000000e+00> : vector<16xf32>
    %152 = vector.multi_reduction <add>, %151, %cst_86 [1] : vector<16x32xf32> to vector<16xf32>
    %153 = vector.shape_cast %152 : vector<16xf32> to vector<16x1xf32>
    %cst_87 = arith.constant 3.200000e+01 : f32
    %154 = vector.broadcast %cst_87 : f32 to vector<16x1xf32>
    %155 = arith.divf %153, %154 : vector<16x1xf32>
    %156 = vector.broadcast %155 : vector<16x1xf32> to vector<16x32xf32>
    %157 = arith.subf %151, %156 : vector<16x32xf32>
    %158 = arith.mulf %157, %157 : vector<16x32xf32>
    %cst_88 = arith.constant dense<0.000000e+00> : vector<16xf32>
    %159 = vector.multi_reduction <add>, %158, %cst_88 [1] : vector<16x32xf32> to vector<16xf32>
    %160 = vector.shape_cast %159 : vector<16xf32> to vector<16x1xf32>
    %cst_89 = arith.constant 3.200000e+01 : f32
    %161 = vector.broadcast %cst_89 : f32 to vector<16x1xf32>
    %162 = arith.divf %160, %161 : vector<16x1xf32>
    %cst_90 = arith.constant 9.99999974E-6 : f32
    %163 = vector.broadcast %cst_90 : f32 to vector<16x1xf32>
    %164 = arith.addf %162, %163 : vector<16x1xf32>
    %165 = math.rsqrt %164 : vector<16x1xf32>
    %166 = vector.broadcast %165 : vector<16x1xf32> to vector<16x32xf32>
    %167 = arith.mulf %157, %166 : vector<16x32xf32>
    %168 = vector.broadcast %35 : vector<1x32xf32> to vector<16x32xf32>
    %169 = arith.mulf %167, %168 : vector<16x32xf32>
    %170 = vector.broadcast %34 : vector<1x32xf32> to vector<16x32xf32>
    %171 = arith.addf %169, %170 : vector<16x32xf32>
    %cst_91 = arith.constant dense<0.000000e+00> : vector<16x96xf32>
    %172 = tpu.matmul %171, %39, %cst_91 {dimension_numbers = #tpu.dot_dimension_numbers<[1], [0], [0], [1], [0, 0, 1, 1], [], []>} : vector<16x32xf32>, vector<32x96xf32>, vector<16x96xf32> -> vector<16x96xf32>
    %173 = vector.broadcast %37 : vector<1x96xf32> to vector<16x96xf32>
    %174 = arith.addf %172, %173 : vector<16x96xf32>
    %175 = vector.extract_strided_slice %174 {offsets = [0, 0], sizes = [16, 32], strides = [1, 1]} : vector<16x96xf32> to vector<16x32xf32>
    %176 = vector.extract_strided_slice %174 {offsets = [0, 32], sizes = [16, 32], strides = [1, 1]} : vector<16x96xf32> to vector<16x32xf32>
    %177 = vector.extract_strided_slice %174 {offsets = [0, 64], sizes = [16, 32], strides = [1, 1]} : vector<16x96xf32> to vector<16x32xf32>
    %178 = vector.extract_strided_slice %175 {offsets = [0, 0], sizes = [16, 8], strides = [1, 1]} : vector<16x32xf32> to vector<16x8xf32>
    %179 = vector.extract_strided_slice %176 {offsets = [0, 0], sizes = [16, 8], strides = [1, 1]} : vector<16x32xf32> to vector<16x8xf32>
    %cst_92 = arith.constant dense<0.000000e+00> : vector<16x16xf32>
    %180 = tpu.matmul %178, %179, %cst_92 {dimension_numbers = #tpu.dot_dimension_numbers<[1], [1], [0], [0], [0, 0, 1, 0], [], []>} : vector<16x8xf32>, vector<16x8xf32>, vector<16x16xf32> -> vector<16x16xf32>
    %181 = vector.extract_strided_slice %175 {offsets = [0, 8], sizes = [16, 8], strides = [1, 1]} : vector<16x32xf32> to vector<16x8xf32>
    %182 = vector.extract_strided_slice %176 {offsets = [0, 8], sizes = [16, 8], strides = [1, 1]} : vector<16x32xf32> to vector<16x8xf32>
    %cst_93 = arith.constant dense<0.000000e+00> : vector<16x16xf32>
    %183 = tpu.matmul %181, %182, %cst_93 {dimension_numbers = #tpu.dot_dimension_numbers<[1], [1], [0], [0], [0, 0, 1, 0], [], []>} : vector<16x8xf32>, vector<16x8xf32>, vector<16x16xf32> -> vector<16x16xf32>
    %184 = vector.extract_strided_slice %175 {offsets = [0, 16], sizes = [16, 8], strides = [1, 1]} : vector<16x32xf32> to vector<16x8xf32>
    %185 = vector.extract_strided_slice %176 {offsets = [0, 16], sizes = [16, 8], strides = [1, 1]} : vector<16x32xf32> to vector<16x8xf32>
    %cst_94 = arith.constant dense<0.000000e+00> : vector<16x16xf32>
    %186 = tpu.matmul %184, %185, %cst_94 {dimension_numbers = #tpu.dot_dimension_numbers<[1], [1], [0], [0], [0, 0, 1, 0], [], []>} : vector<16x8xf32>, vector<16x8xf32>, vector<16x16xf32> -> vector<16x16xf32>
    %187 = vector.extract_strided_slice %175 {offsets = [0, 24], sizes = [16, 8], strides = [1, 1]} : vector<16x32xf32> to vector<16x8xf32>
    %188 = vector.extract_strided_slice %176 {offsets = [0, 24], sizes = [16, 8], strides = [1, 1]} : vector<16x32xf32> to vector<16x8xf32>
    %cst_95 = arith.constant dense<0.000000e+00> : vector<16x16xf32>
    %189 = tpu.matmul %187, %188, %cst_95 {dimension_numbers = #tpu.dot_dimension_numbers<[1], [1], [0], [0], [0, 0, 1, 0], [], []>} : vector<16x8xf32>, vector<16x8xf32>, vector<16x16xf32> -> vector<16x16xf32>
    %190 = tpu.concatenate %180, %183, %186, %189 in 0 : vector<16x16xf32>, vector<16x16xf32>, vector<16x16xf32>, vector<16x16xf32> -> vector<64x16xf32>
    %cst_96 = arith.constant 0.353553385 : f32
    %191 = vector.broadcast %cst_96 : f32 to vector<64x16xf32>
    %192 = arith.mulf %190, %191 : vector<64x16xf32>
    %cst_97 = arith.constant dense<0xFF800000> : vector<64xf32>
    %193 = vector.multi_reduction <maximumf>, %192, %cst_97 [1] : vector<64x16xf32> to vector<64xf32>
    %194 = vector.shape_cast %193 : vector<64xf32> to vector<64x1xf32>
    %195 = vector.broadcast %194 : vector<64x1xf32> to vector<64x16xf32>
    %196 = arith.subf %192, %195 : vector<64x16xf32>
    %197 = math.exp %196 : vector<64x16xf32>
    %cst_98 = arith.constant dense<0.000000e+00> : vector<64xf32>
    %198 = vector.multi_reduction <add>, %197, %cst_98 [1] : vector<64x16xf32> to vector<64xf32>
    %199 = vector.shape_cast %198 : vector<64xf32> to vector<64x1xf32>
    %200 = tpu.reciprocal %199 {approx = true} : vector<64x1xf32> -> vector<64x1xf32>
    %201 = vector.broadcast %200 : vector<64x1xf32> to vector<64x16xf32>
    %202 = arith.mulf %197, %201 : vector<64x16xf32>
    %cst_99 = arith.constant 0.000000e+00 : f32
    %203 = vector.broadcast %cst_99 : f32 to vector<16x32xf32>
    %204 = vector.extract_strided_slice %202 {offsets = [0, 0], sizes = [16, 16], strides = [1, 1]} : vector<64x16xf32> to vector<16x16xf32>
    %205 = vector.extract_strided_slice %177 {offsets = [0, 0], sizes = [16, 8], strides = [1, 1]} : vector<16x32xf32> to vector<16x8xf32>
    %cst_100 = arith.constant dense<0.000000e+00> : vector<16x8xf32>
    %206 = tpu.matmul %204, %205, %cst_100 {dimension_numbers = #tpu.dot_dimension_numbers<[1], [0], [0], [1], [0, 0, 1, 1], [], []>} : vector<16x16xf32>, vector<16x8xf32>, vector<16x8xf32> -> vector<16x8xf32>
    %207 = vector.extract_strided_slice %38 {offsets = [0, 0], sizes = [8, 32], strides = [1, 1]} : vector<32x32xf32> to vector<8x32xf32>
    %cst_101 = arith.constant dense<0.000000e+00> : vector<16x32xf32>
    %208 = tpu.matmul %206, %207, %cst_101 {dimension_numbers = #tpu.dot_dimension_numbers<[1], [0], [0], [1], [0, 0, 1, 1], [], []>} : vector<16x8xf32>, vector<8x32xf32>, vector<16x32xf32> -> vector<16x32xf32>
    %209 = arith.addf %203, %208 : vector<16x32xf32>
    %210 = vector.extract_strided_slice %202 {offsets = [16, 0], sizes = [16, 16], strides = [1, 1]} : vector<64x16xf32> to vector<16x16xf32>
    %211 = vector.extract_strided_slice %177 {offsets = [0, 8], sizes = [16, 8], strides = [1, 1]} : vector<16x32xf32> to vector<16x8xf32>
    %cst_102 = arith.constant dense<0.000000e+00> : vector<16x8xf32>
    %212 = tpu.matmul %210, %211, %cst_102 {dimension_numbers = #tpu.dot_dimension_numbers<[1], [0], [0], [1], [0, 0, 1, 1], [], []>} : vector<16x16xf32>, vector<16x8xf32>, vector<16x8xf32> -> vector<16x8xf32>
    %213 = vector.extract_strided_slice %38 {offsets = [8, 0], sizes = [8, 32], strides = [1, 1]} : vector<32x32xf32> to vector<8x32xf32>
    %cst_103 = arith.constant dense<0.000000e+00> : vector<16x32xf32>
    %214 = tpu.matmul %212, %213, %cst_103 {dimension_numbers = #tpu.dot_dimension_numbers<[1], [0], [0], [1], [0, 0, 1, 1], [], []>} : vector<16x8xf32>, vector<8x32xf32>, vector<16x32xf32> -> vector<16x32xf32>
    %215 = arith.addf %209, %214 : vector<16x32xf32>
    %216 = vector.extract_strided_slice %202 {offsets = [32, 0], sizes = [16, 16], strides = [1, 1]} : vector<64x16xf32> to vector<16x16xf32>
    %217 = vector.extract_strided_slice %177 {offsets = [0, 16], sizes = [16, 8], strides = [1, 1]} : vector<16x32xf32> to vector<16x8xf32>
    %cst_104 = arith.constant dense<0.000000e+00> : vector<16x8xf32>
    %218 = tpu.matmul %216, %217, %cst_104 {dimension_numbers = #tpu.dot_dimension_numbers<[1], [0], [0], [1], [0, 0, 1, 1], [], []>} : vector<16x16xf32>, vector<16x8xf32>, vector<16x8xf32> -> vector<16x8xf32>
    %219 = vector.extract_strided_slice %38 {offsets = [16, 0], sizes = [8, 32], strides = [1, 1]} : vector<32x32xf32> to vector<8x32xf32>
    %cst_105 = arith.constant dense<0.000000e+00> : vector<16x32xf32>
    %220 = tpu.matmul %218, %219, %cst_105 {dimension_numbers = #tpu.dot_dimension_numbers<[1], [0], [0], [1], [0, 0, 1, 1], [], []>} : vector<16x8xf32>, vector<8x32xf32>, vector<16x32xf32> -> vector<16x32xf32>
    %221 = arith.addf %215, %220 : vector<16x32xf32>
    %222 = vector.extract_strided_slice %202 {offsets = [48, 0], sizes = [16, 16], strides = [1, 1]} : vector<64x16xf32> to vector<16x16xf32>
    %223 = vector.extract_strided_slice %177 {offsets = [0, 24], sizes = [16, 8], strides = [1, 1]} : vector<16x32xf32> to vector<16x8xf32>
    %cst_106 = arith.constant dense<0.000000e+00> : vector<16x8xf32>
    %224 = tpu.matmul %222, %223, %cst_106 {dimension_numbers = #tpu.dot_dimension_numbers<[1], [0], [0], [1], [0, 0, 1, 1], [], []>} : vector<16x16xf32>, vector<16x8xf32>, vector<16x8xf32> -> vector<16x8xf32>
    %225 = vector.extract_strided_slice %38 {offsets = [24, 0], sizes = [8, 32], strides = [1, 1]} : vector<32x32xf32> to vector<8x32xf32>
    %cst_107 = arith.constant dense<0.000000e+00> : vector<16x32xf32>
    %226 = tpu.matmul %224, %225, %cst_107 {dimension_numbers = #tpu.dot_dimension_numbers<[1], [0], [0], [1], [0, 0, 1, 1], [], []>} : vector<16x8xf32>, vector<8x32xf32>, vector<16x32xf32> -> vector<16x32xf32>
    %227 = arith.addf %221, %226 : vector<16x32xf32>
    %228 = vector.broadcast %36 : vector<1x32xf32> to vector<16x32xf32>
    %229 = arith.addf %227, %228 : vector<16x32xf32>
    %230 = arith.addf %171, %229 : vector<16x32xf32>
    %cst_108 = arith.constant dense<0.000000e+00> : vector<16xf32>
    %231 = vector.multi_reduction <add>, %230, %cst_108 [1] : vector<16x32xf32> to vector<16xf32>
    %232 = vector.shape_cast %231 : vector<16xf32> to vector<16x1xf32>
    %cst_109 = arith.constant 3.200000e+01 : f32
    %233 = vector.broadcast %cst_109 : f32 to vector<16x1xf32>
    %234 = arith.divf %232, %233 : vector<16x1xf32>
    %235 = vector.broadcast %234 : vector<16x1xf32> to vector<16x32xf32>
    %236 = arith.subf %230, %235 : vector<16x32xf32>
    %237 = arith.mulf %236, %236 : vector<16x32xf32>
    %cst_110 = arith.constant dense<0.000000e+00> : vector<16xf32>
    %238 = vector.multi_reduction <add>, %237, %cst_110 [1] : vector<16x32xf32> to vector<16xf32>
    %239 = vector.shape_cast %238 : vector<16xf32> to vector<16x1xf32>
    %cst_111 = arith.constant 3.200000e+01 : f32
    %240 = vector.broadcast %cst_111 : f32 to vector<16x1xf32>
    %241 = arith.divf %239, %240 : vector<16x1xf32>
    %cst_112 = arith.constant 9.99999974E-6 : f32
    %242 = vector.broadcast %cst_112 : f32 to vector<16x1xf32>
    %243 = arith.addf %241, %242 : vector<16x1xf32>
    %244 = math.rsqrt %243 : vector<16x1xf32>
    %245 = vector.broadcast %244 : vector<16x1xf32> to vector<16x32xf32>
    %246 = arith.mulf %236, %245 : vector<16x32xf32>
    %247 = vector.broadcast %45 : vector<1x32xf32> to vector<16x32xf32>
    %248 = arith.mulf %246, %247 : vector<16x32xf32>
    %249 = vector.broadcast %44 : vector<1x32xf32> to vector<16x32xf32>
    %250 = arith.addf %248, %249 : vector<16x32xf32>
    %cst_113 = arith.constant dense<0.000000e+00> : vector<16x64xf32>
    %251 = tpu.matmul %250, %41, %cst_113 {dimension_numbers = #tpu.dot_dimension_numbers<[1], [0], [0], [1], [0, 0, 1, 1], [], []>} : vector<16x32xf32>, vector<32x64xf32>, vector<16x64xf32> -> vector<16x64xf32>
    %252 = vector.broadcast %40 : vector<1x64xf32> to vector<16x64xf32>
    %253 = arith.addf %251, %252 : vector<16x64xf32>
    %cst_114 = arith.constant 0.000000e+00 : f32
    %254 = vector.broadcast %cst_114 : f32 to vector<16x64xf32>
    %255 = arith.maximumf %253, %254 : vector<16x64xf32>
    %cst_115 = arith.constant dense<0.000000e+00> : vector<16x32xf32>
    %256 = tpu.matmul %255, %43, %cst_115 {dimension_numbers = #tpu.dot_dimension_numbers<[1], [0], [0], [1], [0, 0, 1, 1], [], []>} : vector<16x64xf32>, vector<64x32xf32>, vector<16x32xf32> -> vector<16x32xf32>
    %257 = vector.broadcast %42 : vector<1x32xf32> to vector<16x32xf32>
    %258 = arith.addf %256, %257 : vector<16x32xf32>
    %259 = arith.addf %250, %258 : vector<16x32xf32>
    %cst_116 = arith.constant dense<0.000000e+00> : vector<16xf32>
    %260 = vector.multi_reduction <add>, %259, %cst_116 [1] : vector<16x32xf32> to vector<16xf32>
    %261 = vector.shape_cast %260 : vector<16xf32> to vector<16x1xf32>
    %cst_117 = arith.constant 3.200000e+01 : f32
    %262 = vector.broadcast %cst_117 : f32 to vector<16x1xf32>
    %263 = arith.divf %261, %262 : vector<16x1xf32>
    %264 = vector.broadcast %263 : vector<16x1xf32> to vector<16x32xf32>
    %265 = arith.subf %259, %264 : vector<16x32xf32>
    %266 = arith.mulf %265, %265 : vector<16x32xf32>
    %cst_118 = arith.constant dense<0.000000e+00> : vector<16xf32>
    %267 = vector.multi_reduction <add>, %266, %cst_118 [1] : vector<16x32xf32> to vector<16xf32>
    %268 = vector.shape_cast %267 : vector<16xf32> to vector<16x1xf32>
    %cst_119 = arith.constant 3.200000e+01 : f32
    %269 = vector.broadcast %cst_119 : f32 to vector<16x1xf32>
    %270 = arith.divf %268, %269 : vector<16x1xf32>
    %cst_120 = arith.constant 9.99999974E-6 : f32
    %271 = vector.broadcast %cst_120 : f32 to vector<16x1xf32>
    %272 = arith.addf %270, %271 : vector<16x1xf32>
    %273 = math.rsqrt %272 : vector<16x1xf32>
    %274 = vector.broadcast %273 : vector<16x1xf32> to vector<16x32xf32>
    %275 = arith.mulf %265, %274 : vector<16x32xf32>
    %276 = vector.broadcast %47 : vector<1x32xf32> to vector<16x32xf32>
    %277 = arith.mulf %275, %276 : vector<16x32xf32>
    %278 = vector.broadcast %46 : vector<1x32xf32> to vector<16x32xf32>
    %279 = arith.addf %277, %278 : vector<16x32xf32>
    %cst_121 = arith.constant dense<0.000000e+00> : vector<16xf32>
    %280 = vector.multi_reduction <add>, %279, %cst_121 [1] : vector<16x32xf32> to vector<16xf32>
    %281 = vector.shape_cast %280 : vector<16xf32> to vector<16x1xf32>
    %cst_122 = arith.constant 3.200000e+01 : f32
    %282 = vector.broadcast %cst_122 : f32 to vector<16x1xf32>
    %283 = arith.divf %281, %282 : vector<16x1xf32>
    %284 = vector.broadcast %283 : vector<16x1xf32> to vector<16x32xf32>
    %285 = arith.subf %279, %284 : vector<16x32xf32>
    %286 = arith.mulf %285, %285 : vector<16x32xf32>
    %cst_123 = arith.constant dense<0.000000e+00> : vector<16xf32>
    %287 = vector.multi_reduction <add>, %286, %cst_123 [1] : vector<16x32xf32> to vector<16xf32>
    %288 = vector.shape_cast %287 : vector<16xf32> to vector<16x1xf32>
    %cst_124 = arith.constant 3.200000e+01 : f32
    %289 = vector.broadcast %cst_124 : f32 to vector<16x1xf32>
    %290 = arith.divf %288, %289 : vector<16x1xf32>
    %cst_125 = arith.constant 9.99999974E-6 : f32
    %291 = vector.broadcast %cst_125 : f32 to vector<16x1xf32>
    %292 = arith.addf %290, %291 : vector<16x1xf32>
    %293 = math.rsqrt %292 : vector<16x1xf32>
    %294 = vector.broadcast %293 : vector<16x1xf32> to vector<16x32xf32>
    %295 = arith.mulf %285, %294 : vector<16x32xf32>
    %296 = vector.broadcast %49 : vector<1x32xf32> to vector<16x32xf32>
    %297 = arith.mulf %295, %296 : vector<16x32xf32>
    %298 = vector.broadcast %48 : vector<1x32xf32> to vector<16x32xf32>
    %299 = arith.addf %297, %298 : vector<16x32xf32>
    %c0_126 = arith.constant 0 : index
    %c0_127 = arith.constant 0 : index
    %300 = vector.load %arg6[%c0_126, %c0_127] : memref<16x32xf32, #tpu.memory_space<vmem>>, vector<16x32xf32>
    %c0_128 = arith.constant 0 : index
    %c0_129 = arith.constant 0 : index
    %c0_130 = arith.constant 0 : index
    %301 = vector.load %arg4[%c0_128, %c0_129, %c0_130] : memref<1x16x4xf32, #tpu.memory_space<vmem>>, vector<1x16x4xf32>
    %302 = vector.shape_cast %301 : vector<1x16x4xf32> to vector<16x4xf32>
    %c1_i32_131 = arith.constant 1 : i32
    %303 = tpu.dynamic_rotate %302 by %c1_i32_131 dim 0 : vector<16x4xf32>, i32 -> vector<16x4xf32>
    %c15_i32_132 = arith.constant 15 : i32
    %304 = tpu.dynamic_rotate %302 by %c15_i32_132 dim 0 : vector<16x4xf32>, i32 -> vector<16x4xf32>
    %305 = tpu.concatenate %303, %302, %304 in 1 : vector<16x4xf32>, vector<16x4xf32>, vector<16x4xf32> -> vector<16x12xf32>
    %cst_133 = arith.constant dense<0.000000e+00> : vector<16x32xf32>
    %306 = tpu.matmul %305, %1, %cst_133 {dimension_numbers = #tpu.dot_dimension_numbers<[1], [0], [0], [1], [0, 0, 1, 1], [], []>} : vector<16x12xf32>, vector<12x32xf32>, vector<16x32xf32> -> vector<16x32xf32>
    %c0_134 = arith.constant 0 : index
    %c0_135 = arith.constant 0 : index
    %c0_136 = arith.constant 0 : index
    %307 = vector.load %arg5[%c0_134, %c0_135, %c0_136] : memref<1x16x4xf32, #tpu.memory_space<vmem>>, vector<1x16x4xf32>
    %308 = vector.shape_cast %307 : vector<1x16x4xf32> to vector<16x4xf32>
    %cst_137 = arith.constant dense<0.000000e+00> : vector<16x32xf32>
    %309 = tpu.matmul %308, %0, %cst_137 {dimension_numbers = #tpu.dot_dimension_numbers<[1], [0], [0], [1], [0, 0, 1, 1], [], []>} : vector<16x4xf32>, vector<4x32xf32>, vector<16x32xf32> -> vector<16x32xf32>
    %310 = arith.addf %306, %309 : vector<16x32xf32>
    %311 = arith.addf %310, %300 : vector<16x32xf32>
    %cst_138 = arith.constant dense<0.000000e+00> : vector<16x96xf32>
    %312 = tpu.matmul %311, %19, %cst_138 {dimension_numbers = #tpu.dot_dimension_numbers<[1], [0], [0], [1], [0, 0, 1, 1], [], []>} : vector<16x32xf32>, vector<32x96xf32>, vector<16x96xf32> -> vector<16x96xf32>
    %313 = vector.broadcast %17 : vector<1x96xf32> to vector<16x96xf32>
    %314 = arith.addf %312, %313 : vector<16x96xf32>
    %315 = vector.extract_strided_slice %314 {offsets = [0, 0], sizes = [16, 32], strides = [1, 1]} : vector<16x96xf32> to vector<16x32xf32>
    %316 = vector.extract_strided_slice %314 {offsets = [0, 32], sizes = [16, 32], strides = [1, 1]} : vector<16x96xf32> to vector<16x32xf32>
    %317 = vector.extract_strided_slice %314 {offsets = [0, 64], sizes = [16, 32], strides = [1, 1]} : vector<16x96xf32> to vector<16x32xf32>
    %318 = tpu.iota {dimensions = array<i32: 0>} : vector<64x16xi32>
    %319 = tpu.iota {dimensions = array<i32: 1>} : vector<64x16xi32>
    %c16_i32 = arith.constant 16 : i32
    %c0_i32 = arith.constant 0 : i32
    %320 = arith.cmpi eq, %c16_i32, %c0_i32 : i32
    %c1_i32_139 = arith.constant 1 : i32
    %321 = arith.select %320, %c1_i32_139, %c16_i32 : i32
    %322 = vector.broadcast %321 : i32 to vector<64x16xi32>
    %323 = arith.remsi %318, %322 : vector<64x16xi32>
    %c0_i32_140 = arith.constant 0 : i32
    %324 = vector.broadcast %c0_i32_140 : i32 to vector<64x16xi32>
    %325 = arith.cmpi ne, %323, %324 : vector<64x16xi32>
    %c0_i32_141 = arith.constant 0 : i32
    %326 = vector.broadcast %c0_i32_141 : i32 to vector<64x16xi32>
    %327 = arith.cmpi slt, %323, %326 : vector<64x16xi32>
    %c0_i32_142 = arith.constant 0 : i32
    %328 = arith.cmpi slt, %321, %c0_i32_142 : i32
    %329 = vector.broadcast %328 : i1 to vector<64x16xi1>
    %330 = vector.broadcast %329 : vector<64x16xi1> to vector<64x16xi1>
    %331 = arith.xori %327, %330 : vector<64x16xi1>
    %332 = arith.andi %331, %325 : vector<64x16xi1>
    %333 = vector.broadcast %321 : i32 to vector<64x16xi32>
    %334 = arith.addi %323, %333 : vector<64x16xi32>
    %335 = arith.select %332, %334, %323 : vector<64x16xi1>, vector<64x16xi32>
    %336 = arith.cmpi sgt, %319, %335 : vector<64x16xi32>
    %337 = vector.extract_strided_slice %315 {offsets = [0, 0], sizes = [16, 8], strides = [1, 1]} : vector<16x32xf32> to vector<16x8xf32>
    %338 = vector.extract_strided_slice %316 {offsets = [0, 0], sizes = [16, 8], strides = [1, 1]} : vector<16x32xf32> to vector<16x8xf32>
    %cst_143 = arith.constant dense<0.000000e+00> : vector<16x16xf32>
    %339 = tpu.matmul %337, %338, %cst_143 {dimension_numbers = #tpu.dot_dimension_numbers<[1], [1], [0], [0], [0, 0, 1, 0], [], []>} : vector<16x8xf32>, vector<16x8xf32>, vector<16x16xf32> -> vector<16x16xf32>
    %340 = vector.extract_strided_slice %315 {offsets = [0, 8], sizes = [16, 8], strides = [1, 1]} : vector<16x32xf32> to vector<16x8xf32>
    %341 = vector.extract_strided_slice %316 {offsets = [0, 8], sizes = [16, 8], strides = [1, 1]} : vector<16x32xf32> to vector<16x8xf32>
    %cst_144 = arith.constant dense<0.000000e+00> : vector<16x16xf32>
    %342 = tpu.matmul %340, %341, %cst_144 {dimension_numbers = #tpu.dot_dimension_numbers<[1], [1], [0], [0], [0, 0, 1, 0], [], []>} : vector<16x8xf32>, vector<16x8xf32>, vector<16x16xf32> -> vector<16x16xf32>
    %343 = vector.extract_strided_slice %315 {offsets = [0, 16], sizes = [16, 8], strides = [1, 1]} : vector<16x32xf32> to vector<16x8xf32>
    %344 = vector.extract_strided_slice %316 {offsets = [0, 16], sizes = [16, 8], strides = [1, 1]} : vector<16x32xf32> to vector<16x8xf32>
    %cst_145 = arith.constant dense<0.000000e+00> : vector<16x16xf32>
    %345 = tpu.matmul %343, %344, %cst_145 {dimension_numbers = #tpu.dot_dimension_numbers<[1], [1], [0], [0], [0, 0, 1, 0], [], []>} : vector<16x8xf32>, vector<16x8xf32>, vector<16x16xf32> -> vector<16x16xf32>
    %346 = vector.extract_strided_slice %315 {offsets = [0, 24], sizes = [16, 8], strides = [1, 1]} : vector<16x32xf32> to vector<16x8xf32>
    %347 = vector.extract_strided_slice %316 {offsets = [0, 24], sizes = [16, 8], strides = [1, 1]} : vector<16x32xf32> to vector<16x8xf32>
    %cst_146 = arith.constant dense<0.000000e+00> : vector<16x16xf32>
    %348 = tpu.matmul %346, %347, %cst_146 {dimension_numbers = #tpu.dot_dimension_numbers<[1], [1], [0], [0], [0, 0, 1, 0], [], []>} : vector<16x8xf32>, vector<16x8xf32>, vector<16x16xf32> -> vector<16x16xf32>
    %349 = tpu.concatenate %339, %342, %345, %348 in 0 : vector<16x16xf32>, vector<16x16xf32>, vector<16x16xf32>, vector<16x16xf32> -> vector<64x16xf32>
    %cst_147 = arith.constant 0.353553385 : f32
    %350 = vector.broadcast %cst_147 : f32 to vector<64x16xf32>
    %351 = arith.mulf %349, %350 : vector<64x16xf32>
    %cst_148 = arith.constant -1.000000e+30 : f32
    %352 = vector.broadcast %cst_148 : f32 to vector<64x16xf32>
    %353 = arith.select %336, %352, %351 : vector<64x16xi1>, vector<64x16xf32>
    %cst_149 = arith.constant dense<0xFF800000> : vector<64xf32>
    %354 = vector.multi_reduction <maximumf>, %353, %cst_149 [1] : vector<64x16xf32> to vector<64xf32>
    %355 = vector.shape_cast %354 : vector<64xf32> to vector<64x1xf32>
    %356 = vector.broadcast %355 : vector<64x1xf32> to vector<64x16xf32>
    %357 = arith.subf %353, %356 : vector<64x16xf32>
    %358 = math.exp %357 : vector<64x16xf32>
    %cst_150 = arith.constant dense<0.000000e+00> : vector<64xf32>
    %359 = vector.multi_reduction <add>, %358, %cst_150 [1] : vector<64x16xf32> to vector<64xf32>
    %360 = vector.shape_cast %359 : vector<64xf32> to vector<64x1xf32>
    %361 = tpu.reciprocal %360 {approx = true} : vector<64x1xf32> -> vector<64x1xf32>
    %362 = vector.broadcast %361 : vector<64x1xf32> to vector<64x16xf32>
    %363 = arith.mulf %358, %362 : vector<64x16xf32>
    %cst_151 = arith.constant 0.000000e+00 : f32
    %364 = vector.broadcast %cst_151 : f32 to vector<16x32xf32>
    %365 = vector.extract_strided_slice %363 {offsets = [0, 0], sizes = [16, 16], strides = [1, 1]} : vector<64x16xf32> to vector<16x16xf32>
    %366 = vector.extract_strided_slice %317 {offsets = [0, 0], sizes = [16, 8], strides = [1, 1]} : vector<16x32xf32> to vector<16x8xf32>
    %cst_152 = arith.constant dense<0.000000e+00> : vector<16x8xf32>
    %367 = tpu.matmul %365, %366, %cst_152 {dimension_numbers = #tpu.dot_dimension_numbers<[1], [0], [0], [1], [0, 0, 1, 1], [], []>} : vector<16x16xf32>, vector<16x8xf32>, vector<16x8xf32> -> vector<16x8xf32>
    %368 = vector.extract_strided_slice %18 {offsets = [0, 0], sizes = [8, 32], strides = [1, 1]} : vector<32x32xf32> to vector<8x32xf32>
    %cst_153 = arith.constant dense<0.000000e+00> : vector<16x32xf32>
    %369 = tpu.matmul %367, %368, %cst_153 {dimension_numbers = #tpu.dot_dimension_numbers<[1], [0], [0], [1], [0, 0, 1, 1], [], []>} : vector<16x8xf32>, vector<8x32xf32>, vector<16x32xf32> -> vector<16x32xf32>
    %370 = arith.addf %364, %369 : vector<16x32xf32>
    %371 = vector.extract_strided_slice %363 {offsets = [16, 0], sizes = [16, 16], strides = [1, 1]} : vector<64x16xf32> to vector<16x16xf32>
    %372 = vector.extract_strided_slice %317 {offsets = [0, 8], sizes = [16, 8], strides = [1, 1]} : vector<16x32xf32> to vector<16x8xf32>
    %cst_154 = arith.constant dense<0.000000e+00> : vector<16x8xf32>
    %373 = tpu.matmul %371, %372, %cst_154 {dimension_numbers = #tpu.dot_dimension_numbers<[1], [0], [0], [1], [0, 0, 1, 1], [], []>} : vector<16x16xf32>, vector<16x8xf32>, vector<16x8xf32> -> vector<16x8xf32>
    %374 = vector.extract_strided_slice %18 {offsets = [8, 0], sizes = [8, 32], strides = [1, 1]} : vector<32x32xf32> to vector<8x32xf32>
    %cst_155 = arith.constant dense<0.000000e+00> : vector<16x32xf32>
    %375 = tpu.matmul %373, %374, %cst_155 {dimension_numbers = #tpu.dot_dimension_numbers<[1], [0], [0], [1], [0, 0, 1, 1], [], []>} : vector<16x8xf32>, vector<8x32xf32>, vector<16x32xf32> -> vector<16x32xf32>
    %376 = arith.addf %370, %375 : vector<16x32xf32>
    %377 = vector.extract_strided_slice %363 {offsets = [32, 0], sizes = [16, 16], strides = [1, 1]} : vector<64x16xf32> to vector<16x16xf32>
    %378 = vector.extract_strided_slice %317 {offsets = [0, 16], sizes = [16, 8], strides = [1, 1]} : vector<16x32xf32> to vector<16x8xf32>
    %cst_156 = arith.constant dense<0.000000e+00> : vector<16x8xf32>
    %379 = tpu.matmul %377, %378, %cst_156 {dimension_numbers = #tpu.dot_dimension_numbers<[1], [0], [0], [1], [0, 0, 1, 1], [], []>} : vector<16x16xf32>, vector<16x8xf32>, vector<16x8xf32> -> vector<16x8xf32>
    %380 = vector.extract_strided_slice %18 {offsets = [16, 0], sizes = [8, 32], strides = [1, 1]} : vector<32x32xf32> to vector<8x32xf32>
    %cst_157 = arith.constant dense<0.000000e+00> : vector<16x32xf32>
    %381 = tpu.matmul %379, %380, %cst_157 {dimension_numbers = #tpu.dot_dimension_numbers<[1], [0], [0], [1], [0, 0, 1, 1], [], []>} : vector<16x8xf32>, vector<8x32xf32>, vector<16x32xf32> -> vector<16x32xf32>
    %382 = arith.addf %376, %381 : vector<16x32xf32>
    %383 = vector.extract_strided_slice %363 {offsets = [48, 0], sizes = [16, 16], strides = [1, 1]} : vector<64x16xf32> to vector<16x16xf32>
    %384 = vector.extract_strided_slice %317 {offsets = [0, 24], sizes = [16, 8], strides = [1, 1]} : vector<16x32xf32> to vector<16x8xf32>
    %cst_158 = arith.constant dense<0.000000e+00> : vector<16x8xf32>
    %385 = tpu.matmul %383, %384, %cst_158 {dimension_numbers = #tpu.dot_dimension_numbers<[1], [0], [0], [1], [0, 0, 1, 1], [], []>} : vector<16x16xf32>, vector<16x8xf32>, vector<16x8xf32> -> vector<16x8xf32>
    %386 = vector.extract_strided_slice %18 {offsets = [24, 0], sizes = [8, 32], strides = [1, 1]} : vector<32x32xf32> to vector<8x32xf32>
    %cst_159 = arith.constant dense<0.000000e+00> : vector<16x32xf32>
    %387 = tpu.matmul %385, %386, %cst_159 {dimension_numbers = #tpu.dot_dimension_numbers<[1], [0], [0], [1], [0, 0, 1, 1], [], []>} : vector<16x8xf32>, vector<8x32xf32>, vector<16x32xf32> -> vector<16x32xf32>
    %388 = arith.addf %382, %387 : vector<16x32xf32>
    %389 = vector.broadcast %16 : vector<1x32xf32> to vector<16x32xf32>
    %390 = arith.addf %388, %389 : vector<16x32xf32>
    %391 = arith.addf %311, %390 : vector<16x32xf32>
    %cst_160 = arith.constant dense<0.000000e+00> : vector<16xf32>
    %392 = vector.multi_reduction <add>, %391, %cst_160 [1] : vector<16x32xf32> to vector<16xf32>
    %393 = vector.shape_cast %392 : vector<16xf32> to vector<16x1xf32>
    %cst_161 = arith.constant 3.200000e+01 : f32
    %394 = vector.broadcast %cst_161 : f32 to vector<16x1xf32>
    %395 = arith.divf %393, %394 : vector<16x1xf32>
    %396 = vector.broadcast %395 : vector<16x1xf32> to vector<16x32xf32>
    %397 = arith.subf %391, %396 : vector<16x32xf32>
    %398 = arith.mulf %397, %397 : vector<16x32xf32>
    %cst_162 = arith.constant dense<0.000000e+00> : vector<16xf32>
    %399 = vector.multi_reduction <add>, %398, %cst_162 [1] : vector<16x32xf32> to vector<16xf32>
    %400 = vector.shape_cast %399 : vector<16xf32> to vector<16x1xf32>
    %cst_163 = arith.constant 3.200000e+01 : f32
    %401 = vector.broadcast %cst_163 : f32 to vector<16x1xf32>
    %402 = arith.divf %400, %401 : vector<16x1xf32>
    %cst_164 = arith.constant 9.99999974E-6 : f32
    %403 = vector.broadcast %cst_164 : f32 to vector<16x1xf32>
    %404 = arith.addf %402, %403 : vector<16x1xf32>
    %405 = math.rsqrt %404 : vector<16x1xf32>
    %406 = vector.broadcast %405 : vector<16x1xf32> to vector<16x32xf32>
    %407 = arith.mulf %397, %406 : vector<16x32xf32>
    %408 = vector.broadcast %11 : vector<1x32xf32> to vector<16x32xf32>
    %409 = arith.mulf %407, %408 : vector<16x32xf32>
    %410 = vector.broadcast %10 : vector<1x32xf32> to vector<16x32xf32>
    %411 = arith.addf %409, %410 : vector<16x32xf32>
    %412 = vector.extract_strided_slice %9 {offsets = [0, 0], sizes = [32, 32], strides = [1, 1]} : vector<32x96xf32> to vector<32x32xf32>
    %cst_165 = arith.constant dense<0.000000e+00> : vector<16x32xf32>
    %413 = tpu.matmul %411, %412, %cst_165 {dimension_numbers = #tpu.dot_dimension_numbers<[1], [0], [0], [1], [0, 0, 1, 1], [], []>} : vector<16x32xf32>, vector<32x32xf32>, vector<16x32xf32> -> vector<16x32xf32>
    %414 = vector.extract_strided_slice %7 {offsets = [0, 0], sizes = [1, 32], strides = [1, 1]} : vector<1x96xf32> to vector<1x32xf32>
    %415 = vector.broadcast %414 : vector<1x32xf32> to vector<16x32xf32>
    %416 = arith.addf %413, %415 : vector<16x32xf32>
    %417 = vector.extract_strided_slice %9 {offsets = [0, 32], sizes = [32, 64], strides = [1, 1]} : vector<32x96xf32> to vector<32x64xf32>
    %cst_166 = arith.constant dense<0.000000e+00> : vector<16x64xf32>
    %418 = tpu.matmul %299, %417, %cst_166 {dimension_numbers = #tpu.dot_dimension_numbers<[1], [0], [0], [1], [0, 0, 1, 1], [], []>} : vector<16x32xf32>, vector<32x64xf32>, vector<16x64xf32> -> vector<16x64xf32>
    %419 = vector.extract_strided_slice %7 {offsets = [0, 32], sizes = [1, 64], strides = [1, 1]} : vector<1x96xf32> to vector<1x64xf32>
    %420 = vector.broadcast %419 : vector<1x64xf32> to vector<16x64xf32>
    %421 = arith.addf %418, %420 : vector<16x64xf32>
    %422 = vector.extract_strided_slice %421 {offsets = [0, 0], sizes = [16, 32], strides = [1, 1]} : vector<16x64xf32> to vector<16x32xf32>
    %423 = vector.extract_strided_slice %421 {offsets = [0, 32], sizes = [16, 32], strides = [1, 1]} : vector<16x64xf32> to vector<16x32xf32>
    %424 = vector.extract_strided_slice %416 {offsets = [0, 0], sizes = [16, 8], strides = [1, 1]} : vector<16x32xf32> to vector<16x8xf32>
    %425 = vector.extract_strided_slice %422 {offsets = [0, 0], sizes = [16, 8], strides = [1, 1]} : vector<16x32xf32> to vector<16x8xf32>
    %cst_167 = arith.constant dense<0.000000e+00> : vector<16x16xf32>
    %426 = tpu.matmul %424, %425, %cst_167 {dimension_numbers = #tpu.dot_dimension_numbers<[1], [1], [0], [0], [0, 0, 1, 0], [], []>} : vector<16x8xf32>, vector<16x8xf32>, vector<16x16xf32> -> vector<16x16xf32>
    %427 = vector.extract_strided_slice %416 {offsets = [0, 8], sizes = [16, 8], strides = [1, 1]} : vector<16x32xf32> to vector<16x8xf32>
    %428 = vector.extract_strided_slice %422 {offsets = [0, 8], sizes = [16, 8], strides = [1, 1]} : vector<16x32xf32> to vector<16x8xf32>
    %cst_168 = arith.constant dense<0.000000e+00> : vector<16x16xf32>
    %429 = tpu.matmul %427, %428, %cst_168 {dimension_numbers = #tpu.dot_dimension_numbers<[1], [1], [0], [0], [0, 0, 1, 0], [], []>} : vector<16x8xf32>, vector<16x8xf32>, vector<16x16xf32> -> vector<16x16xf32>
    %430 = vector.extract_strided_slice %416 {offsets = [0, 16], sizes = [16, 8], strides = [1, 1]} : vector<16x32xf32> to vector<16x8xf32>
    %431 = vector.extract_strided_slice %422 {offsets = [0, 16], sizes = [16, 8], strides = [1, 1]} : vector<16x32xf32> to vector<16x8xf32>
    %cst_169 = arith.constant dense<0.000000e+00> : vector<16x16xf32>
    %432 = tpu.matmul %430, %431, %cst_169 {dimension_numbers = #tpu.dot_dimension_numbers<[1], [1], [0], [0], [0, 0, 1, 0], [], []>} : vector<16x8xf32>, vector<16x8xf32>, vector<16x16xf32> -> vector<16x16xf32>
    %433 = vector.extract_strided_slice %416 {offsets = [0, 24], sizes = [16, 8], strides = [1, 1]} : vector<16x32xf32> to vector<16x8xf32>
    %434 = vector.extract_strided_slice %422 {offsets = [0, 24], sizes = [16, 8], strides = [1, 1]} : vector<16x32xf32> to vector<16x8xf32>
    %cst_170 = arith.constant dense<0.000000e+00> : vector<16x16xf32>
    %435 = tpu.matmul %433, %434, %cst_170 {dimension_numbers = #tpu.dot_dimension_numbers<[1], [1], [0], [0], [0, 0, 1, 0], [], []>} : vector<16x8xf32>, vector<16x8xf32>, vector<16x16xf32> -> vector<16x16xf32>
    %436 = tpu.concatenate %426, %429, %432, %435 in 0 : vector<16x16xf32>, vector<16x16xf32>, vector<16x16xf32>, vector<16x16xf32> -> vector<64x16xf32>
    %cst_171 = arith.constant 0.353553385 : f32
    %437 = vector.broadcast %cst_171 : f32 to vector<64x16xf32>
    %438 = arith.mulf %436, %437 : vector<64x16xf32>
    %cst_172 = arith.constant dense<0xFF800000> : vector<64xf32>
    %439 = vector.multi_reduction <maximumf>, %438, %cst_172 [1] : vector<64x16xf32> to vector<64xf32>
    %440 = vector.shape_cast %439 : vector<64xf32> to vector<64x1xf32>
    %441 = vector.broadcast %440 : vector<64x1xf32> to vector<64x16xf32>
    %442 = arith.subf %438, %441 : vector<64x16xf32>
    %443 = math.exp %442 : vector<64x16xf32>
    %cst_173 = arith.constant dense<0.000000e+00> : vector<64xf32>
    %444 = vector.multi_reduction <add>, %443, %cst_173 [1] : vector<64x16xf32> to vector<64xf32>
    %445 = vector.shape_cast %444 : vector<64xf32> to vector<64x1xf32>
    %446 = tpu.reciprocal %445 {approx = true} : vector<64x1xf32> -> vector<64x1xf32>
    %447 = vector.broadcast %446 : vector<64x1xf32> to vector<64x16xf32>
    %448 = arith.mulf %443, %447 : vector<64x16xf32>
    %cst_174 = arith.constant 0.000000e+00 : f32
    %449 = vector.broadcast %cst_174 : f32 to vector<16x32xf32>
    %450 = vector.extract_strided_slice %448 {offsets = [0, 0], sizes = [16, 16], strides = [1, 1]} : vector<64x16xf32> to vector<16x16xf32>
    %451 = vector.extract_strided_slice %423 {offsets = [0, 0], sizes = [16, 8], strides = [1, 1]} : vector<16x32xf32> to vector<16x8xf32>
    %cst_175 = arith.constant dense<0.000000e+00> : vector<16x8xf32>
    %452 = tpu.matmul %450, %451, %cst_175 {dimension_numbers = #tpu.dot_dimension_numbers<[1], [0], [0], [1], [0, 0, 1, 1], [], []>} : vector<16x16xf32>, vector<16x8xf32>, vector<16x8xf32> -> vector<16x8xf32>
    %453 = vector.extract_strided_slice %8 {offsets = [0, 0], sizes = [8, 32], strides = [1, 1]} : vector<32x32xf32> to vector<8x32xf32>
    %cst_176 = arith.constant dense<0.000000e+00> : vector<16x32xf32>
    %454 = tpu.matmul %452, %453, %cst_176 {dimension_numbers = #tpu.dot_dimension_numbers<[1], [0], [0], [1], [0, 0, 1, 1], [], []>} : vector<16x8xf32>, vector<8x32xf32>, vector<16x32xf32> -> vector<16x32xf32>
    %455 = arith.addf %449, %454 : vector<16x32xf32>
    %456 = vector.extract_strided_slice %448 {offsets = [16, 0], sizes = [16, 16], strides = [1, 1]} : vector<64x16xf32> to vector<16x16xf32>
    %457 = vector.extract_strided_slice %423 {offsets = [0, 8], sizes = [16, 8], strides = [1, 1]} : vector<16x32xf32> to vector<16x8xf32>
    %cst_177 = arith.constant dense<0.000000e+00> : vector<16x8xf32>
    %458 = tpu.matmul %456, %457, %cst_177 {dimension_numbers = #tpu.dot_dimension_numbers<[1], [0], [0], [1], [0, 0, 1, 1], [], []>} : vector<16x16xf32>, vector<16x8xf32>, vector<16x8xf32> -> vector<16x8xf32>
    %459 = vector.extract_strided_slice %8 {offsets = [8, 0], sizes = [8, 32], strides = [1, 1]} : vector<32x32xf32> to vector<8x32xf32>
    %cst_178 = arith.constant dense<0.000000e+00> : vector<16x32xf32>
    %460 = tpu.matmul %458, %459, %cst_178 {dimension_numbers = #tpu.dot_dimension_numbers<[1], [0], [0], [1], [0, 0, 1, 1], [], []>} : vector<16x8xf32>, vector<8x32xf32>, vector<16x32xf32> -> vector<16x32xf32>
    %461 = arith.addf %455, %460 : vector<16x32xf32>
    %462 = vector.extract_strided_slice %448 {offsets = [32, 0], sizes = [16, 16], strides = [1, 1]} : vector<64x16xf32> to vector<16x16xf32>
    %463 = vector.extract_strided_slice %423 {offsets = [0, 16], sizes = [16, 8], strides = [1, 1]} : vector<16x32xf32> to vector<16x8xf32>
    %cst_179 = arith.constant dense<0.000000e+00> : vector<16x8xf32>
    %464 = tpu.matmul %462, %463, %cst_179 {dimension_numbers = #tpu.dot_dimension_numbers<[1], [0], [0], [1], [0, 0, 1, 1], [], []>} : vector<16x16xf32>, vector<16x8xf32>, vector<16x8xf32> -> vector<16x8xf32>
    %465 = vector.extract_strided_slice %8 {offsets = [16, 0], sizes = [8, 32], strides = [1, 1]} : vector<32x32xf32> to vector<8x32xf32>
    %cst_180 = arith.constant dense<0.000000e+00> : vector<16x32xf32>
    %466 = tpu.matmul %464, %465, %cst_180 {dimension_numbers = #tpu.dot_dimension_numbers<[1], [0], [0], [1], [0, 0, 1, 1], [], []>} : vector<16x8xf32>, vector<8x32xf32>, vector<16x32xf32> -> vector<16x32xf32>
    %467 = arith.addf %461, %466 : vector<16x32xf32>
    %468 = vector.extract_strided_slice %448 {offsets = [48, 0], sizes = [16, 16], strides = [1, 1]} : vector<64x16xf32> to vector<16x16xf32>
    %469 = vector.extract_strided_slice %423 {offsets = [0, 24], sizes = [16, 8], strides = [1, 1]} : vector<16x32xf32> to vector<16x8xf32>
    %cst_181 = arith.constant dense<0.000000e+00> : vector<16x8xf32>
    %470 = tpu.matmul %468, %469, %cst_181 {dimension_numbers = #tpu.dot_dimension_numbers<[1], [0], [0], [1], [0, 0, 1, 1], [], []>} : vector<16x16xf32>, vector<16x8xf32>, vector<16x8xf32> -> vector<16x8xf32>
    %471 = vector.extract_strided_slice %8 {offsets = [24, 0], sizes = [8, 32], strides = [1, 1]} : vector<32x32xf32> to vector<8x32xf32>
    %cst_182 = arith.constant dense<0.000000e+00> : vector<16x32xf32>
    %472 = tpu.matmul %470, %471, %cst_182 {dimension_numbers = #tpu.dot_dimension_numbers<[1], [0], [0], [1], [0, 0, 1, 1], [], []>} : vector<16x8xf32>, vector<8x32xf32>, vector<16x32xf32> -> vector<16x32xf32>
    %473 = arith.addf %467, %472 : vector<16x32xf32>
    %474 = vector.broadcast %6 : vector<1x32xf32> to vector<16x32xf32>
    %475 = arith.addf %473, %474 : vector<16x32xf32>
    %476 = arith.addf %411, %475 : vector<16x32xf32>
    %cst_183 = arith.constant dense<0.000000e+00> : vector<16xf32>
    %477 = vector.multi_reduction <add>, %476, %cst_183 [1] : vector<16x32xf32> to vector<16xf32>
    %478 = vector.shape_cast %477 : vector<16xf32> to vector<16x1xf32>
    %cst_184 = arith.constant 3.200000e+01 : f32
    %479 = vector.broadcast %cst_184 : f32 to vector<16x1xf32>
    %480 = arith.divf %478, %479 : vector<16x1xf32>
    %481 = vector.broadcast %480 : vector<16x1xf32> to vector<16x32xf32>
    %482 = arith.subf %476, %481 : vector<16x32xf32>
    %483 = arith.mulf %482, %482 : vector<16x32xf32>
    %cst_185 = arith.constant dense<0.000000e+00> : vector<16xf32>
    %484 = vector.multi_reduction <add>, %483, %cst_185 [1] : vector<16x32xf32> to vector<16xf32>
    %485 = vector.shape_cast %484 : vector<16xf32> to vector<16x1xf32>
    %cst_186 = arith.constant 3.200000e+01 : f32
    %486 = vector.broadcast %cst_186 : f32 to vector<16x1xf32>
    %487 = arith.divf %485, %486 : vector<16x1xf32>
    %cst_187 = arith.constant 9.99999974E-6 : f32
    %488 = vector.broadcast %cst_187 : f32 to vector<16x1xf32>
    %489 = arith.addf %487, %488 : vector<16x1xf32>
    %490 = math.rsqrt %489 : vector<16x1xf32>
    %491 = vector.broadcast %490 : vector<16x1xf32> to vector<16x32xf32>
    %492 = arith.mulf %482, %491 : vector<16x32xf32>
    %493 = vector.broadcast %13 : vector<1x32xf32> to vector<16x32xf32>
    %494 = arith.mulf %492, %493 : vector<16x32xf32>
    %495 = vector.broadcast %12 : vector<1x32xf32> to vector<16x32xf32>
    %496 = arith.addf %494, %495 : vector<16x32xf32>
    %cst_188 = arith.constant dense<0.000000e+00> : vector<16x64xf32>
    %497 = tpu.matmul %496, %3, %cst_188 {dimension_numbers = #tpu.dot_dimension_numbers<[1], [0], [0], [1], [0, 0, 1, 1], [], []>} : vector<16x32xf32>, vector<32x64xf32>, vector<16x64xf32> -> vector<16x64xf32>
    %498 = vector.broadcast %2 : vector<1x64xf32> to vector<16x64xf32>
    %499 = arith.addf %497, %498 : vector<16x64xf32>
    %cst_189 = arith.constant 0.000000e+00 : f32
    %500 = vector.broadcast %cst_189 : f32 to vector<16x64xf32>
    %501 = arith.maximumf %499, %500 : vector<16x64xf32>
    %cst_190 = arith.constant dense<0.000000e+00> : vector<16x32xf32>
    %502 = tpu.matmul %501, %5, %cst_190 {dimension_numbers = #tpu.dot_dimension_numbers<[1], [0], [0], [1], [0, 0, 1, 1], [], []>} : vector<16x64xf32>, vector<64x32xf32>, vector<16x32xf32> -> vector<16x32xf32>
    %503 = vector.broadcast %4 : vector<1x32xf32> to vector<16x32xf32>
    %504 = arith.addf %502, %503 : vector<16x32xf32>
    %505 = arith.addf %496, %504 : vector<16x32xf32>
    %cst_191 = arith.constant dense<0.000000e+00> : vector<16xf32>
    %506 = vector.multi_reduction <add>, %505, %cst_191 [1] : vector<16x32xf32> to vector<16xf32>
    %507 = vector.shape_cast %506 : vector<16xf32> to vector<16x1xf32>
    %cst_192 = arith.constant 3.200000e+01 : f32
    %508 = vector.broadcast %cst_192 : f32 to vector<16x1xf32>
    %509 = arith.divf %507, %508 : vector<16x1xf32>
    %510 = vector.broadcast %509 : vector<16x1xf32> to vector<16x32xf32>
    %511 = arith.subf %505, %510 : vector<16x32xf32>
    %512 = arith.mulf %511, %511 : vector<16x32xf32>
    %cst_193 = arith.constant dense<0.000000e+00> : vector<16xf32>
    %513 = vector.multi_reduction <add>, %512, %cst_193 [1] : vector<16x32xf32> to vector<16xf32>
    %514 = vector.shape_cast %513 : vector<16xf32> to vector<16x1xf32>
    %cst_194 = arith.constant 3.200000e+01 : f32
    %515 = vector.broadcast %cst_194 : f32 to vector<16x1xf32>
    %516 = arith.divf %514, %515 : vector<16x1xf32>
    %cst_195 = arith.constant 9.99999974E-6 : f32
    %517 = vector.broadcast %cst_195 : f32 to vector<16x1xf32>
    %518 = arith.addf %516, %517 : vector<16x1xf32>
    %519 = math.rsqrt %518 : vector<16x1xf32>
    %520 = vector.broadcast %519 : vector<16x1xf32> to vector<16x32xf32>
    %521 = arith.mulf %511, %520 : vector<16x32xf32>
    %522 = vector.broadcast %15 : vector<1x32xf32> to vector<16x32xf32>
    %523 = arith.mulf %521, %522 : vector<16x32xf32>
    %524 = vector.broadcast %14 : vector<1x32xf32> to vector<16x32xf32>
    %525 = arith.addf %523, %524 : vector<16x32xf32>
    %526 = vector.extract_strided_slice %525 {offsets = [8, 0], sizes = [8, 32], strides = [1, 1]} : vector<16x32xf32> to vector<8x32xf32>
    %cst_196 = arith.constant dense<0.000000e+00> : vector<8xf32>
    %527 = vector.multi_reduction <add>, %526, %cst_196 [1] : vector<8x32xf32> to vector<8xf32>
    %528 = vector.shape_cast %527 : vector<8xf32> to vector<8x1xf32>
    %cst_197 = arith.constant 3.200000e+01 : f32
    %529 = vector.broadcast %cst_197 : f32 to vector<8x1xf32>
    %530 = arith.divf %528, %529 : vector<8x1xf32>
    %531 = vector.broadcast %530 : vector<8x1xf32> to vector<8x32xf32>
    %532 = arith.subf %526, %531 : vector<8x32xf32>
    %533 = arith.mulf %532, %532 : vector<8x32xf32>
    %cst_198 = arith.constant dense<0.000000e+00> : vector<8xf32>
    %534 = vector.multi_reduction <add>, %533, %cst_198 [1] : vector<8x32xf32> to vector<8xf32>
    %535 = vector.shape_cast %534 : vector<8xf32> to vector<8x1xf32>
    %cst_199 = arith.constant 3.200000e+01 : f32
    %536 = vector.broadcast %cst_199 : f32 to vector<8x1xf32>
    %537 = arith.divf %535, %536 : vector<8x1xf32>
    %cst_200 = arith.constant 9.99999974E-6 : f32
    %538 = vector.broadcast %cst_200 : f32 to vector<8x1xf32>
    %539 = arith.addf %537, %538 : vector<8x1xf32>
    %540 = math.rsqrt %539 : vector<8x1xf32>
    %541 = vector.broadcast %540 : vector<8x1xf32> to vector<8x32xf32>
    %542 = arith.mulf %532, %541 : vector<8x32xf32>
    %543 = vector.broadcast %21 : vector<1x32xf32> to vector<8x32xf32>
    %544 = arith.mulf %542, %543 : vector<8x32xf32>
    %545 = vector.broadcast %20 : vector<1x32xf32> to vector<8x32xf32>
    %546 = arith.addf %544, %545 : vector<8x32xf32>
    %cst_201 = arith.constant dense<0.000000e+00> : vector<8x4xf32>
    %547 = tpu.matmul %546, %51, %cst_201 {dimension_numbers = #tpu.dot_dimension_numbers<[1], [0], [0], [1], [0, 0, 1, 1], [], []>} : vector<8x32xf32>, vector<32x4xf32>, vector<8x4xf32> -> vector<8x4xf32>
    %548 = vector.broadcast %50 : vector<1x4xf32> to vector<8x4xf32>
    %549 = arith.addf %547, %548 : vector<8x4xf32>
    %c0_202 = arith.constant 0 : index
    %c0_203 = arith.constant 0 : index
    %c0_204 = arith.constant 0 : index
    %550 = vector.load %arg8[%c0_202, %c0_203, %c0_204] : memref<1x8x4xf32, #tpu.memory_space<vmem>>, vector<1x8x4xf32>
    %551 = vector.shape_cast %550 : vector<1x8x4xf32> to vector<8x4xf32>
    %552 = vector.shape_cast %549 : vector<8x4xf32> to vector<1x8x4xf32>
    tpu.vector_store %arg8[%c0_202, %c0_203, %c0_204], %552 {strides = array<i32>} : memref<1x8x4xf32, #tpu.memory_space<vmem>>, vector<1x8x4xf32>,
    return
  }
  func.func @transform_0(%arg0: i32) -> (i32, i32, i32) {
    %c0_i32 = arith.constant 0 : i32
    %c0_i32_0 = arith.constant 0 : i32
    %c0_i32_1 = arith.constant 0 : i32
    return %arg0, %c0_i32, %c0_i32_0 : i32, i32, i32
  }
  func.func @transform_1(%arg0: i32) -> (i32, i32, i32) {
    %c0_i32 = arith.constant 0 : i32
    %c0_i32_0 = arith.constant 0 : i32
    %c0_i32_1 = arith.constant 0 : i32
    return %arg0, %c0_i32, %c0_i32_0 : i32, i32, i32
  }
  func.func @transform_2(%arg0: i32) -> (i32, i32) {
    %c0_i32 = arith.constant 0 : i32
    %c0_i32_0 = arith.constant 0 : i32
    %c0_i32_1 = arith.constant 0 : i32
    return %c0_i32, %c0_i32_0 : i32, i32
  }
  func.func @transform_3(%arg0: i32) -> (i32, i32, i32) {
    %c0_i32 = arith.constant 0 : i32
    %c0_i32_0 = arith.constant 0 : i32
    %c0_i32_1 = arith.constant 0 : i32
    return %arg0, %c0_i32, %c0_i32_0 : i32, i32, i32
  }
  func.func @transform_4(%arg0: i32) -> (i32, i32, i32) {
    %c0_i32 = arith.constant 0 : i32
    %c0_i32_0 = arith.constant 0 : i32
    %c0_i32_1 = arith.constant 0 : i32
    return %arg0, %c0_i32, %c0_i32_0 : i32, i32, i32
  }
  func.func @transform_5(%arg0: i32) -> (i32, i32) {
    %c0_i32 = arith.constant 0 : i32
    %c0_i32_0 = arith.constant 0 : i32
    %c0_i32_1 = arith.constant 0 : i32
    return %c0_i32, %c0_i32_0 : i32, i32
  }
  func.func @transform_6(%arg0: i32) -> (i32, i32) {
    %c0_i32 = arith.constant 0 : i32
    %c0_i32_0 = arith.constant 0 : i32
    %c0_i32_1 = arith.constant 0 : i32
    return %c0_i32, %c0_i32_0 : i32, i32
  }
  func.func @transform_7(%arg0: i32) -> (i32, i32, i32) {
    %c0_i32 = arith.constant 0 : i32
    %c0_i32_0 = arith.constant 0 : i32
    %c0_i32_1 = arith.constant 0 : i32
    return %arg0, %c0_i32, %c0_i32_0 : i32, i32, i32
  }
}

</mosaic_0001>

<bundles_post_ra>
// kernel: forward.1
= control target key start
LH: loop header
LB: loop body
LE: loop exit
PB: predicated region body
PF: predicated region fallthrough
CT: control target
= control target key end

     0   :  { %12 = vsyncpa [#allocation3], 0  ;;  %s8778_s24 = smov 0   ;;  %s9449_s0 = inlined_call_operand.vmem [shape: f32[2,16,4], index: 0, kind: input, shape index: {}]   ;;  %s9450_s1 = inlined_call_operand.vmem [shape: f32[2,16,4], index: 1, kind: input, shape index: {}]   ;;  %s9451_s2 = inlined_call_operand.vmem [shape: f32[16,32], index: 2, kind: input, shape index: {}, may-alias: {2,5}]   ;;  %s9452_s3 = inlined_call_operand.vmem [shape: f32[2,16,4], index: 3, kind: input, shape index: {}]   ;;  %s9453_s4 = inlined_call_operand.vmem [shape: f32[2,16,4], index: 4, kind: input, shape index: {}]   ;;  %s9454_s5 = inlined_call_operand.vmem [shape: f32[16,32], index: 5, kind: input, shape index: {}, may-alias: {2,5}]   ;;  %s9455_s6 = inlined_call_operand.hbm [shape: f32[888,128], index: 6, kind: input, shape index: {}]   ;;  %s9456_s7 = inlined_call_operand.vmem [shape: f32[2,8,4], index: 7, kind: output, shape index: {}]  }
   0x1 LB: > { %s8784_s25 = sadd.s32 4294967295, %s8716_s24   ;;  %p7024_p0 = scmp.ge.s32.totalorder %s8716_s24, 1  ;;  %s8716_s24 = sphi %s8778_s24, %s18_s24  }
   0x2   : > { %p216_p1 = scmp.lt.s32.totalorder %s8716_s24, 3  ;;  %s8718_s26 = smov [#allocation2]  }
   0x3   : > { %s234_s27 = sshll.u32 %s8718_s26, 4  ;;  %p9457_p3 = scmp.eq.s32.totalorder %s8784_s25, 0  ;;  %s235_s27 = int_to_ptr.vmem [resolvable:$true] %s234_s27 }
   0x4   : > { %p8788_p2 = pnand %p7024_p0, %p216_p1  ;;  %s8678_s9 = scalar_lea.hbm %s9455_s6, 14208 }
   0x5   : > { %p8679_p6 = scmp.ne.s32.totalorder %s9455_s6, %s8678_s9  ;;  %p8685_p10 = scmp.lt.u32.totalorder %s8678_s9, %s9455_s6 }
   0x6   : > { %s9459_s28 = scalar_select %p8788_p2, 1, 0 }
   0x7   : > { %p8319_p4 = pneg %p8788_p2 }
   0x9   : > { %p8797_p5 = pnand %p9457_p3, %p8319_p4 }
   0xb   : > { %p8680_p7 = pneg %p8797_p5 }
   0xd   : > { %p8681_p8 = pnand %p8680_p7, %p8679_p6 }
   0xf   : > { %p8682_p9 = pneg %p8681_p8 }
  0x11   : > { %p8687_p11 = pnand %p8685_p10, %p8682_p9 }
  0x13   : > { %8690 = shalt.err (!%p8687_p11)
}
  0x14   : > { %s8691_s14 = scalar_lea.vmem %s235_s27, 14208  ;;  %p8699_p1 = scmp.lt.s32.totalorder %s235_s27, %s235_s27 }
  0x15   : > { %p8692_p12 = scmp.ne.s32.totalorder %s235_s27, %s8691_s14  ;;  %p8700_p4 = scmp.lt.s32.totalorder %s8691_s14, %s8691_s14 }
  0x17   : > { %p8694_p13 = pnand %p8692_p12, %p8680_p7  ;;  %p8701_p3 = por %p8700_p4, %p8699_p1 }
  0x19   : > { %p8695_p0 = pneg %p8694_p13 }
  0x1b   : > { %p8702_p2 = pnand %p8701_p3, %p8695_p0 }
  0x1d   : > { %8705 = shalt.err (!%p8702_p2)
}
  0x1e   : > { %s8719_s15 = smov 128   ;;  %s8720_s16 = smov 8  }
  0x1f   : > { %8322 = dma.hbm_to_vmem [thread:$0]  (!%p8797_p5), %s9455_s6, 14208, %s235_s27, [#allocation3], %s8719_s15, %s8719_s15, %s8720_s16  }
  0x20   : > { %p9461_p6 = scmp.ne.s32.totalorder %s9459_s28, 0 }
  0x21   : > { %p9462_p8 = scmp.eq.s32.totalorder (!%p9461_p6), %s8784_s25, 0 }
  0x22   : > { %282 = sbr.rel (%p9461_p6) target bundleno = 9314 (0x2462), region = 48 }
  0x29   : > { %8711 = dma.done.wait (%p9462_p8), [#allocation3], 14208   ;;  %p9463_p7 = pmov %p9462_p8 }
  0x2a   : > { %p328_p2 = scmp.lt.s32.totalorder %s8784_s25, 1  ;;  %v469_v0 = vlaneseq  ;;  %vm509_vm0 = vcmask 1043456   ;;  %v398_v4 = vld [vmem:[#allocation2 + $0x170] sm:$0xff]  ;;  %s8721_s28 = smov 4   ;;  %v399_v9 = vld [vmem:[#allocation2 + $0x178] sm:$0xf] }
  0x2b   : > { %8713 = vsyncadd (%p9463_p7), [#allocation3], 4294953088  ;;  %vm8722_vm3 = vmmov 1   ;;  %v7997_v11 = vpack.c.bf16 %v399_v9, %v398_v4  ;;  %v397_v12 = vld [vmem:[#allocation2 + $0x168] sm:$0xf]  ;;  %s8723_s29 = smov 8  }
  0x2c   : > { %s9469_s25 = smov (!%p328_p2, %s8784_s25), 1  ;;  %v8828_v1 = vshrl.u32 %v469_v0, 7  ;;  %vm8845_vm4 = vmpackc.low %vm509_vm0, %vm8722_vm3  ;;  %7513 = vmatprep.subr.msk.mxu1 %vm509_vm0, %v397_v12  ;;  %vm495_vm5 = vcmask 31744   ;;  %v406_v19 = vld [vmem:[#allocation2 + $0x1b0] sm:$0xff]  ;;  %v407_v20 = vld [vmem:[#allocation2 + $0x1b8] sm:$0xff]  ;;  %vm498_vm6 = vcmask 64512  }
  0x2d   : > { %s8831_s19 = sshll.u32 %s9469_s25, 4  ;;  %7999 = vmatprep.subr.msk.bf16.mxu0 %vm8845_vm4, %v7997_v11  ;;  %7514 = vmatpush3.msk.msra.mxu1 %vm509_vm0, %v397_v12  ;;  %v8003_v21 = vpack.c.bf16 %v407_v20, %v406_v19  ;;  %vm588_vm7 = vcmask 97280   ;;  %v408_v30 = vld [vmem:[#allocation2 + $0x1c0] sm:$0xff]  ;;  %v409_v31 = vld [vmem:[#allocation2 + $0x1c8] sm:$0xff]  ;;  %vm679_vm8 = vcmask 261120   ;;  %s8724_s11 = smov 96   ;;  %vm8907_vm9 = vmpackc.low %vm498_vm6, %vm498_vm6 }
  0x2e   : > { %s332_s22 = scalar_lea.vmem %s9449_s0, %s8831_s19  ;;  %vm476_vm1 = vcmp.lt.s32.totalorder %v8828_v1, 7  ;;  %vm471_vm2 = vcmp.lt.s32.totalorder %v8828_v1, 1  ;;  %s337_s27 = scalar_lea.vmem %s9450_s1, %s8831_s19  ;;  %8002 = vmatpush3.bf16.msk.msra.mxu0 %vm8845_vm4, %v7997_v11  ;;  %v8007_v32 = vpack.c.bf16 %v409_v31, %v408_v30  ;;  %v463_v37 = vld [vmem:[%s9451_s2] sm:$0xff]  ;;  %v464_v39 = vld [vmem:[%s9451_s2 + $0x8] sm:$0xff]  ;;  %vm1131_vm10 = vcmask 130048  }
  0x2f   : > { %v465_v2 = vld [vmem:[%s332_s22] sm:$0xff]  ;;  %v466_v3 = vld [vmem:[%s332_s22 + $0x8] sm:$0xff]  ;;  %8004 = vmatprep.subr.bf16.mxu1 %v8003_v21  ;;  %s8725_s12 = smov 88   ;;  %s8726_s13 = smov 120   ;;  %vm2034_vm11 = vcmask 523264  }
  0x30   : > { %v468_v5 = vrot.slane %v466_v3, 7  ;;  %481 = vrot.lane.b32.xlu0 %v465_v2, %s8721_s28  ;;  %v467_v6 = vrot.slane %v465_v2, 7  ;;  %v474_v7 = vrot.slane %v465_v2, 1  ;;  %v475_v8 = vrot.slane %v466_v3, 1  ;;  %v501_v16 = vld [vmem:[%s337_s27] sm:$0xff]  ;;  %v502_v17 = vld [vmem:[%s337_s27 + $0x8] sm:$0xff]  ;;  %s342_s27 = scalar_lea.vmem %s9452_s3, %s8831_s19  ;;  %s347_s30 = scalar_lea.vmem %s9453_s4, %s8831_s19 }
  0x31   : > { %7515 = vmatprep.mubr.msk.f32.mxu1 %vm495_vm5, %v501_v16  ;;  %v7044_v43 = vld [vmem:[#allocation2 + $0x188] ss:$0 sm:$0xff]  ;;  %s8727_s14 = smov 72   ;;  %s8728_s15 = smov 80  }
  0x32   : > { %v477_v13 = vsel %vm476_vm1, %v474_v7, %v475_v8  ;;  %v473_v14 = vsel %vm471_vm2, %v468_v5, %v467_v6  ;;  %v472_v15 = vsel %vm471_vm2, %v467_v6, %v468_v5  ;;  %v478_v18 = vsel %vm476_vm1, %v475_v8, %v474_v7  ;;  %7516 = vmatmul.mubr.msk.f32.vlgmr.msra.gmra.mrb[0].mxu1 %vm495_vm5, %v502_v17  ;;  %s8729_s16 = smov 112   ;;  %s8730_s17 = smov 104   ;;  %v393_v10 = vld [vmem:[#allocation2 + $0x148] sm:$0xff] }
  0x33   : > { %489 = vrot.lane.b32.xlu1 %v477_v13, %s8723_s29  ;;  %8006 = vmatpush3.bf16.msra.mxu1 %v8003_v21  ;;  %s8731_s18 = smov 56   ;;  %s8732_s20 = smov 48  }
  0x34   : > { %483 = vrot.lane.b32.xlu0 %v466_v3, %s8721_s28  ;;  %8008 = vmatprep.subr.bf16.mxu1 %v8007_v32  ;;  %s8733_s21 = smov 40   ;;  %s8734_s22 = smov 64  }
  0x37   : > { %491 = vrot.lane.b32.xlu1 %v478_v18, %s8723_s29  ;;  %8010 = vmatpush3.bf16.msra.mxu1 %v8007_v32 }
  0xa2   : > { %v482_v22 = vpop.permute.xlu0 %481 }
  0xa3   : > { %v496_v23 = vsel %vm495_vm5, %v473_v14, %v482_v22 }
  0xa5   : > { %v490_v24 = vpop.permute.xlu1 %489 }
  0xa6   : > { %v499_v25 = vsel %vm498_vm6, %v496_v23, %v490_v24  ;;  %v484_v26 = vpop.permute.xlu0 %483 }
  0xa7   : > { %7522 = vmatprep.mubr.msk.f32.mxu0 %vm588_vm7, %v499_v25  ;;  %v497_v27 = vsel %vm495_vm5, %v472_v15, %v484_v26 }
  0xa9   : > { %v492_v28 = vpop.permute.xlu1 %491 }
  0xaa   : > { %v500_v29 = vsel %vm498_vm6, %v497_v27, %v492_v28 }
  0xab   : > { %7523 = vmatmul.mubr.msk.f32.vlgmr.msra.gmra.mrb[0].mxu0 %vm588_vm7, %v500_v29 }
 0x105   : > { %v7517_v33 = vpop.f32.mrb[0].mxu1 }
 0x106   : > { %v579_v34 = vpop.f32.mrb[1].mxu1 }
 0x17e   : > { %v7524_v35 = vpop.f32.mrb[0].mxu0 }
 0x17f   : > { %v670_v36 = vadd.f32 %v7524_v35, %v7517_v33  ;;  %v664_v38 = vpop.f32.mrb[1].mxu0 }
 0x180   : > { %v665_v40 = vadd.f32 %v664_v38, %v579_v34 }
 0x181   : > { %v8882_v42 = vadd.f32 %v670_v36, %v464_v39 }
 0x182   : > { %v8880_v41 = vadd.f32 %v665_v40, %v463_v37 }
 0x184   : > { %7533 = vmatprep.mubr.msk.f32.mxu1 %vm679_vm8, %v8880_v41 }
 0x185   : > { %7534 = vmatmul.mubr.msk.f32.vlgmr.msra.gmra.mrb[2].mxu1 %vm679_vm8, %v8882_v42 }
 0x258   : > { %v7535_v44 = vpop.f32.mrb[2].mxu1 }
 0x259   : > { %v758_v45 = vadd.f32 %v7535_v44, %v7044_v43  ;;  %v752_v46 = vpop.f32.mrb[3].mxu1 }
 0x25a   : > { %v753_v47 = vadd.f32 %v7044_v43, %v752_v46 }
 0x25c   : > { %7540 = vmatprep.mubr.msk.f32.mxu0 %vm498_vm6, %v753_v47  ;;  %v8889_v48 = vpack.i.bf16 %v758_v45, %v753_v47 }
 0x25e   : > { %8359 = vrot.lane.b32.xlu1 %v8889_v48, %s8724_s11  ;;  %8354 = vrot.lane.b32.xlu0 %v8889_v48, %s8725_s12 }
 0x262   : > { %852 = vrot.lane.b32.xlu1 %v758_v45, %s8726_s13  ;;  %850 = vrot.lane.b32.xlu0 %v753_v47, %s8726_s13 }
 0x266   : > { %8369 = vrot.lane.b32.xlu1 %v8889_v48, %s8727_s14  ;;  %8364 = vrot.lane.b32.xlu0 %v8889_v48, %s8728_s15 }
 0x26a   : > { %943 = vrot.lane.b32.xlu1 %v758_v45, %s8729_s16  ;;  %941 = vrot.lane.b32.xlu0 %v753_v47, %s8729_s16 }
 0x26e   : > { %1034 = vrot.lane.b32.xlu1 %v758_v45, %s8730_s17  ;;  %1032 = vrot.lane.b32.xlu0 %v753_v47, %s8730_s17 }
 0x2d0   : > { %v8360_v49 = vpop.permute.xlu1 %8359  ;;  %v8355_v50 = vpop.permute.xlu0 %8354 }
 0x2d1   : > { %v8362_v51 = vunpack.i.h.bf16 %v8360_v49  ;;  %v8361_v52 = vunpack.i.l.bf16 %v8360_v49  ;;  %v8357_v53 = vunpack.i.h.bf16 %v8355_v50  ;;  %v8356_v54 = vunpack.i.l.bf16 %v8355_v50 }
 0x2d3   : > { %v8011_v56 = vpack.c.bf16 %v8362_v51, %v8361_v52  ;;  %v8017_v57 = vpack.c.bf16 %v8357_v53, %v8356_v54 }
 0x2d4   : > { %v853_v58 = vpop.permute.xlu1 %852  ;;  %v851_v59 = vpop.permute.xlu0 %850 }
 0x2d5   : > { %8013 = vmatprep.subr.msk.bf16.mxu0 %vm8907_vm9, %v8011_v56  ;;  %8019 = vmatprep.subr.msk.bf16.mxu1 %vm8907_vm9, %v8017_v57 }
 0x2d6   : > { %7547 = vmatprep.mubr.msk.f32.mxu1 %vm498_vm6, %v851_v59  ;;  %8016 = vmatpush3.bf16.xpose.msk.msra.mxu0 %vm8907_vm9, %v8011_v56 }
 0x2d7   : > { %8022 = vmatpush3.bf16.xpose.msk.msra.mxu1 %vm8907_vm9, %v8017_v57 }
 0x2d8   : > { %v8370_v60 = vpop.permute.xlu1 %8369  ;;  %v8365_v61 = vpop.permute.xlu0 %8364 }
 0x2d9   : > { %v8372_v62 = vunpack.i.h.bf16 %v8370_v60  ;;  %v8371_v63 = vunpack.i.l.bf16 %v8370_v60  ;;  %v8367_v2 = vunpack.i.h.bf16 %v8365_v61  ;;  %v8366_v3 = vunpack.i.l.bf16 %v8365_v61 }
 0x2db   : > { %v8029_v4 = vpack.c.bf16 %v8372_v62, %v8371_v63  ;;  %v8023_v5 = vpack.c.bf16 %v8367_v2, %v8366_v3 }
 0x2dc   : > { %v942_v6 = vpop.permute.xlu0 %941  ;;  %v944_v7 = vpop.permute.xlu1 %943 }
 0x2dd   : > { %7541 = vmatmul.mubr.msk.f32.vlgmr.msra.gmra.mrb[2].mxu0 %vm498_vm6, %v758_v45  ;;  %8025 = vmatprep.subr.msk.bf16.mxu0 %vm8907_vm9, %v8023_v5 }
 0x2de   : > { %7548 = vmatmul.mubr.msk.f32.vlgmr.msra.gmra.mrb[4].mxu1 %vm498_vm6, %v853_v58  ;;  %8031 = vmatprep.subr.msk.bf16.mxu1 %vm8907_vm9, %v8029_v4 }
 0x2df   : > { %8028 = vmatpush3.bf16.xpose.msk.msra.mxu0 %vm8907_vm9, %v8023_v5  ;;  %7554 = vmatprep.mubr.msk.f32.mxu0 %vm498_vm6, %v942_v6 }
 0x2e0   : > { %8034 = vmatpush3.bf16.xpose.msk.msra.mxu1 %vm8907_vm9, %v8029_v4  ;;  %v1033_v8 = vpop.permute.xlu0 %1032  ;;  %v1035_v9 = vpop.permute.xlu1 %1034 }
 0x2e1   : > { %7561 = vmatprep.mubr.msk.f32.mxu1 %vm498_vm6, %v1033_v8 }
 0x2e6   : > { %7555 = vmatmul.mubr.msk.f32.vlgmr.msra.gmra.mrb[4].mxu0 %vm498_vm6, %v944_v7 }
 0x2e7   : > { %7562 = vmatmul.mubr.msk.f32.vlgmr.msra.gmra.mrb[6].mxu1 %vm498_vm6, %v1035_v9 }
 0x3b0   : > { %v7542_v11 = vpop.f32.mrb[2].mxu0 }
 0x3b1   : > { %v7549_v12 = vpop.f32.mrb[4].mxu1  ;;  %v841_v13 = vpop.f32.mrb[3].mxu0  ;;  %v1124_v20 = vmul.f32 0.35355338, %v7542_v11 }
 0x3b2   : > { %v1126_v14 = vmul.f32 0.35355338, %v7549_v12  ;;  %v932_v15 = vpop.f32.mrb[5].mxu1  ;;  %v1123_v18 = vmul.f32 0.35355338, %v841_v13 }
 0x3b3   : > { %v1125_v16 = vmul.f32 0.35355338, %v932_v15  ;;  %v1135_v29 = vsel %vm1131_vm10, %v1124_v20, -inf }
 0x3b4   : > { %v1141_v17 = vsel %vm1131_vm10, %v1126_v14, -inf  ;;  %v1132_v22 = vsel %vm1131_vm10, %v1123_v18, -inf }
 0x3b5   : > { %1142 = vmax.xlane.f32.xlu1 %v1141_v17  ;;  %v1138_v19 = vsel %vm1131_vm10, %v1125_v16, -inf }
 0x3b6   : > { %1139 = vmax.xlane.f32.xlu0 %v1138_v19 }
 0x3b9   : > { %v7556_v21 = vpop.f32.mrb[4].mxu0 }
 0x3ba   : > { %v7563_v23 = vpop.f32.mrb[6].mxu1  ;;  %1133 = vmax.xlane.f32.xlu0 %v1132_v22  ;;  %v1023_v24 = vpop.f32.mrb[5].mxu0  ;;  %v1128_v27 = vmul.f32 0.35355338, %v7556_v21 }
 0x3bb   : > { %v1114_v25 = vpop.f32.mrb[7].mxu1  ;;  %v1127_v26 = vmul.f32 0.35355338, %v1023_v24  ;;  %v1130_v31 = vmul.f32 0.35355338, %v7563_v23 }
 0x3bc   : > { %v1129_v28 = vmul.f32 0.35355338, %v1114_v25  ;;  %v1147_v32 = vsel %vm1131_vm10, %v1128_v27, -inf }
 0x3bd   : > { %v1144_v30 = vsel %vm1131_vm10, %v1127_v26, -inf  ;;  %v1153_v34 = vsel %vm1131_vm10, %v1130_v31, -inf }
 0x3be   : > { %1136 = vmax.xlane.f32.xlu0 %v1135_v29  ;;  %1145 = vmax.xlane.f32.xlu1 %v1144_v30  ;;  %v1150_v33 = vsel %vm1131_vm10, %v1129_v28, -inf }
 0x3c2   : > { %1148 = vmax.xlane.f32.xlu0 %v1147_v32  ;;  %1151 = vmax.xlane.f32.xlu1 %v1150_v33 }
 0x3c6   : > { %1154 = vmax.xlane.f32.xlu0 %v1153_v34 }
 0x3d3   : > { %8374 = vrot.lane.b32.xlu1 %v8889_v48, %s8731_s18 }
 0x442   : > { %v1143_v35 = vpop.xlane.xlu1 %1142 }
 0x443   : > { %v1159_v36 = vsub.f32 %v1126_v14, %v1143_v35  ;;  %v1140_v37 = vpop.xlane.xlu0 %1139 }
 0x444   : > { %v1158_v38 = vsub.f32 %v1125_v16, %v1140_v37 }
 0x445   : > { %v1170_v39 = vmul.f32 1.442695, %v1159_v36 }
 0x446   : > { %v1168_v40 = vmul.f32 1.442695, %v1158_v38 }
 0x447   : > { %8518 = vpow2.f32 %v1170_v39  ;;  %v1134_v43 = vpop.xlane.xlu0 %1133 }
 0x448   : > { %8520 = vpow2.f32 %v1168_v40  ;;  %v1156_v44 = vsub.f32 %v1123_v18, %v1134_v43 }
 0x44a   : > { %v1164_v45 = vmul.f32 1.442695, %v1156_v44 }
 0x44b   : > { %v1137_v46 = vpop.xlane.xlu0 %1136  ;;  %v1146_v47 = vpop.xlane.xlu1 %1145 }
 0x44c   : > { %8522 = vpow2.f32 %v1164_v45  ;;  %v1157_v49 = vsub.f32 %v1124_v20, %v1137_v46  ;;  %v1160_v50 = vsub.f32 %v1127_v26, %v1146_v47 }
 0x44e   : > { %v1166_v51 = vmul.f32 1.442695, %v1157_v49  ;;  %v1172_v52 = vmul.f32 1.442695, %v1160_v50 }
 0x44f   : > { %v1149_v53 = vpop.xlane.xlu0 %1148  ;;  %v1152_v54 = vpop.xlane.xlu1 %1151 }
 0x450   : > { %8524 = vpow2.f32 %v1166_v51  ;;  %v1161_v56 = vsub.f32 %v1128_v27, %v1149_v53  ;;  %v1162_v60 = vsub.f32 %v1129_v28, %v1152_v54 }
 0x451   : > { %v8519_v57 = vpop.eup %8518  ;;  %8526 = vpow2.f32 %v1172_v52 }
 0x452   : > { %v8521_v58 = vpop.eup %8520  ;;  %v1174_v59 = vmul.f32 1.442695, %v1161_v56  ;;  %v1189_v61 = vsel %vm1131_vm10, %v8519_v57, 0.0  ;;  %v1176_v7 = vmul.f32 1.442695, %v1162_v60 }
 0x453   : > { %1190 = vadd.xlane.f32.xlu0 %v1189_v61  ;;  %v1155_v62 = vpop.xlane.xlu0 %1154  ;;  %v8375_v63 = vpop.permute.xlu1 %8374  ;;  %v1186_v2 = vsel %vm1131_vm10, %v8521_v58, 0.0  ;;  %v403_v61 = vld [vmem:[#allocation2 + $0x198] sm:$0xff] }
 0x454   : > { %8528 = vpow2.f32 %v1174_v59  ;;  %v1163_v3 = vsub.f32 %v1130_v31, %v1155_v62  ;;  %v8377_v4 = vunpack.i.h.bf16 %v8375_v63  ;;  %v8376_v5 = vunpack.i.l.bf16 %v8375_v63  ;;  %1187 = vadd.xlane.f32.xlu1 %v1186_v2  ;;  %v402_v62 = vld [vmem:[#allocation2 + $0x190] sm:$0xff] }
 0x456   : > { %v8523_v6 = vpop.eup %8522  ;;  %v1178_v8 = vmul.f32 1.442695, %v1163_v3  ;;  %v8039_v9 = vpack.c.bf16 %v8377_v4, %v8376_v5  ;;  %v404_v3 = vld [vmem:[#allocation2 + $0x1a0] sm:$0xff] }
 0x457   : > { %v1180_v11 = vsel %vm1131_vm10, %v8523_v6, 0.0 }
 0x458   : > { %8530 = vpow2.f32 %v1178_v8  ;;  %1181 = vadd.xlane.f32.xlu1 %v1180_v11  ;;  %8040 = vmatprep.subr.bf16.mxu1 %v8039_v9 }
 0x459   : > { %8042 = vmatpush3.bf16.msra.mxu1 %v8039_v9  ;;  %8532 = vpow2.f32 %v1176_v7  ;;  %v405_v9 = vld [vmem:[#allocation2 + $0x1a8] sm:$0xff] }
 0x45a   : > { %v8947_v12 = vpop.eup %8524 }
 0x45b   : > { %v8527_v13 = vpop.eup %8526  ;;  %v1183_v14 = vsel %vm1131_vm10, %v8947_v12, 0.0 }
 0x45c   : > { %1184 = vadd.xlane.f32.xlu0 %v1183_v14  ;;  %v1192_v15 = vsel %vm1131_vm10, %v8527_v13, 0.0 }
 0x45d   : > { %1193 = vadd.xlane.f32.xlu1 %v1192_v15 }
 0x45e   : > { %v8529_v16 = vpop.eup %8528 }
 0x45f   : > { %v1195_v17 = vsel %vm1131_vm10, %v8529_v16, 0.0 }
 0x460   : > { %1196 = vadd.xlane.f32.xlu0 %v1195_v17 }
 0x462   : > { %v8953_v18 = vpop.eup %8530 }
 0x463   : > { %v1201_v19 = vsel %vm1131_vm10, %v8953_v18, 0.0  ;;  %v8957_v20 = vpop.eup %8532 }
 0x464   : > { %1202 = vadd.xlane.f32.xlu0 %v1201_v19  ;;  %v1198_v21 = vsel %vm1131_vm10, %v8957_v20, 0.0 }
 0x468   : > { %1199 = vadd.xlane.f32.xlu0 %v1198_v21 }
 0x46e   : > { %8384 = vrot.lane.b32.xlu1 %v8889_v48, %s8732_s20 }
 0x472   : > { %8389 = vrot.lane.b32.xlu1 %v8889_v48, %s8733_s21 }
 0x47e   : > { %8379 = vrot.lane.b32.xlu0 %v8889_v48, %s8734_s22 }
 0x4e0   : > { %v1191_v22 = vpop.xlane.xlu0 %1190 }
 0x4e1   : > { %8534 = vrcp.f32 %v1191_v22  ;;  %v1188_v23 = vpop.xlane.xlu1 %1187 }
 0x4e2   : > { %8536 = vrcp.f32 %v1188_v23 }
 0x4e5   : > { %v1182_v24 = vpop.xlane.xlu1 %1181 }
 0x4e6   : > { %8538 = vrcp.f32 %v1182_v24 }
 0x4e9   : > { %v1185_v25 = vpop.xlane.xlu0 %1184 }
 0x4ea   : > { %v1194_v26 = vpop.xlane.xlu1 %1193 }
 0x4eb   : > { %v8535_v27 = vpop.eup %8534  ;;  %8540 = vrcp.f32 %v1194_v26 }
 0x4ec   : > { %v8537_v28 = vpop.eup %8536  ;;  %v1215_v32 = vmul.f32 %v8535_v27, %v8519_v57 }
 0x4ed   : > { %v1197_v29 = vpop.xlane.xlu0 %1196  ;;  %v1214_v30 = vmul.f32 %v8537_v28, %v8521_v58 }
 0x4ee   : > { %8542 = vrcp.f32 %v1197_v29  ;;  %v8385_v31 = vpop.permute.xlu1 %8384 }
 0x4ef   : > { %v8387_v33 = vunpack.i.h.bf16 %v8385_v31  ;;  %v8386_v34 = vunpack.i.l.bf16 %v8385_v31  ;;  %7575 = vmatprep.mubr.msk.f32.mxu1 %vm1131_vm10, %v1214_v30  ;;  %8544 = vrcp.f32 %v1185_v25  ;;  %v412_v30 = vld [vmem:[#allocation2 + $0x1e0] sm:$0xff]  ;;  %v413_v31 = vld [vmem:[#allocation2 + $0x1e8] sm:$0xff] }
 0x4f0   : > { %v8539_v48 = vpop.eup %8538  ;;  %7576 = vmatmul.mubr.msk.f32.vlgmr.msra.gmra.mrb[8].mxu1 %vm1131_vm10, %v1215_v32 }
 0x4f1   : > { %v1203_v35 = vpop.xlane.xlu0 %1202  ;;  %v8043_v36 = vpack.c.bf16 %v8387_v33, %v8386_v34  ;;  %v1212_v37 = vmul.f32 %v8539_v48, %v8523_v6  ;;  %v414_v33 = vld [vmem:[#allocation2 + $0x1f0] sm:$0xff]  ;;  %v416_v48 = vld [vmem:[#allocation2 + $0x200] sm:$0xff] }
 0x4f2   : > { %v8390_v38 = vpop.permute.xlu1 %8389  ;;  %8546 = vrcp.f32 %v1203_v35  ;;  %v8055_v34 = vpack.c.bf16 %v414_v33, %v413_v31  ;;  %v417_v35 = vld [vmem:[#allocation2 + $0x208] sm:$0xff]  ;;  %v436_v31 = vld [vmem:[#allocation2 + $0x2a0] sm:$0xff] }
 0x4f3   : > { %v8392_v39 = vunpack.i.h.bf16 %v8390_v38  ;;  %v8391_v40 = vunpack.i.l.bf16 %v8390_v38  ;;  %8044 = vmatprep.subr.bf16.mxu1 %v8043_v36  ;;  %7568 = vmatprep.mubr.msk.f32.mxu0 %vm1131_vm10, %v1212_v37  ;;  %v8059_v37 = vpack.c.bf16 %v417_v35, %v416_v48  ;;  %v419_v38 = vld [vmem:[#allocation2 + $0x218] sm:$0xff]  ;;  %v437_v33 = vld [vmem:[#allocation2 + $0x2a8] sm:$0xff] }
 0x4f4   : > { %8046 = vmatpush3.bf16.msra.mxu1 %v8043_v36  ;;  %v418_v36 = vld [vmem:[#allocation2 + $0x210] sm:$0xff] }
 0x4f5   : > { %v8541_v43 = vpop.eup %8540  ;;  %v1200_v44 = vpop.xlane.xlu0 %1199  ;;  %v8047_v45 = vpack.c.bf16 %v8392_v39, %v8391_v40  ;;  %v8063_v39 = vpack.c.bf16 %v419_v38, %v418_v36  ;;  %v420_v40 = vld [vmem:[#allocation2 + $0x220] sm:$0xff] }
 0x4f6   : > { %8548 = vrcp.f32 %v1200_v44  ;;  %v1216_v46 = vmul.f32 %v8541_v43, %v8527_v13  ;;  %v421_v43 = vld [vmem:[#allocation2 + $0x228] sm:$0xff] }
 0x4f7   : > { %8048 = vmatprep.subr.bf16.mxu1 %v8047_v45  ;;  %v8067_v44 = vpack.c.bf16 %v421_v43, %v420_v40  ;;  %v7088_v43 = vld [vmem:[#allocation2 + $0x258] ss:$0 sm:$0xff] }
 0x4f8   : > { %v8543_v47 = vpop.eup %8542  ;;  %7592 = vmatprep.mubr.msk.f32.mxu1 %vm1131_vm10, %v1216_v46 }
 0x4f9   : > { %v8380_v49 = vpop.permute.xlu0 %8379  ;;  %v1217_v50 = vmul.f32 %v8543_v47, %v8529_v16  ;;  %v8545_v54 = vpop.eup %8544 }
 0x4fa   : > { %v8382_v51 = vunpack.i.h.bf16 %v8380_v49  ;;  %v8381_v52 = vunpack.i.l.bf16 %v8380_v49  ;;  %v1213_v58 = vmul.f32 %v8545_v54, %v8947_v12  ;;  %v7079_v12 = vld [vmem:[#allocation2 + $0x180] ss:$0 sm:$0xff] }
 0x4fb   : > { %7593 = vmatmul.mubr.msk.f32.vlgmr.msra.gmra.mrb[10].mxu1 %vm1131_vm10, %v1217_v50 }
 0x4fc   : > { %8050 = vmatpush3.bf16.msra.mxu1 %v8047_v45  ;;  %v8035_v53 = vpack.c.bf16 %v8382_v51, %v8381_v52  ;;  %v8547_v56 = vpop.eup %8546 }
 0x4fd   : > { %v1219_v60 = vmul.f32 %v8547_v56, %v8953_v18 }
 0x4fe   : > { %8036 = vmatprep.subr.bf16.mxu0 %v8035_v53 }
 0x4ff   : > { %8038 = vmatpush3.bf16.msra.mxu0 %v8035_v53  ;;  %v7080_v53 = vld [vmem:[#allocation2 + $0x248] ss:$0 sm:$0xff] }
 0x500   : > { %v8549_v57 = vpop.eup %8548  ;;  %7578 = vmatprep.subr.mxu0 %v403_v61 }
 0x501   : > { %v1218_v59 = vmul.f32 %v8549_v57, %v8957_v20 }
 0x502   : > { %7569 = vmatmul.mubr.msk.f32.vlgmr.msra.gmra.mrb[6].mxu0 %vm1131_vm10, %v1213_v58  ;;  %v7081_v58 = vld [vmem:[#allocation2 + $0x240] ss:$0 sm:$0xff] }
 0x503   : > { %7604 = vmatprep.mubr.msk.f32.mxu1 %vm1131_vm10, %v1218_v59  ;;  %7579 = vmatpush3.msra.mxu0 %v403_v61 }
 0x504   : > { %7605 = vmatmul.mubr.msk.f32.vlgmr.msra.gmra.mrb[12].mxu1 %vm1131_vm10, %v1219_v60  ;;  %7583 = vmatprep.subr.mxu0 %v402_v62 }
 0x5c3   : > { %v7577_v63 = vpop.f32.mrb[8].mxu1 }
 0x5c4   : > { %v1385_v2 = vpop.f32.mrb[9].mxu1 }
 0x5c5   : > { %7580 = vmatprep.mubr.msk.f32.mxu0 %vm498_vm6, %v1385_v2  ;;  %v423_v2 = vld [vmem:[#allocation2 + $0x238] sm:$0xff] }
 0x5c6   : > { %7581 = vmatmul.mubr.msk.f32.vlgmr.msra.gmra.mrb[8].mxu0 %vm498_vm6, %v7577_v63  ;;  %v422_v63 = vld [vmem:[#allocation2 + $0x230] sm:$0xff] }
 0x5c7   : > { %7584 = vmatpush3.msra.mxu0 %v402_v62 }
 0x5c8   : > { %7595 = vmatprep.subr.mxu0 %v404_v3 }
 0x5ce   : > { %v7594_v4 = vpop.f32.mrb[10].mxu1 }
 0x5cf   : > { %v1634_v5 = vpop.f32.mrb[11].mxu1 }
 0x5d5   : > { %v7570_v6 = vpop.f32.mrb[6].mxu0 }
 0x5d6   : > { %v1298_v7 = vpop.f32.mrb[7].mxu0 }
 0x5d7   : > { %7585 = vmatprep.mubr.msk.f32.mxu0 %vm498_vm6, %v1298_v7  ;;  %v7606_v8 = vpop.f32.mrb[12].mxu1 }
 0x5d8   : > { %7586 = vmatmul.mubr.msk.f32.vlgmr.msra.gmra.mrb[8].mxu0 %vm498_vm6, %v7570_v6  ;;  %v1804_v11 = vpop.f32.mrb[13].mxu1 }
 0x5d9   : > { %7596 = vmatpush3.msra.mxu0 %v404_v3  ;;  %7597 = vmatprep.mubr.msk.f32.mxu0 %vm498_vm6, %v1634_v5  ;;  %v8071_v3 = vpack.c.bf16 %v423_v2, %v422_v63 }
 0x5da   : > { %7607 = vmatprep.subr.mxu0 %v405_v9 }
 0x5e0   : > { %7598 = vmatmul.mubr.msk.f32.vlgmr.msra.gmra.mrb[8].mxu0 %vm498_vm6, %v7594_v4  ;;  %v7082_v4 = vld [vmem:[#allocation2 + $0x1d0] ss:$0 sm:$0xff] }
 0x5e1   : > { %7608 = vmatpush3.msra.mxu0 %v405_v9  ;;  %7609 = vmatprep.mubr.msk.f32.mxu0 %vm498_vm6, %v1804_v11 }
 0x5e2   : > { %8060 = vmatprep.subr.bf16.mxu0 %v8059_v37 }
 0x5e8   : > { %7610 = vmatmul.mubr.msk.f32.vlgmr.msra.gmra.mrb[8].mxu0 %vm498_vm6, %v7606_v8 }
 0x5e9   : > { %8062 = vmatpush3.bf16.msra.mxu0 %v8059_v37 }
 0x5ea   : > { %8064 = vmatprep.subr.bf16.mxu0 %v8063_v39 }
 0x5ed   : > { %8066 = vmatpush3.bf16.msra.mxu0 %v8063_v39 }
 0x5ee   : > { %8068 = vmatprep.subr.bf16.mxu0 %v8067_v44 }
 0x5f1   : > { %8070 = vmatpush3.bf16.msra.mxu0 %v8067_v44 }
 0x5f2   : > { %8072 = vmatprep.subr.bf16.mxu0 %v8071_v3 }
 0x5f5   : > { %8074 = vmatpush3.bf16.msra.mxu0 %v8071_v3 }
 0x6bb   : > { %v7611_v13 = vpop.f32.mrb[8].mxu0 }
 0x6bc   : > { %v1901_v14 = vadd.f32 %v7611_v13, %v7079_v12  ;;  %v1885_v15 = vpop.f32.mrb[9].mxu0 }
 0x6bd   : > { %v1900_v16 = vadd.f32 %v7079_v12, %v1885_v15  ;;  %v7085_v12 = vld [vmem:[#allocation2 + $0x1f8] ss:$0 sm:$0xff] }
 0x6be   : > { %v1903_v17 = vadd.f32 %v1901_v14, %v8882_v42 }
 0x6bf   : > { %v1902_v18 = vadd.f32 %v1900_v16, %v8880_v41  ;;  %v411_v41 = vld [vmem:[#allocation2 + $0x1d8] sm:$0xff] }
 0x6c0   : > { %v1907_v19 = vsel %vm679_vm8, %v1903_v17, 0.0  ;;  %v8051_v32 = vpack.c.bf16 %v412_v30, %v411_v41  ;;  %v434_v41 = vld [vmem:[#allocation2 + $0x290] sm:$0xff]  ;;  %v435_v30 = vld [vmem:[#allocation2 + $0x298] sm:$0xff] }
 0x6c1   : > { %1908 = vadd.xlane.f32.xlu0 %v1907_v19  ;;  %v1904_v20 = vsel %vm679_vm8, %v1902_v18, 0.0 }
 0x6c2   : > { %1905 = vadd.xlane.f32.xlu1 %v1904_v20  ;;  %8052 = vmatprep.subr.bf16.mxu1 %v8051_v32 }
 0x6c3   : > { %8054 = vmatpush3.bf16.msra.mxu1 %v8051_v32  ;;  %v8075_v32 = vpack.c.bf16 %v435_v30, %v434_v41 }
 0x6c4   : > { %8056 = vmatprep.subr.bf16.mxu1 %v8055_v34 }
 0x6c7   : > { %8058 = vmatpush3.bf16.msra.mxu1 %v8055_v34  ;;  %v8079_v34 = vpack.c.bf16 %v437_v33, %v436_v31 }
 0x6c8   : > { %8076 = vmatprep.subr.bf16.mxu1 %v8075_v32 }
 0x74e   : > { %v1909_v21 = vpop.xlane.xlu0 %1908 }
 0x74f   : > { %v1912_v22 = vmul.f32 0.03125, %v1909_v21  ;;  %v1906_v23 = vpop.xlane.xlu1 %1905 }
 0x750   : > { %v1911_v24 = vmul.f32 0.03125, %v1906_v23 }
 0x751   : > { %v1914_v25 = vsub.f32 %v1903_v17, %v1912_v22 }
 0x752   : > { %v1913_v26 = vsub.f32 %v1902_v18, %v1911_v24 }
 0x753   : > { %v1916_v27 = vmul.f32 %v1914_v25, %v1914_v25 }
 0x754   : > { %v1915_v28 = vmul.f32 %v1913_v26, %v1913_v26 }
 0x755   : > { %v1920_v29 = vsel %vm679_vm8, %v1916_v27, 0.0 }
 0x756   : > { %1921 = vadd.xlane.f32.xlu0 %v1920_v29  ;;  %v1917_v42 = vsel %vm679_vm8, %v1915_v28, 0.0 }
 0x757   : > { %1918 = vadd.xlane.f32.xlu1 %v1917_v42 }
 0x7e3   : > { %v1922_v45 = vpop.xlane.xlu0 %1921 }
 0x7e4   : > { %v1924_v46 = vmul.f32 0.03125, %v1922_v45  ;;  %v1919_v47 = vpop.xlane.xlu1 %1918 }
 0x7e5   : > { %v1923_v49 = vmul.f32 0.03125, %v1919_v47  ;;  %v7089_v47 = vld [vmem:[#allocation2 + $0x250] ss:$0 sm:$0xff] }
 0x7e6   : > { %v1926_v50 = vadd.f32 1e-05, %v1924_v46 }
 0x7e7   : > { %v1925_v51 = vadd.f32 1e-05, %v1923_v49 }
 0x7e8   : > { %8550 = vrsqrt.f32 %v1926_v50 }
 0x7e9   : > { %8552 = vrsqrt.f32 %v1925_v51 }
 0x7f2   : > { %v8551_v52 = vpop.eup %8550 }
 0x7f3   : > { %v8553_v54 = vpop.eup %8552  ;;  %v1930_v56 = vmul.f32 %v8551_v52, %v1914_v25 }
 0x7f4   : > { %v1929_v57 = vmul.f32 %v8553_v54, %v1913_v26 }
 0x7f5   : > { %v1936_v59 = vmul.f32 %v7080_v53, %v1930_v56 }
 0x7f6   : > { %v1935_v60 = vmul.f32 %v7080_v53, %v1929_v57  ;;  %v7090_v53 = vld [vmem:[#allocation2 + $0x268] ss:$0 sm:$0xff] }
 0x7f7   : > { %v1942_v62 = vadd.f32 %v7081_v58, %v1936_v59 }
 0x7f8   : > { %v1941_v61 = vadd.f32 %v7081_v58, %v1935_v60 }
 0x7fa   : > { %7620 = vmatprep.mubr.msk.f32.mxu1 %vm679_vm8, %v1941_v61 }
 0x7fb   : > { %7621 = vmatmul.mubr.msk.f32.vlgmr.msra.gmra.mrb[14].mxu1 %vm679_vm8, %v1942_v62 }
 0x7fc   : > { %8078 = vmatpush3.bf16.msra.mxu1 %v8075_v32 }
 0x7fd   : > { %8080 = vmatprep.subr.bf16.mxu1 %v8079_v34 }
 0x800   : > { %8082 = vmatpush3.bf16.msra.mxu1 %v8079_v34 }
 0x8ce   : > { %v7622_v5 = vpop.f32.mrb[14].mxu1 }
 0x8cf   : > { %v2025_v6 = vadd.f32 %v7622_v5, %v7082_v4  ;;  %v2019_v7 = vpop.f32.mrb[15].mxu1 }
 0x8d0   : > { %v2020_v8 = vadd.f32 %v7082_v4, %v2019_v7 }
 0x8d1   : > { %v2029_v11 = vmax.f32 %v2025_v6, 0.0 }
 0x8d2   : > { %v2028_v9 = vmax.f32 %v2020_v8, 0.0 }
 0x8d4   : > { %7639 = vmatprep.mubr.msk.f32.mxu0 %vm2034_vm11, %v2028_v9 }
 0x8d5   : > { %7640 = vmatmul.mubr.msk.f32.vlgmr.msra.gmra.mrb[10].mxu0 %vm2034_vm11, %v2029_v11 }
 0x9a8   : > { %v7641_v13 = vpop.f32.mrb[10].mxu0 }
 0x9a9   : > { %v2113_v14 = vadd.f32 %v7641_v13, %v7085_v12  ;;  %v2107_v15 = vpop.f32.mrb[11].mxu0 }
 0x9aa   : > { %v2108_v16 = vadd.f32 %v7085_v12, %v2107_v15 }
 0x9ab   : > { %v2117_v17 = vadd.f32 %v2113_v14, %v1942_v62 }
 0x9ac   : > { %v2116_v18 = vadd.f32 %v2108_v16, %v1941_v61 }
 0x9ad   : > { %v2121_v19 = vsel %vm679_vm8, %v2117_v17, 0.0 }
 0x9ae   : > { %2122 = vadd.xlane.f32.xlu0 %v2121_v19  ;;  %v2118_v20 = vsel %vm679_vm8, %v2116_v18, 0.0 }
 0x9af   : > { %2119 = vadd.xlane.f32.xlu1 %v2118_v20 }
 0xa3b   : > { %v2123_v21 = vpop.xlane.xlu0 %2122 }
 0xa3c   : > { %v2125_v22 = vmul.f32 0.03125, %v2123_v21  ;;  %v2120_v23 = vpop.xlane.xlu1 %2119 }
 0xa3d   : > { %v2124_v24 = vmul.f32 0.03125, %v2120_v23 }
 0xa3e   : > { %v2127_v25 = vsub.f32 %v2117_v17, %v2125_v22 }
 0xa3f   : > { %v2126_v26 = vsub.f32 %v2116_v18, %v2124_v24 }
 0xa40   : > { %v2129_v27 = vmul.f32 %v2127_v25, %v2127_v25 }
 0xa41   : > { %v2128_v28 = vmul.f32 %v2126_v26, %v2126_v26 }
 0xa42   : > { %v2133_v29 = vsel %vm679_vm8, %v2129_v27, 0.0 }
 0xa43   : > { %2134 = vadd.xlane.f32.xlu0 %v2133_v29  ;;  %v2130_v42 = vsel %vm679_vm8, %v2128_v28, 0.0 }
 0xa44   : > { %2131 = vadd.xlane.f32.xlu1 %v2130_v42 }
 0xad0   : > { %v2135_v48 = vpop.xlane.xlu0 %2134 }
 0xad1   : > { %v2137_v35 = vmul.f32 0.03125, %v2135_v48  ;;  %v2132_v36 = vpop.xlane.xlu1 %2131 }
 0xad2   : > { %v2136_v37 = vmul.f32 0.03125, %v2132_v36 }
 0xad3   : > { %v2139_v38 = vadd.f32 1e-05, %v2137_v35 }
 0xad4   : > { %v2138_v39 = vadd.f32 1e-05, %v2136_v37 }
 0xad5   : > { %8554 = vrsqrt.f32 %v2139_v38 }
 0xad6   : > { %8556 = vrsqrt.f32 %v2138_v39 }
 0xadf   : > { %v8555_v40 = vpop.eup %8554 }
 0xae0   : > { %v8557_v44 = vpop.eup %8556  ;;  %v2143_v45 = vmul.f32 %v8555_v40, %v2127_v25 }
 0xae1   : > { %v2142_v46 = vmul.f32 %v8557_v44, %v2126_v26 }
 0xae2   : > { %v2149_v49 = vmul.f32 %v7088_v43, %v2143_v45 }
 0xae3   : > { %v2148_v50 = vmul.f32 %v7088_v43, %v2142_v46 }
 0xae4   : > { %v9002_v52 = vadd.f32 %v7089_v47, %v2149_v49 }
 0xae5   : > { %v9000_v51 = vadd.f32 %v7089_v47, %v2148_v50 }
 0xae7   : > { %7650 = vmatprep.mubr.msk.f32.mxu1 %vm679_vm8, %v9000_v51 }
 0xae8   : > { %7651 = vmatmul.mubr.msk.f32.vlgmr.msra.gmra.mrb[16].mxu1 %vm679_vm8, %v9002_v52 }
 0xbbb   : > { %v7652_v54 = vpop.f32.mrb[16].mxu1 }
 0xbbc   : > { %v2238_v56 = vadd.f32 %v7652_v54, %v7090_v53  ;;  %v2232_v57 = vpop.f32.mrb[17].mxu1 }
 0xbbd   : > { %v2233_v58 = vadd.f32 %v7090_v53, %v2232_v57 }
 0xbbf   : > { %7657 = vmatprep.mubr.msk.f32.mxu1 %vm498_vm6, %v2233_v58  ;;  %v9009_v59 = vpack.i.bf16 %v2238_v56, %v2233_v58 }
 0xbc1   : > { %8399 = vrot.lane.b32.xlu0 %v9009_v59, %s8725_s12  ;;  %8394 = vrot.lane.b32.xlu1 %v9009_v59, %s8724_s11 }
 0xbc5   : > { %8404 = vrot.lane.b32.xlu0 %v9009_v59, %s8728_s15  ;;  %2330 = vrot.lane.b32.xlu1 %v2233_v58, %s8726_s13 }
 0xbc9   : > { %2421 = vrot.lane.b32.xlu0 %v2233_v58, %s8729_s16  ;;  %2332 = vrot.lane.b32.xlu1 %v2238_v56, %s8726_s13 }
 0xbcd   : > { %2512 = vrot.lane.b32.xlu0 %v2233_v58, %s8730_s17  ;;  %8409 = vrot.lane.b32.xlu1 %v9009_v59, %s8727_s14 }
 0xbd1   : > { %2423 = vrot.lane.b32.xlu1 %v2238_v56, %s8729_s16 }
 0xbd5   : > { %2514 = vrot.lane.b32.xlu1 %v2238_v56, %s8730_s17 }
 0xc33   : > { %v8400_v60 = vpop.permute.xlu0 %8399  ;;  %v8395_v61 = vpop.permute.xlu1 %8394 }
 0xc34   : > { %v8402_v62 = vunpack.i.h.bf16 %v8400_v60  ;;  %v8401_v63 = vunpack.i.l.bf16 %v8400_v60  ;;  %v8397_v2 = vunpack.i.h.bf16 %v8395_v61  ;;  %v8396_v3 = vunpack.i.l.bf16 %v8395_v61 }
 0xc36   : > { %v8089_v4 = vpack.c.bf16 %v8402_v62, %v8401_v63  ;;  %v8083_v5 = vpack.c.bf16 %v8397_v2, %v8396_v3 }
 0xc37   : > { %v8405_v6 = vpop.permute.xlu0 %8404  ;;  %v2331_v7 = vpop.permute.xlu1 %2330 }
 0xc38   : > { %v8407_v8 = vunpack.i.h.bf16 %v8405_v6  ;;  %v8406_v9 = vunpack.i.l.bf16 %v8405_v6  ;;  %8085 = vmatprep.subr.msk.bf16.mxu1 %vm8907_vm9, %v8083_v5  ;;  %8091 = vmatprep.subr.msk.bf16.mxu0 %vm8907_vm9, %v8089_v4 }
 0xc39   : > { %7664 = vmatprep.mubr.msk.f32.mxu0 %vm498_vm6, %v2331_v7  ;;  %8088 = vmatpush3.bf16.xpose.msk.msra.mxu1 %vm8907_vm9, %v8083_v5 }
 0xc3a   : > { %v8095_v11 = vpack.c.bf16 %v8407_v8, %v8406_v9  ;;  %8094 = vmatpush3.bf16.xpose.msk.msra.mxu0 %vm8907_vm9, %v8089_v4 }
 0xc3b   : > { %v2422_v12 = vpop.permute.xlu0 %2421  ;;  %v2333_v13 = vpop.permute.xlu1 %2332 }
 0xc3c   : > { %8097 = vmatprep.subr.msk.bf16.mxu1 %vm8907_vm9, %v8095_v11 }
 0xc3f   : > { %v2513_v14 = vpop.permute.xlu0 %2512  ;;  %v8410_v15 = vpop.permute.xlu1 %8409 }
 0xc40   : > { %v8412_v16 = vunpack.i.h.bf16 %v8410_v15  ;;  %v8411_v17 = vunpack.i.l.bf16 %v8410_v15  ;;  %7658 = vmatmul.mubr.msk.f32.vlgmr.msra.gmra.mrb[18].mxu1 %vm498_vm6, %v2238_v56 }
 0xc41   : > { %7665 = vmatmul.mubr.msk.f32.vlgmr.msra.gmra.mrb[12].mxu0 %vm498_vm6, %v2333_v13  ;;  %8100 = vmatpush3.bf16.xpose.msk.msra.mxu1 %vm8907_vm9, %v8095_v11 }
 0xc42   : > { %v8101_v18 = vpack.c.bf16 %v8412_v16, %v8411_v17  ;;  %7671 = vmatprep.mubr.msk.f32.mxu1 %vm498_vm6, %v2422_v12  ;;  %7678 = vmatprep.mubr.msk.f32.mxu0 %vm498_vm6, %v2513_v14 }
 0xc43   : > { %v2424_v19 = vpop.permute.xlu1 %2423 }
 0xc44   : > { %8103 = vmatprep.subr.msk.bf16.mxu0 %vm8907_vm9, %v8101_v18 }
 0xc45   : > { %8106 = vmatpush3.bf16.xpose.msk.msra.mxu0 %vm8907_vm9, %v8101_v18 }
 0xc47   : > { %v2515_v20 = vpop.permute.xlu1 %2514 }
 0xc48   : > { %7672 = vmatmul.mubr.msk.f32.vlgmr.msra.gmra.mrb[20].mxu1 %vm498_vm6, %v2424_v19 }
 0xc4c   : > { %7679 = vmatmul.mubr.msk.f32.vlgmr.msra.gmra.mrb[14].mxu0 %vm498_vm6, %v2515_v20 }
 0xd13   : > { %v7659_v21 = vpop.f32.mrb[18].mxu1 }
 0xd14   : > { %v2604_v22 = vmul.f32 0.35355338, %v7659_v21  ;;  %v7666_v23 = vpop.f32.mrb[12].mxu0  ;;  %v2321_v24 = vpop.f32.mrb[19].mxu1 }
 0xd15   : > { %v2603_v25 = vmul.f32 0.35355338, %v2321_v24  ;;  %v2412_v26 = vpop.f32.mrb[13].mxu0  ;;  %v2606_v42 = vmul.f32 0.35355338, %v7666_v23 }
 0xd16   : > { %v2614_v27 = vsel %vm1131_vm10, %v2604_v22, -inf  ;;  %v2605_v28 = vmul.f32 0.35355338, %v2412_v26 }
 0xd17   : > { %2615 = vmax.xlane.f32.xlu1 %v2614_v27  ;;  %v2611_v29 = vsel %vm1131_vm10, %v2603_v25, -inf  ;;  %v2620_v48 = vsel %vm1131_vm10, %v2606_v42, -inf }
 0xd18   : > { %2612 = vmax.xlane.f32.xlu0 %v2611_v29  ;;  %v2617_v30 = vsel %vm1131_vm10, %v2605_v28, -inf }
 0xd1b   : > { %v7673_v41 = vpop.f32.mrb[20].mxu1 }
 0xd1c   : > { %2618 = vmax.xlane.f32.xlu0 %v2617_v30  ;;  %v2503_v31 = vpop.f32.mrb[21].mxu1  ;;  %v9051_v33 = vmul.f32 0.35355338, %v7673_v41 }
 0xd1d   : > { %v2607_v32 = vmul.f32 0.35355338, %v2503_v31 }
 0xd1e   : > { %v2626_v39 = vsel %vm1131_vm10, %v9051_v33, -inf }
 0xd1f   : > { %v7680_v34 = vpop.f32.mrb[14].mxu0  ;;  %v2623_v35 = vsel %vm1131_vm10, %v2607_v32, -inf }
 0xd20   : > { %v2594_v36 = vpop.f32.mrb[15].mxu0  ;;  %2621 = vmax.xlane.f32.xlu0 %v2620_v48  ;;  %2624 = vmax.xlane.f32.xlu1 %v2623_v35  ;;  %v9055_v38 = vmul.f32 0.35355338, %v7680_v34 }
 0xd21   : > { %v2609_v37 = vmul.f32 0.35355338, %v2594_v36 }
 0xd22   : > { %v2632_v43 = vsel %vm1131_vm10, %v9055_v38, -inf }
 0xd23   : > { %v2629_v40 = vsel %vm1131_vm10, %v2609_v37, -inf }
 0xd24   : > { %2627 = vmax.xlane.f32.xlu0 %v2626_v39  ;;  %2630 = vmax.xlane.f32.xlu1 %v2629_v40 }
 0xd28   : > { %2633 = vmax.xlane.f32.xlu0 %v2632_v43 }
 0xd35   : > { %8414 = vrot.lane.b32.xlu1 %v9009_v59, %s8734_s22 }
 0xda4   : > { %v2616_v44 = vpop.xlane.xlu1 %2615 }
 0xda5   : > { %v2636_v45 = vsub.f32 %v2604_v22, %v2616_v44  ;;  %v2613_v46 = vpop.xlane.xlu0 %2612 }
 0xda6   : > { %v2635_v47 = vsub.f32 %v2603_v25, %v2613_v46 }
 0xda7   : > { %v2645_v49 = vmul.f32 1.442695, %v2636_v45 }
 0xda8   : > { %v2643_v50 = vmul.f32 1.442695, %v2635_v47 }
 0xda9   : > { %8558 = vpow2.f32 %v2645_v49  ;;  %v2619_v53 = vpop.xlane.xlu0 %2618 }
 0xdaa   : > { %8560 = vpow2.f32 %v2643_v50  ;;  %v2637_v54 = vsub.f32 %v2605_v28, %v2619_v53 }
 0xdac   : > { %v2647_v56 = vmul.f32 1.442695, %v2637_v54 }
 0xdad   : > { %v2622_v57 = vpop.xlane.xlu0 %2621  ;;  %v2625_v58 = vpop.xlane.xlu1 %2624 }
 0xdae   : > { %8562 = vpow2.f32 %v2647_v56  ;;  %v2638_v60 = vsub.f32 %v2606_v42, %v2622_v57  ;;  %v2639_v61 = vsub.f32 %v2607_v32, %v2625_v58 }
 0xdb0   : > { %v2649_v62 = vmul.f32 1.442695, %v2638_v60  ;;  %v2651_v63 = vmul.f32 1.442695, %v2639_v61 }
 0xdb1   : > { %v2631_v2 = vpop.xlane.xlu1 %2630  ;;  %v2628_v22 = vpop.xlane.xlu0 %2627 }
 0xdb2   : > { %8564 = vpow2.f32 %v2649_v62  ;;  %v2641_v3 = vsub.f32 %v2609_v37, %v2631_v2  ;;  %v2640_v23 = vsub.f32 %v9051_v33, %v2628_v22  ;;  %v7125_v22 = vld [vmem:[#allocation2 + $0x260] ss:$0 sm:$0xff] }
 0xdb3   : > { %v8559_v4 = vpop.eup %8558  ;;  %8566 = vpow2.f32 %v2651_v63 }
 0xdb4   : > { %v8561_v5 = vpop.eup %8560  ;;  %v2655_v6 = vmul.f32 1.442695, %v2641_v3  ;;  %v2662_v7 = vsel %vm1131_vm10, %v8559_v4, 0.0  ;;  %v2653_v25 = vmul.f32 1.442695, %v2640_v23 }
 0xdb5   : > { %2663 = vadd.xlane.f32.xlu0 %v2662_v7  ;;  %v8415_v8 = vpop.permute.xlu1 %8414  ;;  %v2659_v9 = vsel %vm1131_vm10, %v8561_v5, 0.0  ;;  %v2634_v24 = vpop.xlane.xlu0 %2633 }
 0xdb6   : > { %v8417_v11 = vunpack.i.h.bf16 %v8415_v8  ;;  %v8416_v12 = vunpack.i.l.bf16 %v8415_v8  ;;  %2660 = vadd.xlane.f32.xlu1 %v2659_v9  ;;  %8568 = vpow2.f32 %v2655_v6  ;;  %v2642_v26 = vsub.f32 %v9055_v38, %v2634_v24  ;;  %v431_v9 = vld [vmem:[#allocation2 + $0x278] sm:$0xff] }
 0xdb7   : > { %8570 = vpow2.f32 %v2653_v25  ;;  %7695 = vmatprep.subr.mxu0 %v431_v9 }
 0xdb8   : > { %v8563_v13 = vpop.eup %8562  ;;  %v8107_v14 = vpack.c.bf16 %v8417_v11, %v8416_v12  ;;  %v2657_v27 = vmul.f32 1.442695, %v2642_v26  ;;  %7696 = vmatpush3.msra.mxu0 %v431_v9  ;;  %v430_v11 = vld [vmem:[#allocation2 + $0x270] sm:$0xff]  ;;  %v7126_v9 = vld [vmem:[#allocation2 + $0x328] ss:$0 sm:$0xff] }
 0xdb9   : > { %v2665_v15 = vsel %vm1131_vm10, %v8563_v13, 0.0  ;;  %7700 = vmatprep.subr.mxu0 %v430_v11 }
 0xdba   : > { %2666 = vadd.xlane.f32.xlu1 %v2665_v15  ;;  %8108 = vmatprep.subr.bf16.mxu1 %v8107_v14  ;;  %8572 = vpow2.f32 %v2657_v27 }
 0xdbb   : > { %8110 = vmatpush3.bf16.msra.mxu1 %v8107_v14 }
 0xdbc   : > { %v8565_v16 = vpop.eup %8564 }
 0xdbd   : > { %v8567_v17 = vpop.eup %8566  ;;  %v2668_v18 = vsel %vm1131_vm10, %v8565_v16, 0.0 }
 0xdbe   : > { %2669 = vadd.xlane.f32.xlu0 %v2668_v18  ;;  %v2671_v19 = vsel %vm1131_vm10, %v8567_v17, 0.0 }
 0xdbf   : > { %2672 = vadd.xlane.f32.xlu1 %v2671_v19 }
 0xdc0   : > { %v9069_v20 = vpop.eup %8568 }
 0xdc1   : > { %v2677_v21 = vsel %vm1131_vm10, %v9069_v20, 0.0  ;;  %v8571_v28 = vpop.eup %8570 }
 0xdc2   : > { %v2674_v29 = vsel %vm1131_vm10, %v8571_v28, 0.0 }
 0xdc3   : > { %2678 = vadd.xlane.f32.xlu1 %v2677_v21 }
 0xdc4   : > { %v8573_v42 = vpop.eup %8572 }
 0xdc5   : > { %v2680_v41 = vsel %vm1131_vm10, %v8573_v42, 0.0 }
 0xdd4   : > { %8424 = vrot.lane.b32.xlu1 %v9009_v59, %s8732_s20  ;;  %8419 = vrot.lane.b32.xlu0 %v9009_v59, %s8731_s18 }
 0xdf3   : > { %2675 = vadd.xlane.f32.xlu0 %v2674_v29 }
 0xdf7   : > { %2681 = vadd.xlane.f32.xlu0 %v2680_v41 }
 0xe0d   : > { %8429 = vrot.lane.b32.xlu0 %v9009_v59, %s8733_s21 }
 0xe42   : > { %v2664_v30 = vpop.xlane.xlu0 %2663 }
 0xe43   : > { %8574 = vrcp.f32 %v2664_v30  ;;  %v2661_v31 = vpop.xlane.xlu1 %2660 }
 0xe44   : > { %8576 = vrcp.f32 %v2661_v31 }
 0xe47   : > { %v2667_v32 = vpop.xlane.xlu1 %2666 }
 0xe48   : > { %8578 = vrcp.f32 %v2667_v32 }
 0xe4b   : > { %v2670_v33 = vpop.xlane.xlu0 %2669 }
 0xe4c   : > { %8580 = vrcp.f32 %v2670_v33  ;;  %v2673_v34 = vpop.xlane.xlu1 %2672 }
 0xe4d   : > { %v8575_v48 = vpop.eup %8574  ;;  %8582 = vrcp.f32 %v2673_v34 }
 0xe4e   : > { %v8577_v35 = vpop.eup %8576  ;;  %v2692_v43 = vmul.f32 %v8575_v48, %v8559_v4 }
 0xe4f   : > { %v8420_v36 = vpop.permute.xlu0 %8419  ;;  %v2691_v37 = vmul.f32 %v8577_v35, %v8561_v5 }
 0xe50   : > { %v8422_v38 = vunpack.i.h.bf16 %v8420_v36  ;;  %v8421_v39 = vunpack.i.l.bf16 %v8420_v36  ;;  %v2679_v40 = vpop.xlane.xlu1 %2678 }
 0xe51   : > { %7685 = vmatprep.mubr.msk.f32.mxu1 %vm1131_vm10, %v2691_v37  ;;  %8584 = vrcp.f32 %v2679_v40  ;;  %v9112_v37 = vld [vmem:[%s342_s27 + $0x8] sm:$0xff] }
 0xe52   : > { %v8579_v59 = vpop.eup %8578  ;;  %v8111_v44 = vpack.c.bf16 %v8422_v38, %v8421_v39  ;;  %7686 = vmatmul.mubr.msk.f32.vlgmr.msra.gmra.mrb[22].mxu1 %vm1131_vm10, %v2692_v43  ;;  %v3680_v39 = vrot.slane %v9112_v37, 1 }
 0xe53   : > { %v2693_v45 = vmul.f32 %v8579_v59, %v8563_v13  ;;  %v439_v59 = vld [vmem:[#allocation2 + $0x2b8] sm:$0xff] }
 0xe54   : > { %v8425_v46 = vpop.permute.xlu1 %8424  ;;  %8112 = vmatprep.subr.bf16.mxu1 %v8111_v44 }
 0xe55   : > { %v8427_v47 = vunpack.i.h.bf16 %v8425_v46  ;;  %v8426_v49 = vunpack.i.l.bf16 %v8425_v46  ;;  %8114 = vmatpush3.bf16.msra.mxu1 %v8111_v44  ;;  %7692 = vmatprep.mubr.msk.f32.mxu1 %vm1131_vm10, %v2693_v45  ;;  %v440_v44 = vld [vmem:[#allocation2 + $0x2c0] sm:$0xff]  ;;  %v441_v46 = vld [vmem:[#allocation2 + $0x2c8] sm:$0xff] }
 0xe56   : > { %v8581_v50 = vpop.eup %8580  ;;  %v8123_v45 = vpack.c.bf16 %v440_v44, %v439_v59 }
 0xe57   : > { %v8583_v53 = vpop.eup %8582  ;;  %v8115_v54 = vpack.c.bf16 %v8427_v47, %v8426_v49  ;;  %v2694_v56 = vmul.f32 %v8581_v50, %v8565_v16  ;;  %v432_v16 = vld [vmem:[#allocation2 + $0x280] sm:$0xff]  ;;  %v442_v47 = vld [vmem:[#allocation2 + $0x2d0] sm:$0xff] }
 0xe58   : > { %v2695_v57 = vmul.f32 %v8583_v53, %v8567_v17  ;;  %v433_v17 = vld [vmem:[#allocation2 + $0x288] sm:$0xff]  ;;  %v8127_v49 = vpack.c.bf16 %v442_v47, %v441_v46  ;;  %v352_v50 = vld [vmem:[#allocation2] sm:$0xf] }
 0xe59   : > { %8116 = vmatprep.subr.bf16.mxu1 %v8115_v54  ;;  %7693 = vmatmul.mubr.msk.f32.vlgmr.msra.gmra.mrb[24].mxu1 %vm1131_vm10, %v2694_v56  ;;  %v444_v53 = vld [vmem:[#allocation2 + $0x2e0] sm:$0xff]  ;;  %v446_v56 = vld [vmem:[#allocation2 + $0x2f0] sm:$0xff] }
 0xe5a   : > { %8118 = vmatpush3.bf16.msra.mxu1 %v8115_v54  ;;  %7709 = vmatprep.mubr.msk.f32.mxu1 %vm1131_vm10, %v2695_v57  ;;  %v445_v54 = vld [vmem:[#allocation2 + $0x2e8] sm:$0xff]  ;;  %v3671_v47 = vld [vmem:[%s9454_s5] sm:$0xff] }
 0xe5b   : > { %v8585_v2 = vpop.eup %8584  ;;  %v8131_v57 = vpack.c.bf16 %v445_v54, %v444_v53 }
 0xe5c   : > { %v2697_v6 = vmul.f32 %v8585_v2, %v9069_v20 }
 0xe80   : > { %v2676_v58 = vpop.xlane.xlu0 %2675 }
 0xe81   : > { %8586 = vrcp.f32 %v2676_v58  ;;  %v447_v58 = vld [vmem:[#allocation2 + $0x2f8] sm:$0xff] }
 0xe84   : > { %v2682_v60 = vpop.xlane.xlu0 %2681 }
 0xe85   : > { %8588 = vrcp.f32 %v2682_v60  ;;  %v8135_v60 = vpack.c.bf16 %v447_v58, %v446_v56 }
 0xe88   : > { %v8430_v61 = vpop.permute.xlu0 %8429 }
 0xe89   : > { %v8432_v62 = vunpack.i.h.bf16 %v8430_v61  ;;  %v8431_v63 = vunpack.i.l.bf16 %v8430_v61  ;;  %v448_v61 = vld [vmem:[#allocation2 + $0x300] sm:$0xff] }
 0xe8b   : > { %v8587_v3 = vpop.eup %8586  ;;  %v8119_v4 = vpack.c.bf16 %v8432_v62, %v8431_v63  ;;  %v449_v62 = vld [vmem:[#allocation2 + $0x308] sm:$0xff] }
 0xe8c   : > { %v2696_v5 = vmul.f32 %v8587_v3, %v8571_v28  ;;  %v8139_v63 = vpack.c.bf16 %v449_v62, %v448_v61 }
 0xe8d   : > { %8120 = vmatprep.subr.bf16.mxu1 %v8119_v4 }
 0xe8e   : > { %7710 = vmatmul.mubr.msk.f32.vlgmr.msra.gmra.mrb[26].mxu1 %vm1131_vm10, %v2696_v5 }
 0xe8f   : > { %v8589_v7 = vpop.eup %8588  ;;  %8122 = vmatpush3.bf16.msra.mxu1 %v8119_v4  ;;  %7721 = vmatprep.mubr.msk.f32.mxu1 %vm1131_vm10, %v2697_v6 }
 0xe90   : > { %v2698_v8 = vmul.f32 %v8589_v7, %v8573_v42  ;;  %8124 = vmatprep.subr.bf16.mxu1 %v8123_v45 }
 0xe92   : > { %7722 = vmatmul.mubr.msk.f32.vlgmr.msra.gmra.mrb[28].mxu1 %vm1131_vm10, %v2698_v8 }
 0xe93   : > { %8126 = vmatpush3.bf16.msra.mxu1 %v8123_v45 }
 0xe94   : > { %8128 = vmatprep.subr.bf16.mxu1 %v8127_v49 }
 0xe97   : > { %8130 = vmatpush3.bf16.msra.mxu1 %v8127_v49  ;;  %v3672_v49 = vld [vmem:[%s9454_s5 + $0x8] sm:$0xff] }
 0xe98   : > { %7759 = vmatprep.subr.msk.mxu1 %vm509_vm0, %v352_v50 }
 0xf25   : > { %v7687_v12 = vpop.f32.mrb[22].mxu1 }
 0xf26   : > { %v2777_v13 = vpop.f32.mrb[23].mxu1 }
 0xf2c   : > { %v7694_v14 = vpop.f32.mrb[24].mxu1 }
 0xf2d   : > { %v2864_v15 = vpop.f32.mrb[25].mxu1 }
 0xf2e   : > { %7697 = vmatprep.mubr.msk.f32.mxu0 %vm498_vm6, %v2864_v15 }
 0xf2f   : > { %7698 = vmatmul.mubr.msk.f32.vlgmr.msra.gmra.mrb[16].mxu0 %vm498_vm6, %v7694_v14 }
 0xf30   : > { %7702 = vmatprep.mubr.msk.f32.mxu0 %vm498_vm6, %v2777_v13  ;;  %7701 = vmatpush3.msra.mxu0 %v430_v11  ;;  %v3676_v13 = vrot.slane %v9112_v37, 7 }
 0xf31   : > { %7712 = vmatprep.subr.mxu0 %v432_v16 }
 0xf37   : > { %7703 = vmatmul.mubr.msk.f32.vlgmr.msra.gmra.mrb[16].mxu0 %vm498_vm6, %v7687_v12 }
 0xf38   : > { %7713 = vmatpush3.msra.mxu0 %v432_v16 }
 0xf39   : > { %7724 = vmatprep.subr.mxu0 %v433_v17 }
 0xf61   : > { %v7711_v18 = vpop.f32.mrb[26].mxu1 }
 0xf62   : > { %v3113_v19 = vpop.f32.mrb[27].mxu1 }
 0xf63   : > { %7714 = vmatprep.mubr.msk.f32.mxu0 %vm498_vm6, %v3113_v19 }
 0xf64   : > { %7715 = vmatmul.mubr.msk.f32.vlgmr.msra.gmra.mrb[16].mxu0 %vm498_vm6, %v7711_v18 }
 0xf65   : > { %v7723_v20 = vpop.f32.mrb[28].mxu1  ;;  %7725 = vmatpush3.msra.mxu0 %v433_v17  ;;  %v7127_v17 = vld [vmem:[#allocation2 + $0x320] ss:$0 sm:$0xff] }
 0xf66   : > { %v3283_v21 = vpop.f32.mrb[29].mxu1  ;;  %8132 = vmatprep.subr.bf16.mxu0 %v8131_v57 }
 0xf67   : > { %7726 = vmatprep.mubr.msk.f32.mxu0 %vm498_vm6, %v3283_v21  ;;  %v354_v21 = vld [vmem:[#allocation2 + $0x10] sm:$0xf] }
 0xf6c   : > { %7727 = vmatmul.mubr.msk.f32.vlgmr.msra.gmra.mrb[16].mxu0 %vm498_vm6, %v7723_v20  ;;  %v353_v20 = vld [vmem:[#allocation2 + $0x8] sm:$0xff] }
 0xf6d   : > { %8134 = vmatpush3.bf16.msra.mxu0 %v8131_v57 }
 0xf6e   : > { %8136 = vmatprep.subr.bf16.mxu0 %v8135_v60 }
 0xf71   : > { %8138 = vmatpush3.bf16.msra.mxu0 %v8135_v60  ;;  %v7144_v60 = vld [vmem:[#allocation2 + $0x110] ss:$0 sm:$0xff] }
 0xf72   : > { %8140 = vmatprep.subr.bf16.mxu0 %v8139_v63 }
 0xf75   : > { %8142 = vmatpush3.bf16.msra.mxu0 %v8139_v63 }
0x103f   : > { %v7728_v23 = vpop.f32.mrb[16].mxu0 }
0x1040   : > { %v3380_v24 = vadd.f32 %v7728_v23, %v7125_v22  ;;  %v3364_v25 = vpop.f32.mrb[17].mxu0 }
0x1041   : > { %v3379_v26 = vadd.f32 %v7125_v22, %v3364_v25  ;;  %v3703_v25 = vld [vmem:[%s347_s30] sm:$0xff] }
0x1042   : > { %v3382_v27 = vadd.f32 %v3380_v24, %v9002_v52  ;;  %v9110_v52 = vld [vmem:[%s342_s27] sm:$0xff] }
0x1043   : > { %v3381_v28 = vadd.f32 %v3379_v26, %v9000_v51  ;;  %v3679_v38 = vrot.slane %v9110_v52, 1  ;;  %v3675_v12 = vrot.slane %v9110_v52, 7  ;;  %v8147_v26 = vpack.c.bf16 %v354_v21, %v353_v20 }
0x1044   : > { %v3386_v29 = vsel %vm679_vm8, %v3382_v27, 0.0 }
0x1045   : > { %3387 = vadd.xlane.f32.xlu0 %v3386_v29  ;;  %v3383_v42 = vsel %vm679_vm8, %v3381_v28, 0.0  ;;  %v3681_v40 = vsel %vm476_vm1, %v3679_v38, %v3680_v39  ;;  %v3682_v43 = vsel %vm476_vm1, %v3680_v39, %v3679_v38  ;;  %v3678_v22 = vsel %vm471_vm2, %v3676_v13, %v3675_v12  ;;  %v3704_v29 = vld [vmem:[%s347_s30 + $0x8] sm:$0xff]  ;;  %v7128_v39 = vld [vmem:[#allocation2 + $0x2b0] ss:$0 sm:$0xff] }
0x1046   : > { %3384 = vadd.xlane.f32.xlu1 %v3383_v42 }
0x10d2   : > { %v3388_v41 = vpop.xlane.xlu0 %3387 }
0x10d3   : > { %v3390_v30 = vmul.f32 0.03125, %v3388_v41  ;;  %v3385_v31 = vpop.xlane.xlu1 %3384  ;;  %v3677_v41 = vsel %vm471_vm2, %v3675_v12, %v3676_v13 }
0x10d4   : > { %v3389_v32 = vmul.f32 0.03125, %v3385_v31 }
0x10d5   : > { %v3392_v33 = vsub.f32 %v3382_v27, %v3390_v30 }
0x10d6   : > { %v3391_v34 = vsub.f32 %v3381_v28, %v3389_v32 }
0x10d7   : > { %v3394_v48 = vmul.f32 %v3392_v33, %v3392_v33 }
0x10d8   : > { %v3393_v35 = vmul.f32 %v3391_v34, %v3391_v34 }
0x10d9   : > { %v3398_v36 = vsel %vm679_vm8, %v3394_v48, 0.0  ;;  %v451_v48 = vld [vmem:[#allocation2 + $0x318] sm:$0xff] }
0x10da   : > { %3399 = vadd.xlane.f32.xlu0 %v3398_v36  ;;  %v3395_v51 = vsel %vm679_vm8, %v3393_v35, 0.0  ;;  %v391_v36 = vld [vmem:[#allocation2 + $0x138] sm:$0xff] }
0x10db   : > { %3396 = vadd.xlane.f32.xlu1 %v3395_v51  ;;  %v392_v51 = vld [vmem:[#allocation2 + $0x140] sm:$0xff] }
0x10ec   : > { %3685 = vrot.lane.b32.xlu1 %v9110_v52, %s8721_s28  ;;  %v8153_v52 = vpack.c.bf16 %v392_v51, %v391_v36 }
0x10f0   : > { %3693 = vrot.lane.b32.xlu1 %v3681_v40, %s8723_s29  ;;  %3687 = vrot.lane.b32.xlu0 %v9112_v37, %s8721_s28  ;;  %v394_v37 = vld [vmem:[#allocation2 + $0x150] sm:$0xff] }
0x10f1   : > { %v8157_v38 = vpack.c.bf16 %v394_v37, %v393_v10 }
0x10f4   : > { %3695 = vrot.lane.b32.xlu1 %v3682_v43, %s8723_s29 }
0x1167   : > { %v3400_v2 = vpop.xlane.xlu0 %3399 }
0x1168   : > { %v3402_v3 = vmul.f32 0.03125, %v3400_v2  ;;  %v3397_v4 = vpop.xlane.xlu1 %3396 }
0x1169   : > { %v3401_v5 = vmul.f32 0.03125, %v3397_v4 }
0x116a   : > { %v3404_v6 = vadd.f32 1e-05, %v3402_v3 }
0x116b   : > { %v3403_v7 = vadd.f32 1e-05, %v3401_v5  ;;  %v3688_v30 = vpop.permute.xlu0 %3687 }
0x116c   : > { %8590 = vrsqrt.f32 %v3404_v6  ;;  %v3686_v16 = vpop.permute.xlu1 %3685  ;;  %v3700_v31 = vsel %vm495_vm5, %v3677_v41, %v3688_v30  ;;  %v3968_v41 = vand.u32 127, %v469_v0  ;;  %v3964_v0 = vadd.s32 40, %v8828_v1 }
0x116d   : > { %8592 = vrsqrt.f32 %v3403_v7  ;;  %v3699_v27 = vsel %vm495_vm5, %v3678_v22, %v3686_v16 }
0x1170   : > { %v3694_v28 = vpop.permute.xlu1 %3693 }
0x1171   : > { %v3701_v42 = vsel %vm498_vm6, %v3699_v27, %v3694_v28 }
0x1174   : > { %v3696_v32 = vpop.permute.xlu1 %3695 }
0x1176   : > { %v8591_v8 = vpop.eup %8590 }
0x1177   : > { %v8593_v11 = vpop.eup %8592  ;;  %v3408_v14 = vmul.f32 %v8591_v8, %v3392_v33  ;;  %v3702_v33 = vsel %vm498_vm6, %v3700_v31, %v3696_v32  ;;  %v3960_v32 = vadd.s32 8, %v8828_v1 }
0x1178   : > { %v3407_v15 = vmul.f32 %v8593_v11, %v3391_v34  ;;  %v450_v34 = vld [vmem:[#allocation2 + $0x310] sm:$0xff] }
0x1179   : > { %v3414_v18 = vmul.f32 %v7126_v9, %v3408_v14  ;;  %v8143_v35 = vpack.c.bf16 %v451_v48, %v450_v34  ;;  %v3973_v34 = vand.u32 15, %v8828_v1 }
0x117a   : > { %v3413_v19 = vmul.f32 %v7126_v9, %v3407_v15 }
0x117b   : > { %v9137_v24 = vadd.f32 %v7127_v17, %v3414_v18  ;;  %8144 = vmatprep.subr.bf16.mxu0 %v8143_v35  ;;  %vm4065_vm14 = vcmp.gt.s32.totalorder %v3968_v41, %v3973_v34 }
0x117c   : > { %v9135_v23 = vadd.f32 %v7127_v17, %v3413_v19  ;;  %8146 = vmatpush3.bf16.msra.mxu0 %v8143_v35 }
0x117e   : > { %7737 = vmatprep.mubr.msk.f32.mxu1 %vm679_vm8, %v9135_v23 }
0x117f   : > { %7738 = vmatmul.mubr.msk.f32.vlgmr.msra.gmra.mrb[30].mxu1 %vm679_vm8, %v9137_v24 }
0x1180   : > { %7760 = vmatpush3.msk.msra.mxu1 %vm509_vm0, %v352_v50  ;;  %7761 = vmatprep.mubr.msk.f32.mxu1 %vm495_vm5, %v3703_v25 }
0x1181   : > { %8149 = vmatprep.subr.msk.bf16.mxu1 %vm8845_vm4, %v8147_v26 }
0x1183   : > { %7762 = vmatmul.mubr.msk.f32.vlgmr.msra.gmra.mrb[32].mxu1 %vm495_vm5, %v3704_v29  ;;  %v3962_v29 = vadd.s32 24, %v8828_v1 }
0x1184   : > { %8152 = vmatpush3.bf16.msk.msra.mxu1 %vm8845_vm4, %v8147_v26  ;;  %7768 = vmatprep.mubr.msk.f32.mxu1 %vm588_vm7, %v3701_v42  ;;  %v3961_v42 = vadd.s32 16, %v8828_v1  ;;  %vm8736_vm4 = vmmov 0  }
0x1185   : > { %8154 = vmatprep.subr.bf16.mxu1 %v8153_v52  ;;  %v3994_v30 = vand.u32 15, %v3962_v29 }
0x1186   : > { %v3987_v31 = vand.u32 15, %v3961_v42 }
0x1187   : > { %vm4068_vm12 = vcmp.gt.s32.totalorder %v3968_v41, %v3994_v30 }
0x1188   : > { %vm4067_vm13 = vcmp.gt.s32.totalorder %v3968_v41, %v3987_v31 }
0x118b   : > { %7769 = vmatmul.mubr.msk.f32.vlgmr.msra.gmra.mrb[32].mxu1 %vm588_vm7, %v3702_v33 }
0x118c   : > { %8156 = vmatpush3.bf16.msra.mxu1 %v8153_v52  ;;  %v3963_v52 = vadd.s32 32, %v8828_v1 }
0x118d   : > { %8158 = vmatprep.subr.bf16.mxu1 %v8157_v38 }
0x1190   : > { %8160 = vmatpush3.bf16.msra.mxu1 %v8157_v38  ;;  %v3980_v38 = vand.u32 15, %v3960_v32 }
0x1192   : > { %vm4066_vm15 = vcmp.gt.s32.totalorder %v3968_v41, %v3980_v38 }
0x1252   : > { %v7739_v40 = vpop.f32.mrb[30].mxu1 }
0x1253   : > { %v3503_v43 = vadd.f32 %v7739_v40, %v7128_v39  ;;  %v3497_v59 = vpop.f32.mrb[31].mxu1  ;;  %v3965_v40 = vadd.s32 48, %v8828_v1 }
0x1254   : > { %v3498_v44 = vadd.f32 %v7128_v39, %v3497_v59 }
0x1255   : > { %v3507_v46 = vmax.f32 %v3503_v43, 0.0 }
0x1256   : > { %v3506_v45 = vmax.f32 %v3498_v44, 0.0 }
0x1258   : > { %7756 = vmatprep.mubr.msk.f32.mxu0 %vm2034_vm11, %v3506_v45 }
0x1259   : > { %7757 = vmatmul.mubr.msk.f32.vlgmr.msra.gmra.mrb[18].mxu0 %vm2034_vm11, %v3507_v46  ;;  %v4001_v46 = vand.u32 15, %v3963_v52 }
0x125b   : > { %vm4069_vm0 = vcmp.gt.s32.totalorder %v3968_v41, %v4001_v46 }
0x125e   : > { %v7770_v50 = vpop.f32.mrb[32].mxu1 }
0x125f   : > { %v3864_v53 = vpop.f32.mrb[33].mxu1  ;;  %v9168_v56 = vadd.f32 %v7770_v50, %v3672_v49  ;;  %v3966_v49 = vadd.s32 56, %v8828_v1  ;;  %v4008_v50 = vand.u32 15, %v3964_v0 }
0x1260   : > { %v9166_v54 = vadd.f32 %v3864_v53, %v3671_v47  ;;  %v4015_v53 = vand.u32 15, %v3965_v40 }
0x1261   : > { %vm4070_vm1 = vcmp.gt.s32.totalorder %v3968_v41, %v4008_v50 }
0x1262   : > { %7779 = vmatprep.mubr.msk.f32.mxu1 %vm679_vm8, %v9166_v54  ;;  %vm4071_vm2 = vcmp.gt.s32.totalorder %v3968_v41, %v4015_v53 }
0x1263   : > { %7780 = vmatmul.mubr.msk.f32.vlgmr.msra.gmra.mrb[34].mxu1 %vm679_vm8, %v9168_v56 }
0x132c   : > { %v9174_v57 = vpop.f32.mrb[18].mxu0 }
0x132d   : > { %v9176_v58 = vpop.f32.mrb[19].mxu0 }
0x1336   : > { %v7781_v61 = vpop.f32.mrb[34].mxu1 }
0x1337   : > { %v3957_v62 = vadd.f32 %v7781_v61, %v7144_v60  ;;  %v3951_v63 = vpop.f32.mrb[35].mxu1 }
0x1338   : > { %v3952_v2 = vadd.f32 %v7144_v60, %v3951_v63 }
0x133a   : > { %7786 = vmatprep.mubr.msk.f32.mxu0 %vm498_vm6, %v3952_v2  ;;  %v9179_v3 = vpack.i.bf16 %v3957_v62, %v3952_v2 }
0x133c   : > { %8439 = vrot.lane.b32.xlu1 %v9179_v3, %s8724_s11  ;;  %8434 = vrot.lane.b32.xlu0 %v9179_v3, %s8725_s12 }
0x1340   : > { %4164 = vrot.lane.b32.xlu1 %v3957_v62, %s8726_s13  ;;  %4162 = vrot.lane.b32.xlu0 %v3952_v2, %s8726_s13 }
0x1344   : > { %8449 = vrot.lane.b32.xlu1 %v9179_v3, %s8727_s14  ;;  %8444 = vrot.lane.b32.xlu0 %v9179_v3, %s8728_s15 }
0x1348   : > { %4255 = vrot.lane.b32.xlu1 %v3957_v62, %s8729_s16  ;;  %4253 = vrot.lane.b32.xlu0 %v3952_v2, %s8729_s16 }
0x134c   : > { %4346 = vrot.lane.b32.xlu1 %v3957_v62, %s8730_s17  ;;  %4344 = vrot.lane.b32.xlu0 %v3952_v2, %s8730_s17 }
0x13ae   : > { %v8440_v4 = vpop.permute.xlu1 %8439  ;;  %v8435_v5 = vpop.permute.xlu0 %8434 }
0x13af   : > { %v8442_v6 = vunpack.i.h.bf16 %v8440_v4  ;;  %v8441_v7 = vunpack.i.l.bf16 %v8440_v4  ;;  %v8437_v8 = vunpack.i.h.bf16 %v8435_v5  ;;  %v8436_v9 = vunpack.i.l.bf16 %v8435_v5 }
0x13b1   : > { %v8161_v11 = vpack.c.bf16 %v8442_v6, %v8441_v7  ;;  %v8167_v12 = vpack.c.bf16 %v8437_v8, %v8436_v9  ;;  %v4022_v7 = vand.u32 15, %v3966_v49 }
0x13b2   : > { %v4165_v13 = vpop.permute.xlu1 %4164  ;;  %v4163_v14 = vpop.permute.xlu0 %4162 }
0x13b3   : > { %8163 = vmatprep.subr.msk.bf16.mxu0 %vm8907_vm9, %v8161_v11  ;;  %8169 = vmatprep.subr.msk.bf16.mxu1 %vm8907_vm9, %v8167_v12  ;;  %vm4072_vm3 = vcmp.gt.s32.totalorder %v3968_v41, %v4022_v7  ;;  %v7131_v7 = vld [vmem:[#allocation2 + $0x2d8] ss:$0 sm:$0xff] }
0x13b4   : > { %7793 = vmatprep.mubr.msk.f32.mxu1 %vm498_vm6, %v4163_v14  ;;  %8166 = vmatpush3.bf16.xpose.msk.msra.mxu0 %vm8907_vm9, %v8161_v11 }
0x13b5   : > { %8172 = vmatpush3.bf16.xpose.msk.msra.mxu1 %vm8907_vm9, %v8167_v12 }
0x13b6   : > { %v8450_v15 = vpop.permute.xlu1 %8449  ;;  %v8445_v16 = vpop.permute.xlu0 %8444 }
0x13b7   : > { %v8452_v17 = vunpack.i.h.bf16 %v8450_v15  ;;  %v8451_v18 = vunpack.i.l.bf16 %v8450_v15  ;;  %v8447_v19 = vunpack.i.h.bf16 %v8445_v16  ;;  %v8446_v20 = vunpack.i.l.bf16 %v8445_v16 }
0x13b9   : > { %v8179_v21 = vpack.c.bf16 %v8452_v17, %v8451_v18  ;;  %v8173_v22 = vpack.c.bf16 %v8447_v19, %v8446_v20 }
0x13ba   : > { %v4254_v25 = vpop.permute.xlu0 %4253  ;;  %v4256_v26 = vpop.permute.xlu1 %4255 }
0x13bb   : > { %7787 = vmatmul.mubr.msk.f32.vlgmr.msra.gmra.mrb[20].mxu0 %vm498_vm6, %v3957_v62  ;;  %8175 = vmatprep.subr.msk.bf16.mxu0 %vm8907_vm9, %v8173_v22 }
0x13bc   : > { %7794 = vmatmul.mubr.msk.f32.vlgmr.msra.gmra.mrb[36].mxu1 %vm498_vm6, %v4165_v13  ;;  %8181 = vmatprep.subr.msk.bf16.mxu1 %vm8907_vm9, %v8179_v21 }
0x13bd   : > { %8178 = vmatpush3.bf16.xpose.msk.msra.mxu0 %vm8907_vm9, %v8173_v22  ;;  %7800 = vmatprep.mubr.msk.f32.mxu0 %vm498_vm6, %v4254_v25 }
0x13be   : > { %8184 = vmatpush3.bf16.xpose.msk.msra.mxu1 %vm8907_vm9, %v8179_v21  ;;  %v4345_v27 = vpop.permute.xlu0 %4344  ;;  %v4347_v28 = vpop.permute.xlu1 %4346 }
0x13bf   : > { %7807 = vmatprep.mubr.msk.f32.mxu1 %vm498_vm6, %v4345_v27 }
0x13c4   : > { %7801 = vmatmul.mubr.msk.f32.vlgmr.msra.gmra.mrb[22].mxu0 %vm498_vm6, %v4256_v26 }
0x13c5   : > { %7808 = vmatmul.mubr.msk.f32.vlgmr.msra.gmra.mrb[38].mxu1 %vm498_vm6, %v4347_v28 }
0x148e   : > { %v7788_v33 = vpop.f32.mrb[20].mxu0 }
0x148f   : > { %v7795_v48 = vpop.f32.mrb[36].mxu1  ;;  %v4153_v35 = vpop.f32.mrb[21].mxu0  ;;  %v4436_v44 = vmul.f32 0.35355338, %v7788_v33 }
0x1490   : > { %v4438_v36 = vmul.f32 0.35355338, %v7795_v48  ;;  %v4244_v51 = vpop.f32.mrb[37].mxu1  ;;  %v4435_v10 = vmul.f32 0.35355338, %v4153_v35 }
0x1491   : > { %v4437_v37 = vmul.f32 0.35355338, %v4244_v51  ;;  %v4444_v2 = vsel %vm4066_vm15, -1e+30, %v4436_v44 }
0x1492   : > { %v4446_v39 = vsel %vm4068_vm12, -1e+30, %v4438_v36  ;;  %v4443_v47 = vsel %vm4065_vm14, -1e+30, %v4435_v10  ;;  %v4454_v1 = vsel %vm1131_vm10, %v4444_v2, -inf }
0x1493   : > { %v4460_v43 = vsel %vm1131_vm10, %v4446_v39, -inf  ;;  %v4445_v59 = vsel %vm4067_vm13, -1e+30, %v4437_v37  ;;  %v4451_v63 = vsel %vm1131_vm10, %v4443_v47, -inf }
0x1494   : > { %4461 = vmax.xlane.f32.xlu1 %v4460_v43  ;;  %v4457_v45 = vsel %vm1131_vm10, %v4445_v59, -inf }
0x1495   : > { %4458 = vmax.xlane.f32.xlu0 %v4457_v45 }
0x1497   : > { %v7802_v60 = vpop.f32.mrb[22].mxu0 }
0x1498   : > { %v7809_v61 = vpop.f32.mrb[38].mxu1  ;;  %v4335_v62 = vpop.f32.mrb[23].mxu0  ;;  %v4440_v4 = vmul.f32 0.35355338, %v7802_v60 }
0x1499   : > { %v4439_v5 = vmul.f32 0.35355338, %v4335_v62  ;;  %v4426_v6 = vpop.f32.mrb[39].mxu1  ;;  %4452 = vmax.xlane.f32.xlu0 %v4451_v63  ;;  %v4442_v12 = vmul.f32 0.35355338, %v7809_v61 }
0x149a   : > { %v4441_v8 = vmul.f32 0.35355338, %v4426_v6  ;;  %v4448_v13 = vsel %vm4070_vm1, -1e+30, %v4440_v4 }
0x149b   : > { %v4447_v9 = vsel %vm4069_vm0, -1e+30, %v4439_v5  ;;  %v4466_v15 = vsel %vm1131_vm10, %v4448_v13, -inf  ;;  %v4450_v17 = vsel %vm4072_vm3, -1e+30, %v4442_v12 }
0x149c   : > { %v4463_v11 = vsel %vm1131_vm10, %v4447_v9, -inf  ;;  %v4449_v14 = vsel %vm4071_vm2, -1e+30, %v4441_v8  ;;  %v4472_v18 = vsel %vm1131_vm10, %v4450_v17, -inf  ;;  %v3585_v8 = vadd.f32 %v7131_v7, %v9176_v58 }
0x149d   : > { %4455 = vmax.xlane.f32.xlu0 %v4454_v1  ;;  %4464 = vmax.xlane.f32.xlu1 %v4463_v11  ;;  %v4469_v16 = vsel %vm1131_vm10, %v4449_v14, -inf  ;;  %v3590_v1 = vadd.f32 %v9174_v57, %v7131_v7 }
0x149f   : > { %v9271_v12 = vadd.f32 %v3590_v1, %v9137_v24 }
0x14a1   : > { %4467 = vmax.xlane.f32.xlu0 %v4466_v15  ;;  %4470 = vmax.xlane.f32.xlu1 %v4469_v16 }
0x14a5   : > { %4473 = vmax.xlane.f32.xlu0 %v4472_v18 }
0x14b2   : > { %8454 = vrot.lane.b32.xlu1 %v9179_v3, %s8731_s18 }
0x1521   : > { %v4462_v19 = vpop.xlane.xlu1 %4461 }
0x1522   : > { %v4478_v20 = vsub.f32 %v4446_v39, %v4462_v19  ;;  %v4459_v21 = vpop.xlane.xlu0 %4458 }
0x1523   : > { %v4477_v22 = vsub.f32 %v4445_v59, %v4459_v21 }
0x1524   : > { %v4489_v25 = vmul.f32 1.442695, %v4478_v20 }
0x1525   : > { %v4487_v26 = vmul.f32 1.442695, %v4477_v22 }
0x1526   : > { %8594 = vpow2.f32 %v4489_v25  ;;  %v4453_v27 = vpop.xlane.xlu0 %4452 }
0x1527   : > { %8596 = vpow2.f32 %v4487_v26  ;;  %v4475_v28 = vsub.f32 %v4443_v47, %v4453_v27 }
0x1529   : > { %v4483_v29 = vmul.f32 1.442695, %v4475_v28 }
0x152a   : > { %v4456_v42 = vpop.xlane.xlu0 %4455  ;;  %v4465_v41 = vpop.xlane.xlu1 %4464 }
0x152b   : > { %8598 = vpow2.f32 %v4483_v29  ;;  %v4476_v30 = vsub.f32 %v4444_v2, %v4456_v42  ;;  %v4479_v31 = vsub.f32 %v4447_v9, %v4465_v41  ;;  %v9265_v9 = vadd.f32 %v3585_v8, %v9135_v23 }
0x152d   : > { %v4485_v32 = vmul.f32 1.442695, %v4476_v30  ;;  %v4491_v33 = vmul.f32 1.442695, %v4479_v31  ;;  %v3595_v11 = vsel %vm679_vm8, %v9265_v9, 0.0 }
0x152e   : > { %v4468_v34 = vpop.xlane.xlu0 %4467  ;;  %v4471_v48 = vpop.xlane.xlu1 %4470 }
0x152f   : > { %8600 = vpow2.f32 %v4485_v32  ;;  %v4480_v35 = vsub.f32 %v4448_v13, %v4468_v34  ;;  %v4481_v10 = vsub.f32 %v4449_v14, %v4471_v48  ;;  %v3598_v13 = vsel %vm679_vm8, %v9271_v12, 0.0 }
0x1530   : > { %v9237_v36 = vpop.eup %8594  ;;  %8602 = vpow2.f32 %v4491_v33 }
0x1531   : > { %v8597_v51 = vpop.eup %8596  ;;  %v4493_v52 = vmul.f32 1.442695, %v4480_v35  ;;  %v4508_v37 = vsel %vm1131_vm10, %v9237_v36, 0.0  ;;  %v4495_v45 = vmul.f32 1.442695, %v4481_v10 }
0x1532   : > { %4509 = vadd.xlane.f32.xlu0 %v4508_v37  ;;  %v4474_v38 = vpop.xlane.xlu0 %4473  ;;  %v8455_v39 = vpop.permute.xlu1 %8454  ;;  %v4505_v0 = vsel %vm1131_vm10, %v8597_v51, 0.0 }
0x1533   : > { %8604 = vpow2.f32 %v4493_v52  ;;  %v4482_v40 = vsub.f32 %v4450_v17, %v4474_v38  ;;  %v8457_v43 = vunpack.i.h.bf16 %v8455_v39  ;;  %v8456_v59 = vunpack.i.l.bf16 %v8455_v39  ;;  %4506 = vadd.xlane.f32.xlu1 %v4505_v0 }
0x1535   : > { %v8599_v44 = vpop.eup %8598  ;;  %v4497_v46 = vmul.f32 1.442695, %v4482_v40  ;;  %v8189_v47 = vpack.c.bf16 %v8457_v43, %v8456_v59 }
0x1536   : > { %v4499_v49 = vsel %vm1131_vm10, %v8599_v44, 0.0 }
0x1537   : > { %8606 = vpow2.f32 %v4497_v46  ;;  %4500 = vadd.xlane.f32.xlu1 %v4499_v49  ;;  %8190 = vmatprep.subr.bf16.mxu1 %v8189_v47 }
0x1538   : > { %8192 = vmatpush3.bf16.msra.mxu1 %v8189_v47  ;;  %8608 = vpow2.f32 %v4495_v45 }
0x1539   : > { %v9243_v50 = vpop.eup %8600 }
0x153a   : > { %v8603_v53 = vpop.eup %8602  ;;  %v4502_v60 = vsel %vm1131_vm10, %v9243_v50, 0.0 }
0x153b   : > { %4503 = vadd.xlane.f32.xlu0 %v4502_v60  ;;  %v4511_v61 = vsel %vm1131_vm10, %v8603_v53, 0.0  ;;  %v388_v60 = vld [vmem:[#allocation2 + $0x120] sm:$0xff] }
0x153c   : > { %4512 = vadd.xlane.f32.xlu1 %v4511_v61  ;;  %v387_v61 = vld [vmem:[#allocation2 + $0x118] sm:$0xff] }
0x153d   : > { %v8605_v62 = vpop.eup %8604 }
0x153e   : > { %v4514_v63 = vsel %vm1131_vm10, %v8605_v62, 0.0 }
0x153f   : > { %4515 = vadd.xlane.f32.xlu0 %v4514_v63 }
0x1541   : > { %v9249_v2 = vpop.eup %8606 }
0x1542   : > { %v4520_v4 = vsel %vm1131_vm10, %v9249_v2, 0.0  ;;  %v9253_v5 = vpop.eup %8608 }
0x1543   : > { %4521 = vadd.xlane.f32.xlu0 %v4520_v4  ;;  %v4517_v6 = vsel %vm1131_vm10, %v9253_v5, 0.0 }
0x1547   : > { %4518 = vadd.xlane.f32.xlu0 %v4517_v6 }
0x154d   : > { %8464 = vrot.lane.b32.xlu1 %v9179_v3, %s8732_s20 }
0x1551   : > { %8469 = vrot.lane.b32.xlu1 %v9179_v3, %s8733_s21 }
0x155d   : > { %8459 = vrot.lane.b32.xlu0 %v9179_v3, %s8734_s22 }
0x1575   : > { %3596 = vadd.xlane.f32.xlu1 %v3595_v11  ;;  %v7134_v11 = vld [vmem:[#allocation2 + $0x338] ss:$0 sm:$0xff] }
0x157c   : > { %3599 = vadd.xlane.f32.xlu0 %v3598_v13  ;;  %v7135_v13 = vld [vmem:[#allocation2 + $0x330] ss:$0 sm:$0xff] }
0x15bf   : > { %v4510_v3 = vpop.xlane.xlu0 %4509 }
0x15c0   : > { %8610 = vrcp.f32 %v4510_v3  ;;  %v4507_v14 = vpop.xlane.xlu1 %4506 }
0x15c1   : > { %8612 = vrcp.f32 %v4507_v14 }
0x15c4   : > { %v4501_v58 = vpop.xlane.xlu1 %4500 }
0x15c5   : > { %8614 = vrcp.f32 %v4501_v58 }
0x15c8   : > { %v4504_v23 = vpop.xlane.xlu0 %4503 }
0x15c9   : > { %v4513_v15 = vpop.xlane.xlu1 %4512 }
0x15ca   : > { %v8611_v57 = vpop.eup %8610  ;;  %8616 = vrcp.f32 %v4513_v15 }
0x15cb   : > { %v8613_v16 = vpop.eup %8612  ;;  %v4534_v24 = vmul.f32 %v8611_v57, %v9237_v36 }
0x15cc   : > { %v4516_v17 = vpop.xlane.xlu0 %4515  ;;  %v4533_v18 = vmul.f32 %v8613_v16, %v8597_v51 }
0x15cd   : > { %8618 = vrcp.f32 %v4516_v17  ;;  %v8465_v19 = vpop.permute.xlu1 %8464 }
0x15ce   : > { %v8467_v20 = vunpack.i.h.bf16 %v8465_v19  ;;  %v8466_v21 = vunpack.i.l.bf16 %v8465_v19  ;;  %7821 = vmatprep.mubr.msk.f32.mxu1 %vm1131_vm10, %v4533_v18  ;;  %8620 = vrcp.f32 %v4504_v23 }
0x15cf   : > { %v8615_v22 = vpop.eup %8614  ;;  %7822 = vmatmul.mubr.msk.f32.vlgmr.msra.gmra.mrb[40].mxu1 %vm1131_vm10, %v4534_v24 }
0x15d0   : > { %v8193_v25 = vpack.c.bf16 %v8467_v20, %v8466_v21  ;;  %v4522_v26 = vpop.xlane.xlu0 %4521  ;;  %v4531_v27 = vmul.f32 %v8615_v22, %v8599_v44  ;;  %v390_v22 = vld [vmem:[#allocation2 + $0x130] sm:$0xff] }
0x15d1   : > { %v8470_v28 = vpop.permute.xlu1 %8469  ;;  %8622 = vrcp.f32 %v4522_v26 }
0x15d2   : > { %v8472_v29 = vunpack.i.h.bf16 %v8470_v28  ;;  %v8471_v42 = vunpack.i.l.bf16 %v8470_v28  ;;  %8194 = vmatprep.subr.bf16.mxu1 %v8193_v25  ;;  %7814 = vmatprep.mubr.msk.f32.mxu0 %vm1131_vm10, %v4531_v27 }
0x15d3   : > { %8196 = vmatpush3.bf16.msra.mxu1 %v8193_v25 }
0x15d4   : > { %v8617_v41 = vpop.eup %8616  ;;  %v8197_v30 = vpack.c.bf16 %v8472_v29, %v8471_v42  ;;  %v4519_v31 = vpop.xlane.xlu0 %4518  ;;  %v7179_v42 = vld [vmem:[#allocation2 + $0x108] ss:$0 sm:$0xff] }
0x15d5   : > { %8624 = vrcp.f32 %v4519_v31  ;;  %v4535_v32 = vmul.f32 %v8617_v41, %v8603_v53 }
0x15d6   : > { %8198 = vmatprep.subr.bf16.mxu1 %v8197_v30 }
0x15d7   : > { %v8619_v33 = vpop.eup %8618  ;;  %7838 = vmatprep.mubr.msk.f32.mxu1 %vm1131_vm10, %v4535_v32 }
0x15d8   : > { %v4536_v34 = vmul.f32 %v8619_v33, %v8605_v62  ;;  %v8460_v48 = vpop.permute.xlu0 %8459  ;;  %v8621_v52 = vpop.eup %8620 }
0x15d9   : > { %v8462_v35 = vunpack.i.h.bf16 %v8460_v48  ;;  %v8461_v36 = vunpack.i.l.bf16 %v8460_v48  ;;  %v4532_v38 = vmul.f32 %v8621_v52, %v9243_v50 }
0x15da   : > { %7839 = vmatmul.mubr.msk.f32.vlgmr.msra.gmra.mrb[42].mxu1 %vm1131_vm10, %v4536_v34 }
0x15db   : > { %v8185_v51 = vpack.c.bf16 %v8462_v35, %v8461_v36  ;;  %8200 = vmatpush3.bf16.msra.mxu1 %v8197_v30  ;;  %v8623_v10 = vpop.eup %8622 }
0x15dc   : > { %v4538_v0 = vmul.f32 %v8623_v10, %v9249_v2 }
0x15dd   : > { %8186 = vmatprep.subr.bf16.mxu0 %v8185_v51 }
0x15de   : > { %8188 = vmatpush3.bf16.msra.mxu0 %v8185_v51 }
0x15df   : > { %v8625_v37 = vpop.eup %8624  ;;  %7824 = vmatprep.subr.mxu0 %v388_v60 }
0x15e0   : > { %v4537_v39 = vmul.f32 %v8625_v37, %v9253_v5 }
0x15e1   : > { %7815 = vmatmul.mubr.msk.f32.vlgmr.msra.gmra.mrb[24].mxu0 %vm1131_vm10, %v4532_v38 }
0x15e2   : > { %7850 = vmatprep.mubr.msk.f32.mxu1 %vm1131_vm10, %v4537_v39  ;;  %7825 = vmatpush3.msra.mxu0 %v388_v60 }
0x15e3   : > { %7851 = vmatmul.mubr.msk.f32.vlgmr.msra.gmra.mrb[44].mxu1 %vm1131_vm10, %v4538_v0  ;;  %7829 = vmatprep.subr.mxu0 %v387_v61 }
0x1602   : > { %v3597_v40 = vpop.xlane.xlu1 %3596 }
0x1603   : > { %v3601_v43 = vmul.f32 0.03125, %v3597_v40 }
0x1605   : > { %v3603_v59 = vsub.f32 %v9265_v9, %v3601_v43  ;;  %v389_v9 = vld [vmem:[#allocation2 + $0x128] sm:$0xff] }
0x1607   : > { %v3605_v44 = vmul.f32 %v3603_v59, %v3603_v59 }
0x1609   : > { %v3600_v45 = vpop.xlane.xlu0 %3599  ;;  %v3607_v46 = vsel %vm679_vm8, %v3605_v44, 0.0 }
0x160a   : > { %v3602_v47 = vmul.f32 0.03125, %v3600_v45  ;;  %3608 = vadd.xlane.f32.xlu1 %v3607_v46 }
0x160c   : > { %v3604_v49 = vsub.f32 %v9271_v12, %v3602_v47 }
0x160e   : > { %v3606_v50 = vmul.f32 %v3604_v49, %v3604_v49 }
0x1610   : > { %v3610_v53 = vsel %vm679_vm8, %v3606_v50, 0.0 }
0x1611   : > { %3611 = vadd.xlane.f32.xlu0 %v3610_v53 }
0x1697   : > { %v3609_v62 = vpop.xlane.xlu1 %3608 }
0x1698   : > { %v3613_v63 = vmul.f32 0.03125, %v3609_v62 }
0x169a   : > { %v3615_v2 = vadd.f32 1e-05, %v3613_v63  ;;  %v7136_v63 = vld [vmem:[#allocation2 + $0x348] ss:$0 sm:$0xff] }
0x169c   : > { %8626 = vrsqrt.f32 %v3615_v2  ;;  %v375_v2 = vld [vmem:[#allocation2 + $0xb8] sm:$0xff] }
0x169e   : > { %v3612_v4 = vpop.xlane.xlu0 %3611 }
0x169f   : > { %v3614_v5 = vmul.f32 0.03125, %v3612_v4  ;;  %v376_v4 = vld [vmem:[#allocation2 + $0xc0] sm:$0xff] }
0x16a1   : > { %v3616_v6 = vadd.f32 1e-05, %v3614_v5 }
0x16a2   : > { %v7823_v7 = vpop.f32.mrb[40].mxu1 }
0x16a3   : > { %8628 = vrsqrt.f32 %v3616_v6  ;;  %v4704_v8 = vpop.f32.mrb[41].mxu1 }
0x16a4   : > { %7826 = vmatprep.mubr.msk.f32.mxu0 %vm498_vm6, %v4704_v8 }
0x16a5   : > { %7827 = vmatmul.mubr.msk.f32.vlgmr.msra.gmra.mrb[26].mxu0 %vm498_vm6, %v7823_v7  ;;  %v7137_v7 = vld [vmem:[#allocation2 + $0x340] ss:$0 sm:$0xff] }
0x16a6   : > { %v8627_v1 = vpop.eup %8626  ;;  %7830 = vmatpush3.msra.mxu0 %v387_v61 }
0x16a7   : > { %v3619_v12 = vmul.f32 %v8627_v1, %v3603_v59  ;;  %7841 = vmatprep.subr.mxu0 %v389_v9  ;;  %v8473_v1 = vpack.i.bf16 %v376_v4, %v375_v2 }
0x16a9   : > { %v3625_v3 = vmul.f32 %v7134_v11, %v3619_v12  ;;  %v377_v12 = vld [vmem:[#allocation2 + $0xc8] sm:$0xff] }
0x16ab   : > { %v3631_v14 = vadd.f32 %v7135_v13, %v3625_v3 }
0x16ad   : > { %v8629_v58 = vpop.eup %8628  ;;  %v3633_v23 = vsel %vm679_vm8, %v3631_v14, 0.0  ;;  %v7840_v15 = vpop.f32.mrb[42].mxu1 }
0x16ae   : > { %3634 = vadd.xlane.f32.xlu1 %v3633_v23  ;;  %v4953_v57 = vpop.f32.mrb[43].mxu1  ;;  %v3620_v16 = vmul.f32 %v8629_v58, %v3604_v49  ;;  %v8201_v23 = vpack.c.bf16 %v376_v4, %v375_v2 }
0x16b0   : > { %v3626_v17 = vmul.f32 %v7134_v11, %v3620_v16  ;;  %8202 = vmatprep.subr.bf16.mxu1 %v8201_v23 }
0x16b1   : > { %8204 = vmatpush3.bf16.msra.mxu1 %v8201_v23 }
0x16b2   : > { %v3632_v18 = vadd.f32 %v7135_v13, %v3626_v17  ;;  %v378_v13 = vld [vmem:[#allocation2 + $0xd0] sm:$0xff] }
0x16b3   : > { %v8478_v58 = vpack.i.bf16 %v378_v13, %v377_v12 }
0x16b4   : > { %v7816_v24 = vpop.f32.mrb[24].mxu0  ;;  %v3636_v19 = vsel %vm679_vm8, %v3632_v18, 0.0 }
0x16b5   : > { %3637 = vadd.xlane.f32.xlu0 %v3636_v19  ;;  %v4617_v20 = vpop.f32.mrb[25].mxu0 }
0x16b6   : > { %7831 = vmatprep.mubr.msk.f32.mxu0 %vm498_vm6, %v4617_v20  ;;  %v7852_v21 = vpop.f32.mrb[44].mxu1 }
0x16b7   : > { %7832 = vmatmul.mubr.msk.f32.vlgmr.msra.gmra.mrb[26].mxu0 %vm498_vm6, %v7816_v24  ;;  %v5123_v25 = vpop.f32.mrb[45].mxu1 }
0x16b8   : > { %7842 = vmatpush3.msra.mxu0 %v389_v9  ;;  %7843 = vmatprep.mubr.msk.f32.mxu0 %vm498_vm6, %v4953_v57  ;;  %v7182_v57 = vld [vmem:[#allocation2 + $0x90] ss:$0 sm:$0xff] }
0x16b9   : > { %7853 = vmatprep.subr.mxu0 %v390_v22 }
0x16bf   : > { %7844 = vmatmul.mubr.msk.f32.vlgmr.msra.gmra.mrb[26].mxu0 %vm498_vm6, %v7840_v15  ;;  %v8205_v15 = vpack.c.bf16 %v378_v13, %v377_v12 }
0x16c0   : > { %7854 = vmatpush3.msra.mxu0 %v390_v22  ;;  %7855 = vmatprep.mubr.msk.f32.mxu0 %vm498_vm6, %v5123_v25 }
0x16c1   : > { %8206 = vmatprep.subr.bf16.mxu1 %v8205_v15 }
0x16c2   : > { %8208 = vmatpush3.bf16.msra.mxu1 %v8205_v15 }
0x16c7   : > { %7856 = vmatmul.mubr.msk.f32.vlgmr.msra.gmra.mrb[26].mxu0 %vm498_vm6, %v7852_v21 }
0x173b   : > { %v3635_v27 = vpop.xlane.xlu1 %3634 }
0x173c   : > { %v3639_v29 = vmul.f32 0.03125, %v3635_v27 }
0x173e   : > { %v3641_v33 = vsub.f32 %v3631_v14, %v3639_v29 }
0x1740   : > { %v3643_v10 = vmul.f32 %v3641_v33, %v3641_v33 }
0x1742   : > { %v3638_v26 = vpop.xlane.xlu0 %3637  ;;  %v3645_v38 = vsel %vm679_vm8, %v3643_v10, 0.0 }
0x1743   : > { %v3640_v28 = vmul.f32 0.03125, %v3638_v26 }
0x1745   : > { %v3642_v30 = vsub.f32 %v3632_v18, %v3640_v28 }
0x1747   : > { %v3644_v51 = vmul.f32 %v3642_v30, %v3642_v30 }
0x1749   : > { %v3648_v37 = vsel %vm679_vm8, %v3644_v51, 0.0 }
0x179a   : > { %v7857_v41 = vpop.f32.mrb[26].mxu0 }
0x179b   : > { %v5220_v31 = vadd.f32 %v7857_v41, %v7179_v42  ;;  %v5204_v32 = vpop.f32.mrb[27].mxu0 }
0x179c   : > { %v5219_v34 = vadd.f32 %v7179_v42, %v5204_v32 }
0x179d   : > { %v5222_v48 = vadd.f32 %v5220_v31, %v9168_v56 }
0x179e   : > { %v5221_v35 = vadd.f32 %v5219_v34, %v9166_v54  ;;  %v7181_v34 = vld [vmem:[#allocation2 + $0xd8] ss:$0 sm:$0xff] }
0x179f   : > { %v5226_v36 = vsel %vm679_vm8, %v5222_v48, 0.0 }
0x17a0   : > { %5227 = vadd.xlane.f32.xlu0 %v5226_v36  ;;  %v5223_v52 = vsel %vm679_vm8, %v5221_v35, 0.0 }
0x17a1   : > { %5224 = vadd.xlane.f32.xlu1 %v5223_v52 }
0x17a4   : > { %3649 = vadd.xlane.f32.xlu0 %v3648_v37 }
0x17a5   : > { %3646 = vadd.xlane.f32.xlu1 %v3645_v38 }
0x182d   : > { %v5228_v39 = vpop.xlane.xlu0 %5227 }
0x182e   : > { %v5230_v0 = vmul.f32 0.03125, %v5228_v39  ;;  %v5225_v40 = vpop.xlane.xlu1 %5224 }
0x182f   : > { %v5229_v56 = vmul.f32 0.03125, %v5225_v40 }
0x1830   : > { %v9307_v43 = vsub.f32 %v5222_v48, %v5230_v0 }
0x1831   : > { %v9309_v54 = vsub.f32 %v5221_v35, %v5229_v56  ;;  %v3650_v59 = vpop.xlane.xlu0 %3649 }
0x1832   : > { %v3652_v44 = vmul.f32 0.03125, %v3650_v59  ;;  %v3647_v45 = vpop.xlane.xlu1 %3646  ;;  %v5234_v46 = vmul.f32 %v9307_v43, %v9307_v43 }
0x1833   : > { %v3651_v47 = vmul.f32 0.03125, %v3647_v45  ;;  %v5233_v49 = vmul.f32 %v9309_v54, %v9309_v54 }
0x1834   : > { %v3654_v50 = vadd.f32 1e-05, %v3652_v44  ;;  %v5238_v53 = vsel %vm679_vm8, %v5234_v46, 0.0 }
0x1835   : > { %v3653_v60 = vadd.f32 1e-05, %v3651_v47  ;;  %5239 = vadd.xlane.f32.xlu0 %v5238_v53  ;;  %v5235_v61 = vsel %vm679_vm8, %v5233_v49, 0.0 }
0x1836   : > { %8630 = vrsqrt.f32 %v3654_v50  ;;  %5236 = vadd.xlane.f32.xlu1 %v5235_v61 }
0x1837   : > { %8632 = vrsqrt.f32 %v3653_v60 }
0x1840   : > { %v8631_v62 = vpop.eup %8630 }
0x1841   : > { %v8633_v5 = vpop.eup %8632  ;;  %v3658_v6 = vmul.f32 %v8631_v62, %v3642_v30  ;;  %v7180_v30 = vld [vmem:[#allocation2 + $0xe0] ss:$0 sm:$0xff] }
0x1842   : > { %v3657_v8 = vmul.f32 %v8633_v5, %v3641_v33 }
0x1843   : > { %v3664_v9 = vmul.f32 %v7136_v63, %v3658_v6 }
0x1844   : > { %v3663_v11 = vmul.f32 %v7136_v63, %v3657_v8 }
0x1845   : > { %v3670_v3 = vadd.f32 %v7137_v7, %v3664_v9 }
0x1846   : > { %v3669_v14 = vadd.f32 %v7137_v7, %v3663_v11 }
0x1847   : > { %8474 = vrot.lane.b32.xlu1 %v8473_v1, %s8724_s11 }
0x1848   : > { %7877 = vmatprep.mubr.msk.f32.mxu0 %vm679_vm8, %v3669_v14 }
0x184b   : > { %8479 = vrot.lane.b32.xlu0 %v8478_v58, %s8724_s11  ;;  %5363 = vrot.lane.b32.xlu1 %v7182_v57, %s8724_s11 }
0x18c2   : > { %v5240_v16 = vpop.xlane.xlu0 %5239 }
0x18c3   : > { %v5242_v17 = vmul.f32 0.03125, %v5240_v16  ;;  %v5237_v18 = vpop.xlane.xlu1 %5236 }
0x18c4   : > { %v5241_v24 = vmul.f32 0.03125, %v5237_v18 }
0x18c5   : > { %v5244_v19 = vadd.f32 1e-05, %v5242_v17 }
0x18c6   : > { %v5243_v20 = vadd.f32 1e-05, %v5241_v24  ;;  %v8480_v21 = vpop.permute.xlu0 %8479 }
0x18c7   : > { %8634 = vrsqrt.f32 %v5244_v19  ;;  %v8475_v22 = vpop.permute.xlu1 %8474  ;;  %v8482_v25 = vunpack.i.h.bf16 %v8480_v21  ;;  %v8481_v26 = vunpack.i.l.bf16 %v8480_v21 }
0x18c8   : > { %8636 = vrsqrt.f32 %v5243_v20  ;;  %v8477_v27 = vunpack.i.h.bf16 %v8475_v22  ;;  %v8476_v28 = vunpack.i.l.bf16 %v8475_v22 }
0x18c9   : > { %v8213_v42 = vpack.c.bf16 %v8482_v25, %v8481_v26 }
0x18ca   : > { %v8209_v29 = vpack.c.bf16 %v8477_v27, %v8476_v28 }
0x18cb   : > { %v5364_v52 = vpop.permute.xlu1 %5363 }
0x18cc   : > { %8210 = vmatprep.subr.bf16.mxu0 %v8209_v29 }
0x18cd   : > { %8212 = vmatpush3.bf16.msra.mxu0 %v8209_v29 }
0x18ce   : > { %8214 = vmatprep.subr.bf16.mxu0 %v8213_v42 }
0x18d1   : > { %v8635_v41 = vpop.eup %8634  ;;  %8216 = vmatpush3.bf16.msra.mxu0 %v8213_v42 }
0x18d2   : > { %v8637_v31 = vpop.eup %8636  ;;  %v5248_v32 = vmul.f32 %v8635_v41, %v9307_v43 }
0x18d3   : > { %v5247_v33 = vmul.f32 %v8637_v31, %v9309_v54 }
0x18d4   : > { %7878 = vmatmul.mubr.msk.f32.vlgmr.msra.gmra.mrb[28].mxu0 %vm679_vm8, %v3670_v3  ;;  %v5254_v48 = vmul.f32 %v7180_v30, %v5248_v32 }
0x18d5   : > { %v5253_v35 = vmul.f32 %v7180_v30, %v5247_v33 }
0x18d6   : > { %v9326_v51 = vadd.f32 %v7181_v34, %v5254_v48 }
0x18d7   : > { %v9324_v36 = vadd.f32 %v7181_v34, %v5253_v35 }
0x18d9   : > { %7866 = vmatprep.mubr.msk.f32.mxu1 %vm679_vm8, %v9324_v36 }
0x18da   : > { %7867 = vmatmul.mubr.msk.f32.vlgmr.msra.gmra.mrb[46].mxu1 %vm679_vm8, %v9326_v51 }
0x19a7   : > { %v7879_v10 = vpop.f32.mrb[28].mxu0 }
0x19a8   : > { %v5444_v37 = vadd.f32 %v7879_v10, %v5364_v52  ;;  %v5438_v38 = vpop.f32.mrb[29].mxu0 }
0x19a9   : > { %v5439_v39 = vadd.f32 %v5438_v38, %v5364_v52 }
0x19ab   : > { %v9332_v0 = vpack.i.bf16 %v5444_v37, %v5439_v39  ;;  %v8217_v40 = vpack.c.bf16 %v5444_v37, %v5439_v39 }
0x19ad   : > { %v7868_v56 = vpop.f32.mrb[46].mxu1  ;;  %8484 = vrot.lane.b32.xlu1 %v9332_v0, %s8726_s13  ;;  %8219 = vmatprep.subr.msk.bf16.mxu1 %vm8907_vm9, %v8217_v40 }
0x19ae   : > { %v5343_v43 = vadd.f32 %v7868_v56, %v7182_v57  ;;  %v5337_v54 = vpop.f32.mrb[47].mxu1  ;;  %8222 = vmatpush3.bf16.xpose.msk.msra.mxu1 %vm8907_vm9, %v8217_v40 }
0x19af   : > { %v5338_v59 = vadd.f32 %v7182_v57, %v5337_v54 }
0x19b1   : > { %5534 = vrot.lane.b32.xlu0 %v5338_v59, %s8726_s13  ;;  %7884 = vmatprep.mubr.msk.f32.mxu1 %vm498_vm6, %v5338_v59 }
0x19b2   : > { %5536 = vrot.lane.b32.xlu1 %v5343_v43, %s8726_s13 }
0x19b5   : > { %8489 = vrot.lane.b32.xlu0 %v9332_v0, %s8729_s16  ;;  %7885 = vmatmul.mubr.msk.f32.vlgmr.msra.gmra.mrb[48].mxu1 %vm498_vm6, %v5343_v43 }
0x19b6   : > { %8494 = vrot.lane.b32.xlu1 %v9332_v0, %s8730_s17 }
0x19b9   : > { %5625 = vrot.lane.b32.xlu0 %v5338_v59, %s8729_s16 }
0x19ba   : > { %5627 = vrot.lane.b32.xlu1 %v5343_v43, %s8729_s16 }
0x19bd   : > { %5716 = vrot.lane.b32.xlu0 %v5338_v59, %s8730_s17 }
0x19be   : > { %5718 = vrot.lane.b32.xlu1 %v5343_v43, %s8730_s17 }
0x1a1f   : > { %v8485_v44 = vpop.permute.xlu1 %8484 }
0x1a20   : > { %v8487_v45 = vunpack.i.h.bf16 %v8485_v44  ;;  %v8486_v46 = vunpack.i.l.bf16 %v8485_v44 }
0x1a22   : > { %v8223_v47 = vpack.c.bf16 %v8487_v45, %v8486_v46 }
0x1a23   : > { %v5535_v49 = vpop.permute.xlu0 %5534 }
0x1a24   : > { %v5537_v50 = vpop.permute.xlu1 %5536  ;;  %8225 = vmatprep.subr.msk.bf16.mxu0 %vm8907_vm9, %v8223_v47  ;;  %7891 = vmatprep.mubr.msk.f32.mxu0 %vm498_vm6, %v5535_v49 }
0x1a25   : > { %8228 = vmatpush3.bf16.xpose.msk.msra.mxu0 %vm8907_vm9, %v8223_v47 }
0x1a27   : > { %v8490_v53 = vpop.permute.xlu0 %8489 }
0x1a28   : > { %v8492_v60 = vunpack.i.h.bf16 %v8490_v53  ;;  %v8491_v61 = vunpack.i.l.bf16 %v8490_v53  ;;  %v8495_v62 = vpop.permute.xlu1 %8494 }
0x1a29   : > { %v8497_v63 = vunpack.i.h.bf16 %v8495_v62  ;;  %v8496_v2 = vunpack.i.l.bf16 %v8495_v62 }
0x1a2a   : > { %v8229_v4 = vpack.c.bf16 %v8492_v60, %v8491_v61 }
0x1a2b   : > { %v8235_v5 = vpack.c.bf16 %v8497_v63, %v8496_v2  ;;  %v5626_v6 = vpop.permute.xlu0 %5625 }
0x1a2c   : > { %7892 = vmatmul.mubr.msk.f32.vlgmr.msra.gmra.mrb[30].mxu0 %vm498_vm6, %v5537_v50  ;;  %8231 = vmatprep.subr.msk.bf16.mxu1 %vm8907_vm9, %v8229_v4  ;;  %v5628_v7 = vpop.permute.xlu1 %5627 }
0x1a2d   : > { %7898 = vmatprep.mubr.msk.f32.mxu1 %vm498_vm6, %v5626_v6  ;;  %8237 = vmatprep.subr.msk.bf16.mxu0 %vm8907_vm9, %v8235_v5 }
0x1a2e   : > { %8234 = vmatpush3.bf16.xpose.msk.msra.mxu1 %vm8907_vm9, %v8229_v4  ;;  %8240 = vmatpush3.bf16.xpose.msk.msra.mxu0 %vm8907_vm9, %v8235_v5 }
0x1a2f   : > { %v5717_v8 = vpop.permute.xlu0 %5716 }
0x1a30   : > { %7905 = vmatprep.mubr.msk.f32.mxu0 %vm498_vm6, %v5717_v8  ;;  %v5719_v9 = vpop.permute.xlu1 %5718 }
0x1a35   : > { %7899 = vmatmul.mubr.msk.f32.vlgmr.msra.gmra.mrb[50].mxu1 %vm498_vm6, %v5628_v7  ;;  %7906 = vmatmul.mubr.msk.f32.vlgmr.msra.gmra.mrb[32].mxu0 %vm498_vm6, %v5719_v9 }
0x1a88   : > { %v7886_v1 = vpop.f32.mrb[48].mxu1 }
0x1a89   : > { %v5808_v11 = vmul.f32 0.35355338, %v7886_v1  ;;  %v5525_v12 = vpop.f32.mrb[49].mxu1 }
0x1a8a   : > { %v5807_v13 = vmul.f32 0.35355338, %v5525_v12 }
0x1a8b   : > { %v5818_v3 = vsel %vm1131_vm10, %v5808_v11, -inf }
0x1a8c   : > { %5819 = vmax.xlane.f32.xlu1 %v5818_v3  ;;  %v5815_v14 = vsel %vm1131_vm10, %v5807_v13, -inf }
0x1a8d   : > { %5816 = vmax.xlane.f32.xlu0 %v5815_v14 }
0x1aff   : > { %v7893_v55 = vpop.f32.mrb[30].mxu0 }
0x1b00   : > { %v5616_v58 = vpop.f32.mrb[31].mxu0  ;;  %v5810_v15 = vmul.f32 0.35355338, %v7893_v55 }
0x1b01   : > { %v5809_v23 = vmul.f32 0.35355338, %v5616_v58 }
0x1b02   : > { %v5824_v16 = vsel %vm1131_vm10, %v5810_v15, -inf }
0x1b03   : > { %v5821_v57 = vsel %vm1131_vm10, %v5809_v23, -inf }
0x1b04   : > { %5822 = vmax.xlane.f32.xlu0 %v5821_v57 }
0x1b08   : > { %v7900_v17 = vpop.f32.mrb[50].mxu1  ;;  %v7907_v18 = vpop.f32.mrb[32].mxu0  ;;  %5825 = vmax.xlane.f32.xlu0 %v5824_v16 }
0x1b09   : > { %v9374_v24 = vmul.f32 0.35355338, %v7900_v17  ;;  %v5798_v19 = vpop.f32.mrb[33].mxu0  ;;  %v5707_v20 = vpop.f32.mrb[51].mxu1  ;;  %v9376_v22 = vmul.f32 0.35355338, %v7907_v18 }
0x1b0a   : > { %v5811_v21 = vmul.f32 0.35355338, %v5707_v20  ;;  %v5813_v26 = vmul.f32 0.35355338, %v5798_v19 }
0x1b0b   : > { %v5830_v25 = vsel %vm1131_vm10, %v9374_v24, -inf  ;;  %v5836_v28 = vsel %vm1131_vm10, %v9376_v22, -inf }
0x1b0c   : > { %5831 = vmax.xlane.f32.xlu0 %v5830_v25  ;;  %v5827_v27 = vsel %vm1131_vm10, %v5811_v21, -inf  ;;  %v5833_v29 = vsel %vm1131_vm10, %v5813_v26, -inf }
0x1b0d   : > { %5828 = vmax.xlane.f32.xlu1 %v5827_v27 }
0x1b10   : > { %5837 = vmax.xlane.f32.xlu0 %v5836_v28 }
0x1b11   : > { %5834 = vmax.xlane.f32.xlu1 %v5833_v29 }
0x1b19   : > { %v5820_v42 = vpop.xlane.xlu1 %5819 }
0x1b1a   : > { %v5840_v41 = vsub.f32 %v5808_v11, %v5820_v42  ;;  %v5817_v33 = vpop.xlane.xlu0 %5816 }
0x1b1b   : > { %v5839_v34 = vsub.f32 %v5807_v13, %v5817_v33 }
0x1b1c   : > { %v5849_v30 = vmul.f32 1.442695, %v5840_v41 }
0x1b1d   : > { %v5847_v48 = vmul.f32 1.442695, %v5839_v34 }
0x1b1e   : > { %8638 = vpow2.f32 %v5849_v30 }
0x1b1f   : > { %8640 = vpow2.f32 %v5847_v48 }
0x1b22   : > { %8499 = vrot.lane.b32.xlu1 %v9332_v0, %s8724_s11  ;;  %s7037_s11 = sshll.u32 %s9469_s25, 3 }
0x1b28   : > { %v9386_v31 = vpop.eup %8638 }
0x1b29   : > { %v5866_v32 = vsel %vm1131_vm10, %v9386_v31, 0.0  ;;  %v8641_v35 = vpop.eup %8640 }
0x1b2a   : > { %5867 = vadd.xlane.f32.xlu0 %v5866_v32  ;;  %v5863_v52 = vsel %vm1131_vm10, %v8641_v35, 0.0 }
0x1b46   : > { %5864 = vadd.xlane.f32.xlu1 %v5863_v52 }
0x1b91   : > { %v5823_v10 = vpop.xlane.xlu0 %5822 }
0x1b92   : > { %v5841_v37 = vsub.f32 %v5809_v23, %v5823_v10 }
0x1b94   : > { %v5851_v38 = vmul.f32 1.442695, %v5841_v37 }
0x1b95   : > { %v5826_v39 = vpop.xlane.xlu0 %5825 }
0x1b96   : > { %8642 = vpow2.f32 %v5851_v38  ;;  %v5842_v40 = vsub.f32 %v5810_v15, %v5826_v39 }
0x1b98   : > { %v5853_v56 = vmul.f32 1.442695, %v5842_v40 }
0x1b99   : > { %v5832_v7 = vpop.xlane.xlu0 %5831 }
0x1b9a   : > { %8644 = vpow2.f32 %v5853_v56  ;;  %v5829_v43 = vpop.xlane.xlu1 %5828  ;;  %v5844_v8 = vsub.f32 %v9374_v24, %v5832_v7 }
0x1b9b   : > { %v5843_v54 = vsub.f32 %v5811_v21, %v5829_v43 }
0x1b9c   : > { %v5857_v1 = vmul.f32 1.442695, %v5844_v8 }
0x1b9d   : > { %v5855_v59 = vmul.f32 1.442695, %v5843_v54  ;;  %v5838_v9 = vpop.xlane.xlu0 %5837 }
0x1b9e   : > { %v5835_v44 = vpop.xlane.xlu1 %5834  ;;  %v5846_v11 = vsub.f32 %v9376_v22, %v5838_v9 }
0x1b9f   : > { %8646 = vpow2.f32 %v5855_v59  ;;  %v5845_v45 = vsub.f32 %v5813_v26, %v5835_v44  ;;  %v372_v59 = vld [vmem:[#allocation2 + $0xa0] sm:$0xff]  ;;  %v371_v44 = vld [vmem:[#allocation2 + $0x98] sm:$0xff] }
0x1ba0   : > { %v8643_v46 = vpop.eup %8642  ;;  %v5861_v12 = vmul.f32 1.442695, %v5846_v11  ;;  %7922 = vmatprep.subr.mxu0 %v372_v59 }
0x1ba1   : > { %v5859_v47 = vmul.f32 1.442695, %v5845_v45  ;;  %v5869_v49 = vsel %vm1131_vm10, %v8643_v46, 0.0  ;;  %7923 = vmatpush3.msra.mxu0 %v372_v59 }
0x1ba2   : > { %v8500_v50 = vpop.permute.xlu1 %8499  ;;  %5870 = vadd.xlane.f32.xlu1 %v5869_v49  ;;  %7927 = vmatprep.subr.mxu0 %v371_v44 }
0x1ba3   : > { %8648 = vpow2.f32 %v5859_v47  ;;  %v8502_v53 = vunpack.i.h.bf16 %v8500_v50  ;;  %v8501_v60 = vunpack.i.l.bf16 %v8500_v50  ;;  %v373_v50 = vld [vmem:[#allocation2 + $0xa8] sm:$0xff] }
0x1ba4   : > { %v8645_v61 = vpop.eup %8644  ;;  %8650 = vpow2.f32 %v5857_v1 }
0x1ba5   : > { %v8241_v62 = vpack.c.bf16 %v8502_v53, %v8501_v60  ;;  %v5872_v63 = vsel %vm1131_vm10, %v8645_v61, 0.0  ;;  %8652 = vpow2.f32 %v5861_v12  ;;  %v374_v53 = vld [vmem:[#allocation2 + $0xb0] sm:$0xff] }
0x1ba6   : > { %5873 = vadd.xlane.f32.xlu0 %v5872_v63 }
0x1ba7   : > { %8242 = vmatprep.subr.bf16.mxu1 %v8241_v62 }
0x1ba8   : > { %8244 = vmatpush3.bf16.msra.mxu1 %v8241_v62 }
0x1ba9   : > { %v8647_v2 = vpop.eup %8646 }
0x1baa   : > { %v5875_v4 = vsel %vm1131_vm10, %v8647_v2, 0.0 }
0x1bab   : > { %5876 = vadd.xlane.f32.xlu1 %v5875_v4 }
0x1bad   : > { %v9394_v5 = vpop.eup %8648 }
0x1bae   : > { %v5881_v6 = vsel %vm1131_vm10, %v9394_v5, 0.0  ;;  %v8651_v14 = vpop.eup %8650 }
0x1baf   : > { %5882 = vadd.xlane.f32.xlu1 %v5881_v6  ;;  %v5878_v55 = vsel %vm1131_vm10, %v8651_v14, 0.0  ;;  %v8653_v58 = vpop.eup %8652 }
0x1bb0   : > { %v5884_v57 = vsel %vm1131_vm10, %v8653_v58, 0.0 }
0x1bb7   : > { %v5868_v13 = vpop.xlane.xlu0 %5867 }
0x1bb8   : > { %8654 = vrcp.f32 %v5868_v13 }
0x1bbc   : > { %8504 = vrot.lane.b32.xlu0 %v9332_v0, %s8725_s12 }
0x1bc0   : > { %8509 = vrot.lane.b32.xlu1 %v9332_v0, %s8728_s15 }
0x1bc2   : > { %v8655_v23 = vpop.eup %8654 }
0x1bc3   : > { %v5896_v17 = vmul.f32 %v8655_v23, %v9386_v31 }
0x1bd3   : > { %v5865_v3 = vpop.xlane.xlu1 %5864 }
0x1bd4   : > { %8656 = vrcp.f32 %v5865_v3 }
0x1bdb   : > { %5879 = vadd.xlane.f32.xlu0 %v5878_v55 }
0x1bde   : > { %v8657_v15 = vpop.eup %8656 }
0x1bdf   : > { %5885 = vadd.xlane.f32.xlu0 %v5884_v57  ;;  %v5895_v16 = vmul.f32 %v8657_v15, %v8641_v35 }
0x1be1   : > { %7912 = vmatprep.mubr.msk.f32.mxu1 %vm1131_vm10, %v5895_v16  ;;  %v357_v16 = vld [vmem:[#allocation2 + $0x28] sm:$0xff] }
0x1be2   : > { %7913 = vmatmul.mubr.msk.f32.vlgmr.msra.gmra.mrb[52].mxu1 %vm1131_vm10, %v5896_v17 }
0x1bf5   : > { %8514 = vrot.lane.b32.xlu0 %v9332_v0, %s8727_s14  ;;  %s351_s14 = scalar_lea.vmem %s9456_s7, %s7037_s11 }
0x1c2f   : > { %v5871_v18 = vpop.xlane.xlu1 %5870 }
0x1c30   : > { %8658 = vrcp.f32 %v5871_v18  ;;  %v358_v18 = vld [vmem:[#allocation2 + $0x30] sm:$0xff] }
0x1c33   : > { %v5874_v24 = vpop.xlane.xlu0 %5873 }
0x1c34   : > { %8660 = vrcp.f32 %v5874_v24  ;;  %v359_v24 = vld [vmem:[#allocation2 + $0x38] sm:$0xff] }
0x1c37   : > { %v8505_v19 = vpop.permute.xlu0 %8504 }
0x1c38   : > { %v8507_v20 = vunpack.i.h.bf16 %v8505_v19  ;;  %v8506_v21 = vunpack.i.l.bf16 %v8505_v19  ;;  %v5877_v22 = vpop.xlane.xlu1 %5876  ;;  %v8261_v19 = vpack.c.bf16 %v359_v24, %v358_v18  ;;  %v459_v18 = vld [vmem:[#allocation2 + $0x358] sm:$0xff]  ;;  %v460_v24 = vld [vmem:[#allocation2 + $0x360] sm:$0xff] }
0x1c39   : > { %8662 = vrcp.f32 %v5877_v22  ;;  %v363_v22 = vld [vmem:[#allocation2 + $0x58] sm:$0xff] }
0x1c3a   : > { %v8659_v25 = vpop.eup %8658  ;;  %v8245_v26 = vpack.c.bf16 %v8507_v20, %v8506_v21  ;;  %v361_v20 = vld [vmem:[#allocation2 + $0x48] sm:$0xff]  ;;  %v362_v21 = vld [vmem:[#allocation2 + $0x50] sm:$0xff] }
0x1c3b   : > { %v5897_v27 = vmul.f32 %v8659_v25, %v8643_v46  ;;  %v8265_v25 = vpack.c.bf16 %v362_v21, %v361_v20  ;;  %v8735_v20 = vmov 0.0|0.0   ;;  %v461_v21 = vld [vmem:[#allocation2 + $0x368] sm:$0xff] }
0x1c3c   : > { %v5883_v28 = vpop.xlane.xlu1 %5882  ;;  %8246 = vmatprep.subr.bf16.mxu1 %v8245_v26 }
0x1c3d   : > { %8248 = vmatpush3.bf16.msra.mxu1 %v8245_v26  ;;  %7919 = vmatprep.mubr.msk.f32.mxu1 %vm1131_vm10, %v5897_v27  ;;  %8664 = vrcp.f32 %v5883_v28  ;;  %v364_v26 = vld [vmem:[#allocation2 + $0x60] sm:$0xff]  ;;  %v365_v28 = vld [vmem:[#allocation2 + $0x68] sm:$0xff] }
0x1c3e   : > { %v8661_v29 = vpop.eup %8660  ;;  %v8269_v27 = vpack.c.bf16 %v364_v26, %v363_v22  ;;  %v462_v22 = vld [vmem:[#allocation2 + $0x370] sm:$0xff]  ;;  %v8737_v26 = vmov 0.0  }
0x1c3f   : > { %v5898_v42 = vmul.f32 %v8661_v29, %v8645_v61  ;;  %v366_v29 = vld [vmem:[#allocation2 + $0x70] sm:$0xff] }
0x1c40   : > { %v8510_v0 = vpop.permute.xlu1 %8509 }
0x1c41   : > { %v8512_v41 = vunpack.i.h.bf16 %v8510_v0  ;;  %v8511_v30 = vunpack.i.l.bf16 %v8510_v0  ;;  %7920 = vmatmul.mubr.msk.f32.vlgmr.msra.gmra.mrb[54].mxu1 %vm1131_vm10, %v5898_v42  ;;  %v8273_v42 = vpack.c.bf16 %v366_v29, %v365_v28 }
0x1c43   : > { %v8663_v31 = vpop.eup %8662  ;;  %v8249_v32 = vpack.c.bf16 %v8512_v41, %v8511_v30 }
0x1c44   : > { %v5899_v33 = vmul.f32 %v8663_v31, %v8647_v2  ;;  %v7219_v2 = vld [vmem:[#allocation2 + $0x88] ss:$0 sm:$0xff] }
0x1c45   : > { %8250 = vmatprep.subr.bf16.mxu1 %v8249_v32 }
0x1c46   : > { %8252 = vmatpush3.bf16.msra.mxu1 %v8249_v32  ;;  %7936 = vmatprep.mubr.msk.f32.mxu1 %vm1131_vm10, %v5899_v33 }
0x1c47   : > { %v8665_v37 = vpop.eup %8664 }
0x1c48   : > { %v5901_v56 = vmul.f32 %v8665_v37, %v9394_v5  ;;  %v7221_v37 = vld [vmem:[#allocation2 + $0xe8] ss:$0 sm:$0xff] }
0x1c68   : > { %v5880_v34 = vpop.xlane.xlu0 %5879 }
0x1c69   : > { %8666 = vrcp.f32 %v5880_v34 }
0x1c6c   : > { %v5886_v48 = vpop.xlane.xlu0 %5885 }
0x1c6d   : > { %8668 = vrcp.f32 %v5886_v48  ;;  %v7220_v48 = vld [vmem:[#allocation2 + $0xf0] ss:$0 sm:$0xff] }
0x1c70   : > { %v8515_v35 = vpop.permute.xlu0 %8514 }
0x1c71   : > { %v8517_v52 = vunpack.i.h.bf16 %v8515_v35  ;;  %v8516_v10 = vunpack.i.l.bf16 %v8515_v35 }
0x1c73   : > { %v8667_v38 = vpop.eup %8666  ;;  %v8253_v39 = vpack.c.bf16 %v8517_v52, %v8516_v10 }
0x1c74   : > { %v5900_v40 = vmul.f32 %v8667_v38, %v8651_v14 }
0x1c75   : > { %8254 = vmatprep.subr.bf16.mxu1 %v8253_v39 }
0x1c76   : > { %7937 = vmatmul.mubr.msk.f32.vlgmr.msra.gmra.mrb[56].mxu1 %vm1131_vm10, %v5900_v40 }
0x1c77   : > { %v8669_v43 = vpop.eup %8668  ;;  %8256 = vmatpush3.bf16.msra.mxu1 %v8253_v39  ;;  %7948 = vmatprep.mubr.msk.f32.mxu1 %vm1131_vm10, %v5901_v56 }
0x1c78   : > { %v5902_v54 = vmul.f32 %v8669_v43, %v8653_v58  ;;  %v367_v43 = vld [vmem:[#allocation2 + $0x78] sm:$0xff] }
0x1c7a   : > { %7949 = vmatmul.mubr.msk.f32.vlgmr.msra.gmra.mrb[58].mxu1 %vm1131_vm10, %v5902_v54  ;;  %v368_v54 = vld [vmem:[#allocation2 + $0x80] sm:$0xff] }
0x1c7b   : > { %v8277_v59 = vpack.c.bf16 %v368_v54, %v367_v43 }
0x1cb5   : > { %v7914_v45 = vpop.f32.mrb[52].mxu1 }
0x1cb6   : > { %v5981_v46 = vpop.f32.mrb[53].mxu1 }
0x1d14   : > { %v7921_v47 = vpop.f32.mrb[54].mxu1 }
0x1d15   : > { %v6068_v49 = vpop.f32.mrb[55].mxu1 }
0x1d16   : > { %7924 = vmatprep.mubr.msk.f32.mxu0 %vm498_vm6, %v6068_v49 }
0x1d17   : > { %7925 = vmatmul.mubr.msk.f32.vlgmr.msra.gmra.mrb[34].mxu0 %vm498_vm6, %v7921_v47 }
0x1d18   : > { %7929 = vmatprep.mubr.msk.f32.mxu0 %vm498_vm6, %v5981_v46  ;;  %7928 = vmatpush3.msra.mxu0 %v371_v44  ;;  %v7222_v44 = vld [vmem:[#allocation2 + $0x18] ss:$0 sm:$0xff] }
0x1d19   : > { %7939 = vmatprep.subr.mxu0 %v373_v50 }
0x1d1f   : > { %7930 = vmatmul.mubr.msk.f32.vlgmr.msra.gmra.mrb[34].mxu0 %vm498_vm6, %v7914_v45 }
0x1d20   : > { %7940 = vmatpush3.msra.mxu0 %v373_v50 }
0x1d21   : > { %7951 = vmatprep.subr.mxu0 %v374_v53 }
0x1d49   : > { %v7938_v60 = vpop.f32.mrb[56].mxu1 }
0x1d4a   : > { %v6317_v61 = vpop.f32.mrb[57].mxu1 }
0x1d4b   : > { %7941 = vmatprep.mubr.msk.f32.mxu0 %vm498_vm6, %v6317_v61 }
0x1d4c   : > { %7942 = vmatmul.mubr.msk.f32.vlgmr.msra.gmra.mrb[34].mxu0 %vm498_vm6, %v7938_v60  ;;  %v7225_v60 = vld [vmem:[#allocation2 + $0x40] ss:$0 sm:$0xff] }
0x1d4d   : > { %v7950_v62 = vpop.f32.mrb[58].mxu1  ;;  %7952 = vmatpush3.msra.mxu0 %v374_v53 }
0x1d4e   : > { %v6487_v63 = vpop.f32.mrb[59].mxu1  ;;  %8266 = vmatprep.subr.bf16.mxu0 %v8265_v25 }
0x1d4f   : > { %7953 = vmatprep.mubr.msk.f32.mxu0 %vm498_vm6, %v6487_v63 }
0x1d54   : > { %7954 = vmatmul.mubr.msk.f32.vlgmr.msra.gmra.mrb[34].mxu0 %vm498_vm6, %v7950_v62 }
0x1d55   : > { %8268 = vmatpush3.bf16.msra.mxu0 %v8265_v25  ;;  %v8285_v25 = vpack.c.bf16 %v462_v22, %v461_v21 }
0x1d56   : > { %8270 = vmatprep.subr.bf16.mxu0 %v8269_v27 }
0x1d59   : > { %8272 = vmatpush3.bf16.msra.mxu0 %v8269_v27 }
0x1d5a   : > { %8274 = vmatprep.subr.bf16.mxu0 %v8273_v42 }
0x1d5d   : > { %8276 = vmatpush3.bf16.msra.mxu0 %v8273_v42 }
0x1d5e   : > { %8278 = vmatprep.subr.bf16.mxu0 %v8277_v59 }
0x1d61   : > { %8280 = vmatpush3.bf16.msra.mxu0 %v8277_v59 }
0x1e27   : > { %v7955_v4 = vpop.f32.mrb[34].mxu0 }
0x1e28   : > { %v6584_v5 = vadd.f32 %v7955_v4, %v7219_v2  ;;  %v6568_v6 = vpop.f32.mrb[35].mxu0 }
0x1e29   : > { %v6583_v7 = vadd.f32 %v7219_v2, %v6568_v6 }
0x1e2a   : > { %v6586_v8 = vadd.f32 %v6584_v5, %v9326_v51 }
0x1e2b   : > { %v6585_v9 = vadd.f32 %v6583_v7, %v9324_v36  ;;  %v356_v36 = vld [vmem:[#allocation2 + $0x20] sm:$0xff] }
0x1e2c   : > { %v6590_v1 = vsel %vm679_vm8, %v6586_v8, 0.0  ;;  %v8257_v17 = vpack.c.bf16 %v357_v16, %v356_v36 }
0x1e2d   : > { %6591 = vadd.xlane.f32.xlu0 %v6590_v1  ;;  %v6587_v11 = vsel %vm679_vm8, %v6585_v9, 0.0 }
0x1e2e   : > { %6588 = vadd.xlane.f32.xlu1 %v6587_v11  ;;  %8258 = vmatprep.subr.bf16.mxu1 %v8257_v17 }
0x1e2f   : > { %8260 = vmatpush3.bf16.msra.mxu1 %v8257_v17 }
0x1e30   : > { %8262 = vmatprep.subr.bf16.mxu1 %v8261_v19 }
0x1e33   : > { %8264 = vmatpush3.bf16.msra.mxu1 %v8261_v19  ;;  %v8282_v19 = vpack.c.bf16 %v460_v24, %v459_v18 }
0x1e34   : > { %8281 = vmatprep.subr.bf16.mxu1 %v8735_v20 }
0x1eba   : > { %v6592_v12 = vpop.xlane.xlu0 %6591 }
0x1ebb   : > { %v6594_v13 = vmul.f32 0.03125, %v6592_v12  ;;  %v6589_v3 = vpop.xlane.xlu1 %6588 }
0x1ebc   : > { %v6593_v14 = vmul.f32 0.03125, %v6589_v3  ;;  %v7228_v3 = vld [vmem:[#allocation2 + $0x100] ss:$0 sm:$0xff] }
0x1ebd   : > { %v6596_v55 = vsub.f32 %v6586_v8, %v6594_v13 }
0x1ebe   : > { %v6595_v58 = vsub.f32 %v6585_v9, %v6593_v14 }
0x1ebf   : > { %v6598_v23 = vmul.f32 %v6596_v55, %v6596_v55 }
0x1ec0   : > { %v6597_v15 = vmul.f32 %v6595_v58, %v6595_v58 }
0x1ec1   : > { %v6602_v57 = vsel %vm679_vm8, %v6598_v23, 0.0 }
0x1ec2   : > { %6603 = vadd.xlane.f32.xlu0 %v6602_v57  ;;  %v6599_v51 = vsel %vm679_vm8, %v6597_v15, 0.0 }
0x1ec3   : > { %6600 = vadd.xlane.f32.xlu1 %v6599_v51 }
0x1f4f   : > { %v6604_v0 = vpop.xlane.xlu0 %6603 }
0x1f50   : > { %v6606_v41 = vmul.f32 0.03125, %v6604_v0  ;;  %v6601_v30 = vpop.xlane.xlu1 %6600  ;;  %v7230_v0 = vld [vmem:[#allocation2 + $0x160] ss:$0 sm:$0xff] }
0x1f51   : > { %v6605_v31 = vmul.f32 0.03125, %v6601_v30  ;;  %v7231_v30 = vld [vmem:[#allocation2 + $0x158] ss:$0 sm:$0xff] }
0x1f52   : > { %v6608_v32 = vadd.f32 1e-05, %v6606_v41 }
0x1f53   : > { %v6607_v33 = vadd.f32 1e-05, %v6605_v31 }
0x1f54   : > { %8670 = vrsqrt.f32 %v6608_v32 }
0x1f55   : > { %8672 = vrsqrt.f32 %v6607_v33  ;;  %v7232_v33 = vld [vmem:[#allocation2 + $0x350] ss:$0 sm:$0xff] }
0x1f5e   : > { %v8671_v34 = vpop.eup %8670 }
0x1f5f   : > { %v8673_v35 = vpop.eup %8672  ;;  %v6612_v52 = vmul.f32 %v8671_v34, %v6596_v55  ;;  %v7229_v55 = vld [vmem:[#allocation2 + $0xf8] ss:$0 sm:$0xff] }
0x1f60   : > { %v6611_v10 = vmul.f32 %v8673_v35, %v6595_v58 }
0x1f61   : > { %v6618_v38 = vmul.f32 %v7220_v48, %v6612_v52 }
0x1f62   : > { %v6617_v39 = vmul.f32 %v7220_v48, %v6611_v10 }
0x1f63   : > { %v6624_v56 = vadd.f32 %v7221_v37, %v6618_v38 }
0x1f64   : > { %v6623_v40 = vadd.f32 %v7221_v37, %v6617_v39 }
0x1f66   : > { %7964 = vmatprep.mubr.msk.f32.mxu1 %vm679_vm8, %v6623_v40 }
0x1f67   : > { %7965 = vmatmul.mubr.msk.f32.vlgmr.msra.gmra.mrb[60].mxu1 %vm679_vm8, %v6624_v56 }
0x1f68   : > { %8283 = vmatpush3.bf16.msra.mxu1 %v8282_v19  ;;  %7994 = vmatprep.mubr.msk.f32.mxu1 %vm8736_vm4, %v8737_v26 }
0x1f69   : > { %8284 = vmatprep.subr.bf16.mxu1 %v8735_v20 }
0x1f6c   : > { %8286 = vmatpush3.bf16.msra.mxu1 %v8285_v25 }
0x203a   : > { %v7966_v45 = vpop.f32.mrb[60].mxu1 }
0x203b   : > { %v6707_v46 = vadd.f32 %v7966_v45, %v7222_v44  ;;  %v6701_v47 = vpop.f32.mrb[61].mxu1 }
0x203c   : > { %v6702_v49 = vadd.f32 %v7222_v44, %v6701_v47 }
0x203d   : > { %v6711_v53 = vmax.f32 %v6707_v46, 0.0 }
0x203e   : > { %v6710_v50 = vmax.f32 %v6702_v49, 0.0 }
0x2040   : > { %7983 = vmatprep.mubr.msk.f32.mxu0 %vm2034_vm11, %v6710_v50 }
0x2041   : > { %7984 = vmatmul.mubr.msk.f32.vlgmr.msra.gmra.mrb[36].mxu0 %vm2034_vm11, %v6711_v53 }
0x2114   : > { %v7985_v61 = vpop.f32.mrb[36].mxu0 }
0x2115   : > { %v6793_v62 = vadd.f32 %v7985_v61, %v7225_v60  ;;  %v6788_v63 = vpop.f32.mrb[37].mxu0 }
0x2117   : > { %v6796_v2 = vadd.f32 %v6793_v62, %v6624_v56 }
0x2119   : > { %v6797_v4 = vsel %vm679_vm8, %v6796_v2, 0.0 }
0x211a   : > { %6798 = vadd.xlane.f32.xlu1 %v6797_v4 }
0x21a7   : > { %v6799_v5 = vpop.xlane.xlu1 %6798 }
0x21a8   : > { %v6800_v6 = vmul.f32 0.03125, %v6799_v5 }
0x21aa   : > { %v6801_v7 = vsub.f32 %v6796_v2, %v6800_v6 }
0x21ac   : > { %v6802_v8 = vmul.f32 %v6801_v7, %v6801_v7 }
0x21ae   : > { %v6803_v9 = vsel %vm679_vm8, %v6802_v8, 0.0 }
0x21af   : > { %6804 = vadd.xlane.f32.xlu0 %v6803_v9 }
0x223c   : > { %v6805_v1 = vpop.xlane.xlu0 %6804 }
0x223d   : > { %v6806_v11 = vmul.f32 0.03125, %v6805_v1 }
0x223f   : > { %v6807_v12 = vadd.f32 1e-05, %v6806_v11 }
0x2241   : > { %8674 = vrsqrt.f32 %v6807_v12 }
0x224b   : > { %v8675_v13 = vpop.eup %8674 }
0x224c   : > { %v6809_v14 = vmul.f32 %v8675_v13, %v6801_v7 }
0x224e   : > { %v6814_v58 = vmul.f32 %v7228_v3, %v6809_v14 }
0x2250   : > { %v6819_v23 = vadd.f32 %v7229_v55, %v6814_v58 }
0x2252   : > { %v6820_v15 = vsel %vm679_vm8, %v6819_v23, 0.0 }
0x2253   : > { %6821 = vadd.xlane.f32.xlu1 %v6820_v15 }
0x22e0   : > { %v6822_v57 = vpop.xlane.xlu1 %6821 }
0x22e1   : > { %v6823_v51 = vmul.f32 0.03125, %v6822_v57 }
0x22e3   : > { %v6824_v36 = vsub.f32 %v6819_v23, %v6823_v51 }
0x22e5   : > { %v6825_v16 = vmul.f32 %v6824_v36, %v6824_v36 }
0x22e7   : > { %v6826_v17 = vsel %vm679_vm8, %v6825_v16, 0.0 }
0x22e8   : > { %6827 = vadd.xlane.f32.xlu0 %v6826_v17 }
0x2375   : > { %v6828_v27 = vpop.xlane.xlu0 %6827 }
0x2376   : > { %v6829_v28 = vmul.f32 0.03125, %v6828_v27 }
0x2378   : > { %v6830_v29 = vadd.f32 1e-05, %v6829_v28 }
0x237a   : > { %8676 = vrsqrt.f32 %v6830_v29 }
0x2384   : > { %v8677_v42 = vpop.eup %8676 }
0x2385   : > { %v6832_v41 = vmul.f32 %v8677_v42, %v6824_v36 }
0x2387   : > { %v6837_v31 = vmul.f32 %v7230_v0, %v6832_v41 }
0x2389   : > { %v6842_v32 = vadd.f32 %v7231_v30, %v6837_v31 }
0x238b   : > { %7995 = vmatmul.mubr.msk.f32.vlgmr.msra.gmra.mrb[62].mxu1 %vm679_vm8, %v6842_v32 }
0x245e   : > { %v6916_v34 = vpop.f32.mrb[62].mxu1 }
0x245f   : > { %v6917_v48 = vadd.f32 %v7232_v33, %v6916_v34  ;;  %v7996_v35 = vpop.f32.mrb[63].mxu1 }
0x2461   : > { %6920 = vst.msk [vmem:[%s351_s14] sm:$0xff] %vm495_vm5, %v6917_v48 }
0x2462 PF: > { %s18_s24 = sadd.s32 1, %s8716_s24  }
0x2463   : > { %p15_p3 = scmp.ge.s32.totalorder %s18_s24, 4  }
0x2465   :  { %17 = sbr.rel (!%p15_p3) target bundleno = 1 (0x1), region = 92 }
0x246c   :  { %6940 = vsyncpa [#allocation3], 1 }
0x246d   :  { %6942 = vsyncpa [#allocation3 + $0x1], 1 }

</bundles_post_ra>
